<compile_context>
chip_gen: v7x
topology: tpu7x:2x2x1
jax: 0.10.0
libtpu: 0.0.40
codegen_flags: <defaults>
</compile_context>

<pallas_src>
import jax
import jax.numpy as jnp
import numpy as np
from jax.experimental import pallas as pl
from jax.experimental.pallas import tpu as pltpu

BETA = 10.0  # module-level `beta = 10` in runLucas.py


def _round_up(x: int, m: int) -> int:
    return ((x + m - 1) // m) * m


def _choose_tile_b(B: int, tile_b: int) -> int:
    """Batch tile: multiple of 128 lanes; >=2 tiles when the batch allows it."""
    b128 = _round_up(B, 128)
    tb = min(_round_up(max(tile_b, 1), 128), b128)
    # v7x: both TensorCores split the "parallel" batch axis -> prefer >= 2 tiles.
    if b128 >= 256 and tb > b128 // 2:
        tb = _round_up(b128 // 2, 128)
    return tb


def _choose_d_chunk(D: int, d_chunk: int) -> int:
    """Feature slab width: lane-aligned divisor of D (falls back to full D)."""
    for c in (d_chunk, 512, 256, 128):
        if 0 < c <= D and D % c == 0 and c % 128 == 0:
            return c
    return D


def _make_vi_kernel(bf16_tail: bool):
    def vi_kernel(x_ref, z_ref, mu_ref, ls_ref, w_dec_ref, out_ref, acc_ref):
        d_idx = pl.program_id(1)
        n_d = pl.num_programs(1)
        tb = x_ref.shape[0]

        @pl.when(d_idx == 0)
        def _():
            acc_ref[...] = jnp.zeros_like(acc_ref)

        z = z_ref[...]                                   # (TB, L) f32

        # Fused decoder slab on the MXU: Bernoulli logits for this D-chunk.
        logits = jnp.dot(z, w_dec_ref[...],
                         preferred_element_type=jnp.float32)          # (TB, DC)

        # Binary-x identity (exact for x in {0,1}):
        #   x*t - softplus(t) == -softplus(where(x != 0, -t, t))
        # -> no f32 upcast of x, no TB*DC multiply/subtract.
        t = jnp.where(x_ref[...] != 0, -logits, logits)
        neg_abs_t = -jnp.abs(t)
        if bf16_tail:
            # EUP in bf16 (v6e/v7x); sum stays f32.  Off by default (tolerance).
            tail = jnp.log1p(jnp.exp(neg_abs_t.astype(jnp.bfloat16))
                             ).astype(jnp.float32)
        else:
            tail = jnp.log1p(jnp.exp(neg_abs_t))
        softplus_t = jnp.maximum(t, 0.0) + tail

        # Partial log p(x|z) over this feature slab, accumulated in f32.
        acc_ref[...] -= jnp.sum(softplus_t, axis=1, keepdims=True)     # (TB, 1)

        @pl.when(d_idx == n_d - 1)
        def _():
            mu = mu_ref[...]
            ls = ls_ref[...]
            c = jnp.float32(0.5 * np.log(2.0 * np.pi))

            # log p(z): standard Normal(0, 1)
            log_pz = jnp.sum(-c - 0.5 * z * z, axis=1, keepdims=True)   # (TB,1)
            # log q(z|x): Normal(mu, exp(log_sigma))
            zn = (z - mu) * jnp.exp(-ls)
            log_qz = jnp.sum(-c - ls - 0.5 * zn * zn,
                             axis=1, keepdims=True)                     # (TB,1)
            kl = log_qz - log_pz                                        # (TB,1)
            log_px = acc_ref[...]                                       # (TB,1)

            # Lane-dense packed output: one (1, 2, TB) block per batch tile.
            out_ref[:, 0:1, :] = jnp.transpose(log_px).reshape(1, 1, tb)
            out_ref[:, 1:2, :] = jnp.transpose(kl).reshape(1, 1, tb)

    return vi_kernel


def variational_inference(x_flat, z, qz_mu, qz_log_sigma, w_dec, *,
                          tile_b=1024, d_chunk=512, bf16_softplus_tail=False):
    """Hot path of VariationalInference(beta=10).forward -> (loss, diagnostics).

    NOTE: x must be binary {0,1} (Bernoulli targets); it is shipped as bf16,
    which is exact for those values.
    """
    B, D = x_flat.shape
    L = z.shape[1]

    tb = _choose_tile_b(B, tile_b)
    dc = _choose_d_chunk(D, d_chunk)
    b_pad = _round_up(B, tb)
    num_tiles = b_pad // tb
    num_d = D // dc
    pad = b_pad - B

    # Binary data: bf16 halves the dominant HBM input stream (exact for {0,1}).
    x_p = jnp.pad(x_flat, ((0, pad), (0, 0))).astype(jnp.bfloat16)
    z_p = jnp.pad(z, ((0, pad), (0, 0)))
    mu_p = jnp.pad(qz_mu, ((0, pad), (0, 0)))
    ls_p = jnp.pad(qz_log_sigma, ((0, pad), (0, 0)))

    # VMEM budget at tb=1024, dc=512: x tile 1 MiB (x2 buffers), slab
    # intermediates (logits/t/tail) ~6 MiB, latents ~0.8 MiB, w_dec slab
    # 64 KiB, acc 0.5 MiB -> well inside the explicit 32 MiB limit on
    # v5e / v6e / v7x.
    lat_spec = pl.BlockSpec((tb, L), lambda i, k: (i, 0))

    out = pl.pallas_call(
        _make_vi_kernel(bf16_softplus_tail),
        grid=(num_tiles, num_d),
        in_specs=[
            pl.BlockSpec((tb, dc), lambda i, k: (i, k)),   # x (bf16) slab
            lat_spec,                                      # z
            lat_spec,                                      # qz mu
            lat_spec,                                      # qz log_sigma
            pl.BlockSpec((L, dc), lambda i, k: (0, k)),    # w_dec slab
        ],
        out_specs=pl.BlockSpec((1, 2, tb), lambda i, k: (i, 0, 0)),
        out_shape=jax.ShapeDtypeStruct((num_tiles, 2, tb), jnp.float32),
        scratch_shapes=[pltpu.VMEM((tb, 1), jnp.float32)],  # log_px accumulator
        compiler_params=pltpu.CompilerParams(
            dimension_semantics=("parallel", "arbitrary"),
            vmem_limit_bytes=32 * 1024 * 1024),
    )(x_p, z_p, mu_p, ls_p, w_dec)

    log_px = out[:, 0, :].reshape(-1)[:B]
    kl = out[:, 1, :].reshape(-1)[:B]
    elbo = log_px - kl                       # computed wrapper-side (cheap)

    # Global mean done wrapper-side (a per-tile mean in-kernel would be wrong
    # with a tiled batch); this is just a B-element reduction.
    loss = -jnp.mean(log_px - BETA * kl)

    diagnostics = {"elbo": elbo, "log_px": log_px, "kl": kl}
    return loss, diagnostics


def encode_and_sample(x_flat, w_enc, eps):
    """Deterministic toy encoder (plain-JAX glue; not the hot path)."""
    L = eps.shape[1]
    h = x_flat @ w_enc                       # (B, 2L)
    qz_mu = h[:, :L]
    qz_log_sigma = h[:, L:]
    z = qz_mu + jnp.exp(qz_log_sigma) * eps  # reparameterized sample
    return z, qz_mu, qz_log_sigma


def reference(x_flat, px_logits, z, qz_mu, qz_log_sigma):
    """Pure-JAX reference of the PyTorch forward for verification."""
    log_px = jnp.sum(x_flat * px_logits - jax.nn.softplus(px_logits), axis=1)
    c = 0.5 * jnp.log(2.0 * jnp.pi)
    log_pz = jnp.sum(-c - 0.5 * z * z, axis=1)
    sigma = jnp.exp(qz_log_sigma)
    log_qz = jnp.sum(-c - qz_log_sigma - 0.5 * ((z - qz_mu) / sigma) ** 2, axis=1)
    kl = log_qz - log_pz
    elbo = log_px - kl
    loss = -(log_px - BETA * kl).mean()
    return loss, elbo, log_px, kl


def _check(loss, diag, x_flat, z, qz_mu, qz_log_sigma, w_dec):
    px_logits = z @ w_dec
    ref_loss, ref_elbo, ref_log_px, ref_kl = reference(
        x_flat, px_logits, z, qz_mu, qz_log_sigma)
    np.testing.assert_allclose(np.asarray(loss), np.asarray(ref_loss),
                               rtol=2e-5, atol=1e-3)
    np.testing.assert_allclose(np.asarray(diag["elbo"]), np.asarray(ref_elbo),
                               rtol=2e-5, atol=1e-3)
    np.testing.assert_allclose(np.asarray(diag["log_px"]), np.asarray(ref_log_px),
                               rtol=2e-5, atol=1e-3)
    np.testing.assert_allclose(np.asarray(diag["kl"]), np.asarray(ref_kl),
                               rtol=2e-5, atol=1e-3)


if __name__ == "__main__":
    # x is NCHW [2, 4, 16, 16]; the PyTorch `reduce` flattens per-datapoint.
    B, C, H, W = 2, 4, 16, 16
    D = C * H * W        # 1024
    L = 32               # latent dim

    key = jax.random.PRNGKey(0)
    kx, kenc, kdec, keps = jax.random.split(key, 4)

    # binary data for the Bernoulli observation model
    x = (jax.random.uniform(kx, (B, C, H, W)) > 0.5).astype(jnp.float32)
    x_flat = x.reshape(B, D)

    w_enc = 0.05 * jax.random.normal(kenc, (D, 2 * L), dtype=jnp.float32)
    w_dec = 0.05 * jax.random.normal(kdec, (L, D), dtype=jnp.float32)
    eps = jax.random.normal(keps, (B, L), dtype=jnp.float32)

    z, qz_mu, qz_log_sigma = encode_and_sample(x_flat, w_enc, eps)

    # NOTE: at B=2 this is pure launch overhead; the tiled/fused design targets
    # realistic batches.
    loss, diag = variational_inference(x_flat, z, qz_mu, qz_log_sigma, w_dec)
    loss = jax.block_until_ready(loss)
    _check(loss, diag, x_flat, z, qz_mu, qz_log_sigma, w_dec)

    # Also exercise the multi-batch-tile + padding + D-chunking path
    # (grid = (3 batch tiles, 2 feature slabs), batch padded 300 -> 384).
    B2 = 300
    k2x, k2eps = jax.random.split(jax.random.PRNGKey(1), 2)
    x2 = (jax.random.uniform(k2x, (B2, D)) > 0.5).astype(jnp.float32)
    eps2 = jax.random.normal(k2eps, (B2, L), dtype=jnp.float32)
    z2, mu2, ls2 = encode_and_sample(x2, w_enc, eps2)
    loss2, diag2 = variational_inference(x2, z2, mu2, ls2, w_dec, tile_b=128)
    loss2 = jax.block_until_ready(loss2)
    _check(loss2, diag2, x2, z2, mu2, ls2, w_dec)

    print("KERNEL_OK")
</pallas_src>

<mosaic_0001>
module attributes {stable_mosaic.version = 11 : i64} {
  func.func @vi_kernel(%arg0: i32, %arg1: i32, %arg2: memref<128x512xbf16, #tpu.memory_space<vmem>>, %arg3: memref<128x32xf32, #tpu.memory_space<vmem>>, %arg4: memref<128x32xf32, #tpu.memory_space<vmem>>, %arg5: memref<128x32xf32, #tpu.memory_space<vmem>>, %arg6: memref<32x512xf32, #tpu.memory_space<vmem>>, %arg7: memref<1x2x128xf32, #tpu.memory_space<vmem>>, %arg8: memref<128x1xf32, #tpu.memory_space<vmem>>) attributes {dimension_semantics = [#tpu.dimension_semantics<parallel>, #tpu.dimension_semantics<arbitrary>], iteration_bounds = array<i64: 1, 2>, scalar_prefetch = 0 : i64, scratch_operands = 1 : i64, tpu.core_type = #tpu.core_type<tc>, window_params = [{transform_indices = @transform_0, window_bounds = array<i64: 128, 512>}, {transform_indices = @transform_1, window_bounds = array<i64: 128, 32>}, {transform_indices = @transform_2, window_bounds = array<i64: 128, 32>}, {transform_indices = @transform_3, window_bounds = array<i64: 128, 32>}, {transform_indices = @transform_4, window_bounds = array<i64: 32, 512>}, {transform_indices = @transform_5, window_bounds = array<i64: 1, 2, 128>}]} {
    %c0_i32 = arith.constant 0 : i32
    %0 = arith.cmpi eq, %arg1, %c0_i32 : i32
    %1 = arith.extui %0 : i1 to i32
    %c0_i32_0 = arith.constant 0 : i32
    %2 = arith.cmpi ne, %1, %c0_i32_0 : i32
    scf.if %2 {
      %cst_16 = arith.constant 0.000000e+00 : f32
      %28 = vector.broadcast %cst_16 : f32 to vector<128x1xf32>
      %c0_17 = arith.constant 0 : index
      %c0_18 = arith.constant 0 : index
      %29 = vector.load %arg8[%c0_17, %c0_18] : memref<128x1xf32, #tpu.memory_space<vmem>>, vector<128x1xf32>
      tpu.vector_store %arg8[%c0_17, %c0_18], %28 {strides = array<i32>} : memref<128x1xf32, #tpu.memory_space<vmem>>, vector<128x1xf32>,
    } else {
    }
    %c0 = arith.constant 0 : index
    %c0_1 = arith.constant 0 : index
    %3 = vector.load %arg3[%c0, %c0_1] : memref<128x32xf32, #tpu.memory_space<vmem>>, vector<128x32xf32>
    %c0_2 = arith.constant 0 : index
    %c0_3 = arith.constant 0 : index
    %4 = vector.load %arg6[%c0_2, %c0_3] : memref<32x512xf32, #tpu.memory_space<vmem>>, vector<32x512xf32>
    %cst = arith.constant dense<0.000000e+00> : vector<128x512xf32>
    %5 = tpu.matmul %3, %4, %cst {dimension_numbers = #tpu.dot_dimension_numbers<[1], [0], [0], [1], [0, 0, 1, 1], [], []>} : vector<128x32xf32>, vector<32x512xf32>, vector<128x512xf32> -> vector<128x512xf32>
    %c0_4 = arith.constant 0 : index
    %c0_5 = arith.constant 0 : index
    %6 = vector.load %arg2[%c0_4, %c0_5] : memref<128x512xbf16, #tpu.memory_space<vmem>>, vector<128x512xbf16>
    %cst_6 = arith.constant 0.000000e+00 : bf16
    %7 = vector.broadcast %cst_6 : bf16 to vector<128x512xbf16>
    %8 = arith.cmpf one, %6, %7 : vector<128x512xbf16>
    %cst_7 = arith.constant 0.000000e+00 : f32
    %9 = vector.broadcast %cst_7 : f32 to vector<128x512xf32>
    %10 = arith.subf %9, %5 : vector<128x512xf32>
    %11 = arith.select %8, %10, %5 : vector<128x512xi1>, vector<128x512xf32>
    %12 = math.absf %11 : vector<128x512xf32>
    %cst_8 = arith.constant 0.000000e+00 : f32
    %13 = vector.broadcast %cst_8 : f32 to vector<128x512xf32>
    %14 = arith.subf %13, %12 : vector<128x512xf32>
    %15 = math.exp %14 : vector<128x512xf32>
    %16 = math.log1p %15 : vector<128x512xf32>
    %cst_9 = arith.constant 0.000000e+00 : f32
    %17 = vector.broadcast %cst_9 : f32 to vector<128x512xf32>
    %18 = arith.maximumf %11, %17 : vector<128x512xf32>
    %19 = arith.addf %18, %16 : vector<128x512xf32>
    %c0_10 = arith.constant 0 : index
    %c0_11 = arith.constant 0 : index
    %20 = vector.load %arg8[%c0_10, %c0_11] : memref<128x1xf32, #tpu.memory_space<vmem>>, vector<128x1xf32>
    %cst_12 = arith.constant dense<0.000000e+00> : vector<128xf32>
    %21 = vector.multi_reduction <add>, %19, %cst_12 [1] : vector<128x512xf32> to vector<128xf32>
    %22 = vector.shape_cast %21 : vector<128xf32> to vector<128x1xf32>
    %23 = arith.subf %20, %22 : vector<128x1xf32>
    %c0_13 = arith.constant 0 : index
    %c0_14 = arith.constant 0 : index
    %24 = vector.load %arg8[%c0_13, %c0_14] : memref<128x1xf32, #tpu.memory_space<vmem>>, vector<128x1xf32>
    tpu.vector_store %arg8[%c0_13, %c0_14], %23 {strides = array<i32>} : memref<128x1xf32, #tpu.memory_space<vmem>>, vector<128x1xf32>,
    %c1_i32 = arith.constant 1 : i32
    %25 = arith.cmpi eq, %arg1, %c1_i32 : i32
    %26 = arith.extui %25 : i1 to i32
    %c0_i32_15 = arith.constant 0 : i32
    %27 = arith.cmpi ne, %26, %c0_i32_15 : i32
    scf.if %27 {
      %c0_16 = arith.constant 0 : index
      %c0_17 = arith.constant 0 : index
      %28 = vector.load %arg4[%c0_16, %c0_17] : memref<128x32xf32, #tpu.memory_space<vmem>>, vector<128x32xf32>
      %c0_18 = arith.constant 0 : index
      %c0_19 = arith.constant 0 : index
      %29 = vector.load %arg5[%c0_18, %c0_19] : memref<128x32xf32, #tpu.memory_space<vmem>>, vector<128x32xf32>
      %cst_20 = arith.constant 0.000000e+00 : f32
      %cst_21 = arith.constant 0.918938517 : f32
      %30 = arith.subf %cst_20, %cst_21 : f32
      %cst_22 = arith.constant 5.000000e-01 : f32
      %31 = vector.broadcast %cst_22 : f32 to vector<128x32xf32>
      %32 = arith.mulf %31, %3 : vector<128x32xf32>
      %33 = arith.mulf %32, %3 : vector<128x32xf32>
      %34 = vector.broadcast %30 : f32 to vector<128x32xf32>
      %35 = arith.subf %34, %33 : vector<128x32xf32>
      %cst_23 = arith.constant dense<0.000000e+00> : vector<128xf32>
      %36 = vector.multi_reduction <add>, %35, %cst_23 [1] : vector<128x32xf32> to vector<128xf32>
      %37 = vector.shape_cast %36 : vector<128xf32> to vector<128x1xf32>
      %38 = arith.subf %3, %28 : vector<128x32xf32>
      %cst_24 = arith.constant 0.000000e+00 : f32
      %39 = vector.broadcast %cst_24 : f32 to vector<128x32xf32>
      %40 = arith.subf %39, %29 : vector<128x32xf32>
      %41 = math.exp %40 : vector<128x32xf32>
      %42 = arith.mulf %38, %41 : vector<128x32xf32>
      %cst_25 = arith.constant 0.000000e+00 : f32
      %cst_26 = arith.constant 0.918938517 : f32
      %43 = arith.subf %cst_25, %cst_26 : f32
      %44 = vector.broadcast %43 : f32 to vector<128x32xf32>
      %45 = arith.subf %44, %29 : vector<128x32xf32>
      %cst_27 = arith.constant 5.000000e-01 : f32
      %46 = vector.broadcast %cst_27 : f32 to vector<128x32xf32>
      %47 = arith.mulf %46, %42 : vector<128x32xf32>
      %48 = arith.mulf %47, %42 : vector<128x32xf32>
      %49 = arith.subf %45, %48 : vector<128x32xf32>
      %cst_28 = arith.constant dense<0.000000e+00> : vector<128xf32>
      %50 = vector.multi_reduction <add>, %49, %cst_28 [1] : vector<128x32xf32> to vector<128xf32>
      %51 = vector.shape_cast %50 : vector<128xf32> to vector<128x1xf32>
      %52 = arith.subf %51, %37 : vector<128x1xf32>
      %c0_29 = arith.constant 0 : index
      %c0_30 = arith.constant 0 : index
      %53 = vector.load %arg8[%c0_29, %c0_30] : memref<128x1xf32, #tpu.memory_space<vmem>>, vector<128x1xf32>
      %54 = tpu.transpose %53, [1, 0] : vector<128x1xf32> -> vector<1x128xf32>
      %55 = vector.shape_cast %54 : vector<1x128xf32> to vector<1x1x128xf32>
      %c0_31 = arith.constant 0 : index
      %c0_32 = arith.constant 0 : index
      %c0_33 = arith.constant 0 : index
      %56 = vector.load %arg7[%c0_31, %c0_32, %c0_33] : memref<1x2x128xf32, #tpu.memory_space<vmem>>, vector<1x1x128xf32>
      tpu.vector_store %arg7[%c0_31, %c0_32, %c0_33], %55 {strides = array<i32>} : memref<1x2x128xf32, #tpu.memory_space<vmem>>, vector<1x1x128xf32>,
      %57 = tpu.transpose %52, [1, 0] : vector<128x1xf32> -> vector<1x128xf32>
      %58 = vector.shape_cast %57 : vector<1x128xf32> to vector<1x1x128xf32>
      %c0_34 = arith.constant 0 : index
      %c1 = arith.constant 1 : index
      %c0_35 = arith.constant 0 : index
      %59 = vector.load %arg7[%c0_34, %c1, %c0_35] : memref<1x2x128xf32, #tpu.memory_space<vmem>>, vector<1x1x128xf32>
      tpu.vector_store %arg7[%c0_34, %c1, %c0_35], %58 {strides = array<i32>} : memref<1x2x128xf32, #tpu.memory_space<vmem>>, vector<1x1x128xf32>,
    } else {
    }
    return
  }
  func.func @transform_0(%arg0: i32, %arg1: i32) -> (i32, i32) {
    %c0_i32 = arith.constant 0 : i32
    return %arg0, %arg1 : i32, i32
  }
  func.func @transform_1(%arg0: i32, %arg1: i32) -> (i32, i32) {
    %c0_i32 = arith.constant 0 : i32
    %c0_i32_0 = arith.constant 0 : i32
    return %arg0, %c0_i32 : i32, i32
  }
  func.func @transform_2(%arg0: i32, %arg1: i32) -> (i32, i32) {
    %c0_i32 = arith.constant 0 : i32
    %c0_i32_0 = arith.constant 0 : i32
    return %arg0, %c0_i32 : i32, i32
  }
  func.func @transform_3(%arg0: i32, %arg1: i32) -> (i32, i32) {
    %c0_i32 = arith.constant 0 : i32
    %c0_i32_0 = arith.constant 0 : i32
    return %arg0, %c0_i32 : i32, i32
  }
  func.func @transform_4(%arg0: i32, %arg1: i32) -> (i32, i32) {
    %c0_i32 = arith.constant 0 : i32
    %c0_i32_0 = arith.constant 0 : i32
    return %c0_i32, %arg1 : i32, i32
  }
  func.func @transform_5(%arg0: i32, %arg1: i32) -> (i32, i32, i32) {
    %c0_i32 = arith.constant 0 : i32
    %c0_i32_0 = arith.constant 0 : i32
    %c0_i32_1 = arith.constant 0 : i32
    return %arg0, %c0_i32, %c0_i32_0 : i32, i32, i32
  }
}

</mosaic_0001>

<bundles_post_ra>
// kernel: tpu_custom_call.1
= control target key start
LH: loop header
LB: loop body
LE: loop exit
PB: predicated region body
PF: predicated region fallthrough
CT: control target
= control target key end

     0   :  { %10 = vsyncpa [#allocation4], 0  ;;  %s6026_s0 = inlined_call_operand.hbm [shape: bf16[128,1024], index: 0, kind: input, shape index: {}]   ;;  %s6027_s1 = inlined_call_operand.vmem [shape: f32[128,32], index: 1, kind: input, shape index: {}]   ;;  %s6028_s2 = inlined_call_operand.vmem [shape: f32[128,32], index: 2, kind: input, shape index: {}]   ;;  %s6029_s3 = inlined_call_operand.vmem [shape: f32[128,32], index: 3, kind: input, shape index: {}]   ;;  %s6030_s4 = inlined_call_operand.vmem [shape: f32[32,1024], index: 4, kind: input, shape index: {}]   ;;  %s6031_s5 = inlined_call_operand.hbm [shape: f32[1,2,128], index: 5, kind: output, shape index: {}]  }
   0x1   :  { %12 = vsyncpa [#allocation4 + $0x1], 0 }
   0x2   :  { %13 = vsyncpa [#allocation5], 0  ;;  %s3388_s18 = smov 0   ;;  %s3390_s19 = smov 0  }
   0x3   :  { %s3392_s20 = smov 0   ;;  %s3394_s21 = smov 0  }
   0x4   :  { %s3396_s22 = smov 0   ;;  %s3398_s23 = smov 0  }
   0x5 LB: > { %s2818_s24 = sadd.s32 4294967295, %s3348_s23   ;;  %s28_s25 = sadd.s32 1, %s3344_s22  ;;  %s3348_s23 = sphi %s3398_s23, %s19_s23   ;;  %s3344_s22 = sphi %s3396_s22, %s6601_s22   ;;  %s3340_s21 = sphi %s3394_s21, %s6600_s21   ;;  %s3336_s20 = sphi %s3392_s20, %s6599_s20   ;;  %s3332_s19 = sphi %s3390_s19, %s6598_s19   ;;  %s3328_s18 = sphi %s3388_s18, %s6597_s18  }
   0x6   : > { %p29_p0 = scmp.ge.s32.totalorder %s28_s25, 2  ;;  %s40_s26 = sadd.s32 1, %s3336_s20 }
   0x7   : > { %p47_p1 = scmp.ne.s32.totalorder %s3336_s20, %s3332_s19  ;;  %p48_p2 = scmp.eq.s32.totalorder %s3348_s23, 0 }
   0x8   : > { %s6603_s25 = smov (%p29_p0, %s28_s25), 0  ;;  %p53_p4 = scmp.ne.s32.totalorder %s3332_s19, %s3328_s18 }
   0x9   : > { %p3424_p3 = por %p48_p2, %p47_p1  ;;  %s36_s28 = ssub.s32 %s3344_s22, %s6603_s25 }
   0xa   : > { %p54_p5 = scmp.eq.s32.totalorder %s2818_s24, 0  ;;  %p38_p6 = scmp.eq.s32.totalorder %s36_s28, 0 }
   0xb   : > { %p2823_p8 = scmp.ge.s32.totalorder %s3348_s23, 2 }
   0xc   : > { %p3433_p7 = por %p54_p5, %p53_p4  ;;  %s3442_s6 = sand.u32 (!%p2823_p8), 1, %s3336_s20  }
   0xd   : > { %s3438_s30 = scalar_select %p38_p6, %s3336_s20, %s40_s26  }
   0xe   : > { %230 = sbr.rel (%p2823_p8) target bundleno = 52 (0x34), region = 28  ;;  %s2871_s7 = sshll.u32 (!%p2823_p8), %s3344_s22, 8 }
   0xf   : > { %s2824_s8 = sshll.u32 (!%p2823_p8), %s3442_s6, 8  ;;  %s3449_s11 = scalar_lea.hbm (!%p2823_p8), %s6026_s0, %s2871_s7 }
  0x10   : > { %s238_s12 = scalar_lea.vmem (!%p2823_p8), [#allocation3], %s2824_s8  ;;  %s235_s14 = scalar_lea.sflag (!%p2823_p8), [#allocation4], %s3442_s6 }
  0x11   : > { %s248_s13 = sshll.u32 (!%p2823_p8), %s238_s12, 4  ;;  %s3240_s15 = scalar_lea.hbm (!%p2823_p8), %s3449_s11, 4096  ;;  %s3451_s13 = int_to_ptr.vmem [resolvable:$true] %s248_s13 }
  0x12   : > { %p3241_p9 = scmp.ne.s32.totalorder (!%p2823_p8), %s3449_s11, %s3240_s15  ;;  %s3244_s18 = scalar_lea.hbm (!%p2823_p8), %s6026_s0, 8192 }
  0x13   : > { %p3245_p12 = scmp.lt.u32.totalorder (!%p2823_p8), %s3449_s11, %s6026_s0  ;;  %p3246_p13 = scmp.lt.u32.totalorder (!%p2823_p8), %s3244_s18, %s3240_s15 }
  0x14   : > { %p3242_p10 = pnand (!%p2823_p8), %p3241_p9, %p3424_p3  ;;  %p3248_p1 = scmp.lt.u32.totalorder (!%p2823_p8), %s3240_s15, %s3449_s11 }
  0x15   : > { %p3247_p0 = por %p3246_p13, %p3245_p12 }
  0x16   : > { %p3243_p11 = pneg %p3242_p10 }
  0x17   : > { %p3249_p2 = por %p3248_p1, %p3247_p0 }
  0x19   : > { %p3250_p4 = pnand %p3249_p2, %p3243_p11 }
  0x1b   : > { %3253 = shalt.err (!%p3250_p4)
}
  0x1c   : > { %s3254_s7 = scalar_lea.vmem %s3451_s13, 4096  ;;  %s3350_s8 = smov [#allocation3]  }
  0x1d   : > { %p3255_p5 = scmp.ne.s32.totalorder %s3451_s13, %s3254_s7  ;;  %s3258_s9 = sshll.u32 %s3350_s8, 4  ;;  %s3259_s9 = int_to_ptr.vmem [resolvable:$false] %s3258_s9 }
  0x1e   : > { %s3260_s10 = scalar_lea.vmem %s3259_s9, 8192  ;;  %p3261_p9 = scmp.lt.s32.totalorder %s3451_s13, %s3259_s9 }
  0x1f   : > { %p3256_p6 = pnand %p3255_p5, %p3424_p3  ;;  %p3262_p10 = scmp.lt.s32.totalorder %s3260_s10, %s3254_s7 }
  0x21   : > { %p3257_p8 = pneg %p3256_p6  ;;  %p3263_p12 = por %p3262_p10, %p3261_p9 }
  0x23   : > { %p3264_p13 = pnand %p3263_p12, %p3257_p8 }
  0x25   : > { %3267 = shalt.err (!%p3264_p13)
}
  0x26   : > { %s3351_s12 = smov 512   ;;  %s3352_s15 = smov 256  }
  0x27   : > { %s3353_s16 = smov 16   ;;  %257 = sbr.rel (!%p3424_p3) target bundleno = 52 (0x34), region = 36 }
  0x28   : > { %2889 = dma.hbm_to_vmem [thread:$0]  (%p3424_p3), %s3449_s11, 4096, %s3451_s13, %s235_s14, %s3351_s12, %s3352_s15, %s3353_s16  }
  0x29   : > { %s2827_s17 = sshll.u32 (%p3424_p3), %s3442_s6, 7  ;;  %s2872_s18 = sshll.u32 (%p3424_p3), %s3344_s22, 5 }
  0x2a   : > { %s3484_s7 = scalar_lea.vmem (%p3424_p3), %s6030_s4, %s2872_s18  ;;  %s261_s27 = scalar_lea.vmem (%p3424_p3), [#allocation6], %s2827_s17 }
  0x2b   : > { %v277_v0 = vld [vmem:[%s3484_s7] sm:$0xff] (%p3424_p3)  ;;  %v279_v1 = vld [vmem:[%s3484_s7 + $0x8] sm:$0xff] (%p3424_p3)  ;;  %v281_v2 = vld [vmem:[%s3484_s7 + $0x10] sm:$0xff] (%p3424_p3) }
  0x2c   : > { %278 = vst [vmem:[%s261_s27] sm:$0xff] (%p3424_p3), %v277_v0  ;;  %280 = vst [vmem:[%s261_s27 + $0x8] sm:$0xff] (%p3424_p3), %v279_v1  ;;  %v283_v3 = vld [vmem:[%s3484_s7 + $0x18] sm:$0xff] (%p3424_p3)  ;;  %v285_v4 = vld [vmem:[%s3484_s7 + $0x40] sm:$0xff] (%p3424_p3) }
  0x2d   : > { %282 = vst [vmem:[%s261_s27 + $0x10] sm:$0xff] (%p3424_p3), %v281_v2  ;;  %v287_v5 = vld [vmem:[%s3484_s7 + $0x48] sm:$0xff] (%p3424_p3)  ;;  %284 = vst [vmem:[%s261_s27 + $0x18] sm:$0xff] (%p3424_p3), %v283_v3  ;;  %v289_v6 = vld [vmem:[%s3484_s7 + $0x50] sm:$0xff] (%p3424_p3) }
  0x2e   : > { %286 = vst [vmem:[%s261_s27 + $0x20] sm:$0xff] %v285_v4  ;;  %288 = vst [vmem:[%s261_s27 + $0x28] sm:$0xff] %v287_v5  ;;  %v291_v7 = vld [vmem:[%s3484_s7 + $0x58] sm:$0xff]  ;;  %v293_v8 = vld [vmem:[%s3484_s7 + $0x80] sm:$0xff] }
  0x2f   : > { %290 = vst [vmem:[%s261_s27 + $0x30] sm:$0xff] %v289_v6  ;;  %292 = vst [vmem:[%s261_s27 + $0x38] sm:$0xff] %v291_v7  ;;  %v295_v9 = vld [vmem:[%s3484_s7 + $0x88] sm:$0xff]  ;;  %v297_v10 = vld [vmem:[%s3484_s7 + $0x90] sm:$0xff] }
  0x30   : > { %294 = vst [vmem:[%s261_s27 + $0x40] sm:$0xff] %v293_v8  ;;  %v299_v11 = vld [vmem:[%s3484_s7 + $0x98] sm:$0xff]  ;;  %296 = vst [vmem:[%s261_s27 + $0x48] sm:$0xff] %v295_v9  ;;  %v301_v12 = vld [vmem:[%s3484_s7 + $0xc0] sm:$0xff] }
  0x31   : > { %298 = vst [vmem:[%s261_s27 + $0x50] sm:$0xff] %v297_v10  ;;  %300 = vst [vmem:[%s261_s27 + $0x58] sm:$0xff] %v299_v11  ;;  %v303_v13 = vld [vmem:[%s3484_s7 + $0xc8] sm:$0xff]  ;;  %v305_v14 = vld [vmem:[%s3484_s7 + $0xd0] sm:$0xff] }
  0x32   : > { %302 = vst [vmem:[%s261_s27 + $0x60] sm:$0xff] %v301_v12  ;;  %304 = vst [vmem:[%s261_s27 + $0x68] sm:$0xff] %v303_v13  ;;  %v307_v15 = vld [vmem:[%s3484_s7 + $0xd8] sm:$0xff] }
  0x33   : > { %306 = vst [vmem:[%s261_s27 + $0x70] sm:$0xff] %v305_v14  ;;  %308 = vst [vmem:[%s261_s27 + $0x78] sm:$0xff] %v307_v15 }
  0x34 PF: > { %p2830_p3 = scmp.ge.s32.totalorder %s3348_s23, 1  ;;  %p313_p11 = scmp.lt.s32.totalorder %s3348_s23, 3 }
  0x36   : > { %p314_p0 = pnand %p2830_p3, %p313_p11 }
  0x38   : > { %317 = sbr.rel (%p314_p0) target bundleno = 1085 (0x43d), region = 59 }
  0x3f   : > { %s319_s6 = sand.u32 1, %s3332_s19  }
  0x40   : > { %s2831_s11 = sshll.u32 %s319_s6, 8  ;;  %s320_s13 = scalar_lea.sflag [#allocation4], %s319_s6 }
  0x41   : > { %s3505_s14 = scalar_lea.vmem [#allocation3], %s2831_s11 }
  0x42   : > { %3319 = dma.done.wait (%p3433_p7), %s320_s13, 4096  }
  0x43   : > { %3321 = vsyncadd (%p3433_p7), %s320_s13, 4294963200  ;;  %s2832_s8 = sshll.u32 %s319_s6, 7  ;;  %p2833_p1 = scmp.ne.s32.totalorder %s3340_s21, 0 }
  0x44   : > { %s3511_s9 = scalar_lea.vmem [#allocation6], %s2832_s8  ;;  %vm399_vm0 = vcmask (!%p2833_p1), 7168   ;;  %v3354_v16 = vmov (!%p2833_p1), 0.0  }
  0x45   : > { %398 = sbr.rel (%p2833_p1) target bundleno = 77 (0x4d), region = 71  ;;  %400 = vst.msk [vmem:[#allocation2] sm:$0xff] (!%p2833_p1), %vm399_vm0, %v3354_v16  ;;  %401 = vst.msk [vmem:[#allocation2 + $0x8] sm:$0xff] (!%p2833_p1), %vm399_vm0, %v3354_v16 }
  0x46   : > { %402 = vst.msk [vmem:[#allocation2 + $0x10] sm:$0xff] (!%p2833_p1), %vm399_vm0, %v3354_v16  ;;  %403 = vst.msk [vmem:[#allocation2 + $0x18] sm:$0xff] (!%p2833_p1), %vm399_vm0, %v3354_v16 }
  0x47   : > { %404 = vst.msk [vmem:[#allocation2 + $0x20] sm:$0xff] (!%p2833_p1), %vm399_vm0, %v3354_v16  ;;  %405 = vst.msk [vmem:[#allocation2 + $0x28] sm:$0xff] (!%p2833_p1), %vm399_vm0, %v3354_v16 }
  0x48   : > { %406 = vst.msk [vmem:[#allocation2 + $0x30] sm:$0xff] (!%p2833_p1), %vm399_vm0, %v3354_v16  ;;  %407 = vst.msk [vmem:[#allocation2 + $0x38] sm:$0xff] (!%p2833_p1), %vm399_vm0, %v3354_v16 }
  0x49   : > { %408 = vst.msk [vmem:[#allocation2 + $0x40] sm:$0xff] (!%p2833_p1), %vm399_vm0, %v3354_v16  ;;  %409 = vst.msk [vmem:[#allocation2 + $0x48] sm:$0xff] (!%p2833_p1), %vm399_vm0, %v3354_v16 }
  0x4a   : > { %410 = vst.msk [vmem:[#allocation2 + $0x50] sm:$0xff] (!%p2833_p1), %vm399_vm0, %v3354_v16  ;;  %411 = vst.msk [vmem:[#allocation2 + $0x58] sm:$0xff] (!%p2833_p1), %vm399_vm0, %v3354_v16 }
  0x4b   : > { %412 = vst.msk [vmem:[#allocation2 + $0x60] sm:$0xff] (!%p2833_p1), %vm399_vm0, %v3354_v16  ;;  %413 = vst.msk [vmem:[#allocation2 + $0x68] sm:$0xff] (!%p2833_p1), %vm399_vm0, %v3354_v16 }
  0x4c   : > { %414 = vst.msk [vmem:[#allocation2 + $0x70] sm:$0xff] %vm399_vm0, %v3354_v16  ;;  %415 = vst.msk [vmem:[#allocation2 + $0x78] sm:$0xff] %vm399_vm0, %v3354_v16 }
  0x4d PF: > { %v433_v17 = vld [vmem:[%s3511_s9 + $0x8] sm:$0xff]  ;;  %v435_v19 = vld [vmem:[%s3511_s9 + $0x18] sm:$0xff]  ;;  %v432_v22 = vld [vmem:[%s3511_s9] sm:$0xff]  ;;  %v3355_v24 = vmov 0.0   ;;  %vm448_vm1 = vcmask 261120   ;;  %v6032_v62 = vmov 0  }
  0x4e   : > { %v437_v18 = vld [vmem:[%s3511_s9 + $0x28] sm:$0xff]  ;;  %v439_v21 = vld [vmem:[%s3511_s9 + $0x38] sm:$0xff]  ;;  %v436_v23 = vld [vmem:[%s3511_s9 + $0x20] sm:$0xff]  ;;  %561 = vmatprep.mubr.f32.mxu0 %v3355_v24  ;;  %722 = vmatprep.mubr.f32.mxu1 %v3355_v24  ;;  %p2866_p7 = scmp.ne.s32.totalorder %s3340_s21, 1 }
  0x4f   : > { %v2873_v20 = vpack.c.bf16 %v437_v18, %v433_v17  ;;  %v2881_v25 = vpack.c.bf16 %v439_v21, %v435_v19  ;;  %v2875_v26 = vpack.c.bf16 %v436_v23, %v432_v22  ;;  %v434_v27 = vld [vmem:[%s3511_s9 + $0x10] sm:$0xff]  ;;  %v441_v29 = vld [vmem:[%s3511_s9 + $0x48] sm:$0xff]  ;;  %v443_v32 = vld [vmem:[%s3511_s9 + $0x58] sm:$0xff] }
  0x50   : > { %v438_v28 = vld [vmem:[%s3511_s9 + $0x30] sm:$0xff]  ;;  %v445_v31 = vld [vmem:[%s3511_s9 + $0x68] sm:$0xff]  ;;  %v447_v33 = vld [vmem:[%s3511_s9 + $0x78] sm:$0xff] }
  0x51   : > { %2874 = vmatprep.subr.bf16.mxu0 %v2873_v20  ;;  %v2883_v30 = vpack.c.bf16 %v438_v28, %v434_v27  ;;  %2882 = vmatprep.subr.bf16.mxu1 %v2881_v25  ;;  %v2877_v34 = vpack.c.bf16 %v445_v31, %v441_v29  ;;  %v2885_v35 = vpack.c.bf16 %v447_v33, %v443_v32  ;;  %v440_v36 = vld [vmem:[%s3511_s9 + $0x40] sm:$0xff]  ;;  %v442_v38 = vld [vmem:[%s3511_s9 + $0x50] sm:$0xff]  ;;  %v3561_v43 = vld [vmem:[%s6027_s1 + $0x8] sm:$0xff] }
  0x52   : > { %2876 = vmatpush1.bf16.msra.mxu0 %v2875_v26  ;;  %v444_v37 = vld [vmem:[%s3511_s9 + $0x60] sm:$0xff]  ;;  %v446_v40 = vld [vmem:[%s3511_s9 + $0x70] sm:$0xff]  ;;  %6134 = vst [vmem:[#allocation11_spill] sm:$0xff] %v3561_v43  ;;  %v3583_v45 = vld [vmem:[%s6027_s1 + $0x18] sm:$0xff] }
  0x53   : > { %2884 = vmatpush1.bf16.msra.mxu1 %v2883_v30  ;;  %v2879_v39 = vpack.c.bf16 %v444_v37, %v440_v36  ;;  %2878 = vmatprep.subr.bf16.mxu0 %v2877_v34  ;;  %v2887_v41 = vpack.c.bf16 %v446_v40, %v442_v38  ;;  %v3551_v42 = vld [vmem:[%s6027_s1] sm:$0xff]  ;;  %v3572_v44 = vld [vmem:[%s6027_s1 + $0x10] sm:$0xff]  ;;  %6136 = vst [vmem:[#allocation13_spill] sm:$0xff] %v3583_v45  ;;  %v3605_v47 = vld [vmem:[%s6027_s1 + $0x28] sm:$0xff] }
  0x54   : > { %2886 = vmatprep.subr.bf16.mxu1 %v2885_v35  ;;  %6133 = vst [vmem:[#allocation10_spill] sm:$0xff] %v3551_v42  ;;  %6135 = vst [vmem:[#allocation12_spill] sm:$0xff] %v3572_v44  ;;  %v3594_v46 = vld [vmem:[%s6027_s1 + $0x20] sm:$0xff]  ;;  %v3616_v48 = vld [vmem:[%s6027_s1 + $0x30] sm:$0xff] }
  0x55   : > { %6137 = vst [vmem:[#allocation14_spill] sm:$0xff] %v3594_v46  ;;  %6138 = vst [vmem:[#allocation15_spill] sm:$0xff] %v3605_v47  ;;  %v3627_v49 = vld [vmem:[%s6027_s1 + $0x38] sm:$0xff]  ;;  %v3638_v50 = vld [vmem:[%s6027_s1 + $0x40] sm:$0xff] }
  0x56   : > { %2880 = vmatpush1.bf16.msra.mxu0 %v2879_v39  ;;  %6139 = vst [vmem:[#allocation16_spill] sm:$0xff] %v3616_v48  ;;  %6140 = vst [vmem:[#allocation17_spill] sm:$0xff] %v3627_v49  ;;  %v3649_v51 = vld [vmem:[%s6027_s1 + $0x48] sm:$0xff]  ;;  %v3660_v52 = vld [vmem:[%s6027_s1 + $0x50] sm:$0xff] }
  0x57   : > { %2888 = vmatpush1.bf16.msra.mxu1 %v2887_v41  ;;  %6141 = vst [vmem:[#allocation18_spill] sm:$0xff] %v3638_v50  ;;  %6142 = vst [vmem:[#allocation19_spill] sm:$0xff] %v3649_v51  ;;  %v3671_v53 = vld [vmem:[%s6027_s1 + $0x58] sm:$0xff]  ;;  %v3682_v54 = vld [vmem:[%s6027_s1 + $0x60] sm:$0xff] }
  0x58   : > { %6143 = vst [vmem:[#allocation20_spill] sm:$0xff] %v3660_v52  ;;  %6144 = vst [vmem:[#allocation21_spill] sm:$0xff] %v3671_v53  ;;  %v3693_v55 = vld [vmem:[%s6027_s1 + $0x68] sm:$0xff]  ;;  %v3704_v56 = vld [vmem:[%s6027_s1 + $0x70] sm:$0xff] }
  0x59   : > { %2834 = vmatmul.mubr.msk.f32.vlgmr.msra.gmra.mrb[0].mxu0 %vm448_vm1, %v3551_v42  ;;  %6145 = vst [vmem:[#allocation22_spill] sm:$0xff] %v3682_v54  ;;  %6146 = vst [vmem:[#allocation23_spill] sm:$0xff] %v3693_v55  ;;  %v3715_v57 = vld [vmem:[%s6027_s1 + $0x78] sm:$0xff]  ;;  %v819_v58 = vld [vmem:[%s3505_s14] sm:$0xff] }
  0x5a   : > { %2850 = vmatmul.mubr.msk.f32.vlgmr.msra.gmra.mrb[0].mxu1 %vm448_vm1, %v3551_v42  ;;  %567 = vmatprep.mubr.f32.mxu0 %v3355_v24  ;;  %6147 = vst [vmem:[#allocation24_spill] sm:$0xff] %v3704_v56  ;;  %6148 = vst [vmem:[#allocation25_spill] sm:$0xff] %v3715_v57  ;;  %v821_v59 = vld [vmem:[%s3505_s14 + $0x10] sm:$0xff]  ;;  %vm851_vm2 = vcmp.ne.bf16.partialorder %v819_v58, 0  ;;  %v820_v60 = vld [vmem:[%s3505_s14 + $0x8] sm:$0xff] }
  0x5b   : > { %728 = vmatprep.mubr.f32.mxu1 %v3355_v24  ;;  %v822_v61 = vld [vmem:[%s3505_s14 + $0x18] sm:$0xff]  ;;  %vm853_vm3 = vcmp.ne.bf16.partialorder %v821_v59, 0  ;;  %v947_v63 = vsel %vm851_vm2, 65537, %v6032_v62  ;;  %vm852_vm4 = vcmp.ne.bf16.partialorder %v820_v60, 0  ;;  %v823_v0 = vld [vmem:[%s3505_s14 + $0x20] sm:$0xff]  ;;  %v824_v1 = vld [vmem:[%s3505_s14 + $0x28] sm:$0xff] }
  0x5c   : > { %vm854_vm5 = vcmp.ne.bf16.partialorder %v822_v61, 0  ;;  %v949_v2 = vsel %vm853_vm3, 65537, %v6032_v62  ;;  %v979_v3 = vunpack.c.l.b16 %v947_v63  ;;  %v3731_v4 = vsel %vm852_vm4, 65537, %v6032_v62  ;;  %v825_v5 = vld [vmem:[%s3505_s14 + $0x30] sm:$0xff]  ;;  %v826_v6 = vld [vmem:[%s3505_s14 + $0x38] sm:$0xff]  ;;  %v827_v10 = vld [vmem:[%s3505_s14 + $0x40] sm:$0xff] }
  0x5d   : > { %2835 = vmatmul.mubr.msk.f32.gmra.mrb[2].mxu0 %vm448_vm1, %v3561_v43  ;;  %v980_v7 = vunpack.c.h.b16 %v947_v63  ;;  %v3736_v8 = vsel %vm854_vm5, 65537, %v6032_v62  ;;  %vm855_vm6 = vcmp.ne.bf16.partialorder %v823_v0, 0  ;;  %vm856_vm7 = vcmp.ne.bf16.partialorder %v824_v1, 0  ;;  %v828_v12 = vld [vmem:[%s3505_s14 + $0x48] sm:$0xff]  ;;  %v829_v20 = vld [vmem:[%s3505_s14 + $0x50] sm:$0xff]  ;;  %v830_v21 = vld [vmem:[%s3505_s14 + $0x58] sm:$0xff] }
  0x5e   : > { %2851 = vmatmul.mubr.msk.f32.gmra.mrb[2].mxu1 %vm448_vm1, %v3561_v43  ;;  %573 = vmatprep.mubr.f32.mxu0 %v3355_v24  ;;  %v983_v9 = vunpack.c.l.b16 %v949_v2  ;;  %v981_v11 = vunpack.c.l.b16 %v3731_v4  ;;  %vm857_vm8 = vcmp.ne.bf16.partialorder %v825_v5, 0  ;;  %vm858_vm9 = vcmp.ne.bf16.partialorder %v826_v6, 0  ;;  %v831_v25 = vld [vmem:[%s3505_s14 + $0x60] sm:$0xff]  ;;  %v832_v30 = vld [vmem:[%s3505_s14 + $0x68] sm:$0xff]  ;;  %v833_v60 = vld [vmem:[%s3505_s14 + $0x70] sm:$0xff] }
  0x5f   : > { %734 = vmatprep.mubr.f32.mxu1 %v3355_v24  ;;  %vm3741_vm10 = vcmp.ne.s32.totalorder %v979_v3, 0  ;;  %v985_v14 = vunpack.c.l.b16 %v3736_v8  ;;  %v3747_v15 = vsel %vm855_vm6, 65537, %v6032_v62  ;;  %v3750_v16 = vsel %vm856_vm7, 65537, %v6032_v62  ;;  %v837_v17 = vld [vmem:[%s3505_s14 + $0x90] sm:$0xff] }
  0x60   : > { %vm3752_vm11 = vcmp.ne.s32.totalorder %v980_v7, 0  ;;  %v982_v18 = vunpack.c.h.b16 %v3731_v4  ;;  %v984_v19 = vunpack.c.h.b16 %v949_v2  ;;  %vm859_vm12 = vcmp.ne.bf16.partialorder %v827_v10, 0 }
  0x61   : > { %2836 = vmatmul.mubr.msk.f32.gmra.mrb[4].mxu0 %vm448_vm1, %v3572_v44  ;;  %vm3759_vm13 = vcmp.ne.s32.totalorder %v983_v9, 0  ;;  %v3764_v23 = vsel %vm857_vm8, 65537, %v6032_v62  ;;  %vm860_vm14 = vcmp.ne.bf16.partialorder %v828_v12, 0  ;;  %v986_v26 = vunpack.c.h.b16 %v3736_v8 }
  0x62   : > { %2852 = vmatmul.mubr.msk.f32.gmra.mrb[4].mxu1 %vm448_vm1, %v3572_v44  ;;  %579 = vmatprep.mubr.f32.mxu0 %v3355_v24  ;;  %v987_v27 = vunpack.c.l.b16 %v3747_v15  ;;  %v989_v28 = vunpack.c.l.b16 %v3750_v16  ;;  %v988_v29 = vunpack.c.h.b16 %v3747_v15  ;;  %vm3775_vm15 = vcmp.ne.s32.totalorder %v985_v14, 0 }
  0x63   : > { %740 = vmatprep.mubr.f32.mxu1 %v3355_v24  ;;  %v3781_v33 = vsel %vm859_vm12, 65537, %v6032_v62  ;;  %vm861_vm0 = vcmp.ne.bf16.partialorder %v829_v20, 0  ;;  %vm862_vm2 = vcmp.ne.bf16.partialorder %v830_v21, 0  ;;  %vm3783_vm3 = vcmp.ne.s32.totalorder %v984_v19, 0 }
  0x64   : > { %v3791_v38 = vsel %vm860_vm14, 65537, %v6032_v62  ;;  %vm863_vm4 = vcmp.ne.bf16.partialorder %v831_v25, 0  ;;  %vm864_vm5 = vcmp.ne.bf16.partialorder %v832_v30, 0  ;;  %vm3798_vm6 = vcmp.ne.s32.totalorder %v981_v11, 0 }
  0x65   : > { %2837 = vmatmul.mubr.msk.f32.gmra.mrb[6].mxu0 %vm448_vm1, %v3583_v45  ;;  %v3807_v2 = vsel %vm861_vm0, 65537, %v6032_v62  ;;  %v3811_v3 = vsel %vm862_vm2, 65537, %v6032_v62  ;;  %v3821_v7 = vsel %vm863_vm4, 65537, %v6032_v62  ;;  %vm3828_vm7 = vcmp.ne.s32.totalorder %v987_v27, 0 }
  0x66   : > { %2853 = vmatmul.mubr.msk.f32.gmra.mrb[6].mxu1 %vm448_vm1, %v3583_v45  ;;  %585 = vmatprep.mubr.f32.mxu0 %v3355_v24  ;;  %v3834_v13 = vsel %vm864_vm5, 65537, %v6032_v62  ;;  %vm865_vm8 = vcmp.ne.bf16.partialorder %v833_v60, 0  ;;  %vm3887_vm14 = vcmp.ne.s32.totalorder %v986_v26, 0  ;;  %vm3926_vm2 = vcmp.ne.s32.totalorder %v989_v28, 0 }
  0x67   : > { %746 = vmatprep.mubr.f32.mxu1 %v3355_v24  ;;  %v3854_v19 = vsel %vm865_vm8, 65537, %v6032_v62  ;;  %v6182_v59 = vunpack.c.h.b16 %v3750_v16 }
  0x69   : > { %2838 = vmatmul.mubr.msk.f32.gmra.mrb[8].mxu0 %vm448_vm1, %v3594_v46  ;;  %vm3971_vm4 = vcmp.ne.s32.totalorder %v6182_v59, 0 }
  0x6a   : > { %2854 = vmatmul.mubr.msk.f32.gmra.mrb[8].mxu1 %vm448_vm1, %v3594_v46  ;;  %591 = vmatprep.mubr.f32.mxu0 %v3355_v24 }
  0x6b   : > { %752 = vmatprep.mubr.f32.mxu1 %v3355_v24 }
  0x6d   : > { %2839 = vmatmul.mubr.msk.f32.gmra.mrb[10].mxu0 %vm448_vm1, %v3605_v47 }
  0x6e   : > { %2855 = vmatmul.mubr.msk.f32.gmra.mrb[10].mxu1 %vm448_vm1, %v3605_v47  ;;  %597 = vmatprep.mubr.f32.mxu0 %v3355_v24 }
  0x6f   : > { %758 = vmatprep.mubr.f32.mxu1 %v3355_v24 }
  0x71   : > { %2840 = vmatmul.mubr.msk.f32.gmra.mrb[12].mxu0 %vm448_vm1, %v3616_v48 }
  0x72   : > { %2856 = vmatmul.mubr.msk.f32.gmra.mrb[12].mxu1 %vm448_vm1, %v3616_v48  ;;  %603 = vmatprep.mubr.f32.mxu0 %v3355_v24 }
  0x73   : > { %764 = vmatprep.mubr.f32.mxu1 %v3355_v24 }
  0x75   : > { %2841 = vmatmul.mubr.msk.f32.gmra.mrb[14].mxu0 %vm448_vm1, %v3627_v49 }
  0x76   : > { %2857 = vmatmul.mubr.msk.f32.gmra.mrb[14].mxu1 %vm448_vm1, %v3627_v49  ;;  %609 = vmatprep.mubr.f32.mxu0 %v3355_v24 }
  0x77   : > { %770 = vmatprep.mubr.f32.mxu1 %v3355_v24 }
  0x79   : > { %2842 = vmatmul.mubr.msk.f32.gmra.mrb[16].mxu0 %vm448_vm1, %v3638_v50 }
  0x7a   : > { %2858 = vmatmul.mubr.msk.f32.gmra.mrb[16].mxu1 %vm448_vm1, %v3638_v50  ;;  %615 = vmatprep.mubr.f32.mxu0 %v3355_v24 }
  0x7b   : > { %776 = vmatprep.mubr.f32.mxu1 %v3355_v24 }
  0x7d   : > { %2843 = vmatmul.mubr.msk.f32.gmra.mrb[18].mxu0 %vm448_vm1, %v3649_v51 }
  0x7e   : > { %2859 = vmatmul.mubr.msk.f32.gmra.mrb[18].mxu1 %vm448_vm1, %v3649_v51  ;;  %621 = vmatprep.mubr.f32.mxu0 %v3355_v24 }
  0x7f   : > { %782 = vmatprep.mubr.f32.mxu1 %v3355_v24 }
  0x81   : > { %2844 = vmatmul.mubr.msk.f32.gmra.mrb[20].mxu0 %vm448_vm1, %v3660_v52 }
  0x82   : > { %2860 = vmatmul.mubr.msk.f32.gmra.mrb[20].mxu1 %vm448_vm1, %v3660_v52  ;;  %627 = vmatprep.mubr.f32.mxu0 %v3355_v24 }
  0x83   : > { %788 = vmatprep.mubr.f32.mxu1 %v3355_v24 }
  0x85   : > { %2845 = vmatmul.mubr.msk.f32.gmra.mrb[22].mxu0 %vm448_vm1, %v3671_v53 }
  0x86   : > { %2861 = vmatmul.mubr.msk.f32.gmra.mrb[22].mxu1 %vm448_vm1, %v3671_v53  ;;  %633 = vmatprep.mubr.f32.mxu0 %v3355_v24 }
  0x87   : > { %794 = vmatprep.mubr.f32.mxu1 %v3355_v24 }
  0x89   : > { %2846 = vmatmul.mubr.msk.f32.gmra.mrb[24].mxu0 %vm448_vm1, %v3682_v54 }
  0x8a   : > { %2862 = vmatmul.mubr.msk.f32.gmra.mrb[24].mxu1 %vm448_vm1, %v3682_v54  ;;  %639 = vmatprep.mubr.f32.mxu0 %v3355_v24  ;;  %v839_v54 = vld [vmem:[%s3505_s14 + $0xa0] sm:$0xff] }
  0x8b   : > { %800 = vmatprep.mubr.f32.mxu1 %v3355_v24  ;;  %vm871_vm5 = vcmp.ne.bf16.partialorder %v839_v54, 0 }
  0x8d   : > { %2847 = vmatmul.mubr.msk.f32.gmra.mrb[26].mxu0 %vm448_vm1, %v3693_v55 }
  0x8e   : > { %2863 = vmatmul.mubr.msk.f32.gmra.mrb[26].mxu1 %vm448_vm1, %v3693_v55  ;;  %645 = vmatprep.mubr.f32.mxu0 %v3355_v24 }
  0x8f   : > { %806 = vmatprep.mubr.f32.mxu1 %v3355_v24 }
  0x91   : > { %2848 = vmatmul.mubr.msk.f32.gmra.mrb[28].mxu0 %vm448_vm1, %v3704_v56 }
  0x92   : > { %2864 = vmatmul.mubr.msk.f32.gmra.mrb[28].mxu1 %vm448_vm1, %v3704_v56  ;;  %651 = vmatprep.mubr.f32.mxu0 %v3355_v24  ;;  %v6175_v56 = vmov 0  }
  0x93   : > { %812 = vmatprep.mubr.f32.mxu1 %v3355_v24  ;;  %v3767_v24 = vsel %vm858_vm9, 65537, %v6032_v62  ;;  %vm3844_vm9 = vcmp.ne.s32.totalorder %v982_v18, 0 }
  0x95   : > { %2849 = vmatmul.mubr.msk.f32.gmra.mrb[30].mxu0 %vm448_vm1, %v3715_v57 }
  0x96   : > { %2865 = vmatmul.mubr.msk.f32.gmra.mrb[30].mxu1 %vm448_vm1, %v3715_v57 }
 0x12c   : > { %v563_v34 = vpop.f32.mrb[0].mxu0 }
 0x12d   : > { %v883_v39 = vsub.f32 0.0, %v563_v34  ;;  %v3793_v40 = vpop.f32.mrb[0].mxu1  ;;  %v565_v41 = vpop.f32.mrb[1].mxu0 }
 0x12e   : > { %v884_v63 = vsub.f32 0.0, %v565_v41  ;;  %v3802_v0 = vpop.f32.mrb[1].mxu1 }
 0x12f   : > { %v3815_v4 = vsel %vm3741_vm10, %v883_v39, %v563_v34  ;;  %v834_v39 = vld [vmem:[%s3505_s14 + $0x78] sm:$0xff]  ;;  %v836_v34 = vld [vmem:[%s3505_s14 + $0x88] sm:$0xff]  ;;  %vm3861_vm10 = vcmp.ne.s32.totalorder %v988_v29, 0 }
 0x130   : > { %v1171_v9 = vand.u32 2147483647, %v3815_v4  ;;  %v3826_v10 = vsel %vm3752_vm11, %v884_v63, %v565_v41  ;;  %v569_v11 = vpop.f32.mrb[2].mxu0  ;;  %v835_v41 = vld [vmem:[%s3505_s14 + $0x80] sm:$0xff]  ;;  %vm866_vm11 = vcmp.ne.bf16.partialorder %v834_v39, 0  ;;  %v886_v39 = vsub.f32 0.0, %v3802_v0 }
 0x131   : > { %v1172_v14 = vand.u32 2147483647, %v3826_v10  ;;  %v887_v21 = vsub.f32 0.0, %v569_v11  ;;  %v730_v25 = vpop.f32.mrb[2].mxu1  ;;  %v571_v27 = vpop.f32.mrb[3].mxu0  ;;  %vm867_vm12 = vcmp.ne.bf16.partialorder %v835_v41, 0 }
 0x132   : > { %v1235_v20 = vsub.f32 0.0, %v1171_v9  ;;  %v3848_v15 = vpop.f32.mrb[3].mxu1  ;;  %v889_v18 = vsub.f32 0.0, %v730_v25  ;;  %v888_v30 = vsub.f32 0.0, %v571_v27  ;;  %v885_v9 = vsub.f32 0.0, %v3793_v40 }
 0x133   : > { %v1236_v63 = vsub.f32 0.0, %v1172_v14  ;;  %v3859_v14 = vsel %vm3759_vm13, %v887_v21, %v569_v11  ;;  %vm868_vm13 = vcmp.ne.bf16.partialorder %v836_v34, 0  ;;  %v3895_v35 = vsel %vm866_vm11, 65537, %v6032_v62 }
 0x134   : > { %v1299_v6 = vmul.f32 1.442695, %v1235_v20  ;;  %v575_v5 = vpop.f32.mrb[4].mxu0  ;;  %v1175_v20 = vand.u32 2147483647, %v3859_v14  ;;  %v3870_v22 = vsel %vm3775_vm15, %v889_v18, %v730_v25  ;;  %v3879_v60 = vsel %vm3783_vm3, %v888_v30, %v571_v27  ;;  %v838_v25 = vld [vmem:[%s3505_s14 + $0x98] sm:$0xff] }
 0x135   : > { %v3872_v11 = vpop.f32.mrb[4].mxu1  ;;  %v577_v21 = vpop.f32.mrb[5].mxu0  ;;  %v1301_v58 = vmul.f32 1.442695, %v1236_v63  ;;  %v1177_v37 = vand.u32 2147483647, %v3870_v22 }
 0x136   : > { %v3881_v32 = vpop.f32.mrb[5].mxu1  ;;  %2952 = vpow2.f32 %v1299_v6  ;;  %v1239_v18 = vsub.f32 0.0, %v1175_v20  ;;  %6169 = vst [vmem:[#allocation26_spill] sm:$0xff] %v3895_v35  ;;  %v3899_v27 = vsel %vm867_vm12, 65537, %v6032_v62  ;;  %v3904_v6 = vsel %vm3798_vm6, %v885_v9, %v3793_v40 }
 0x137   : > { %6170 = vst [vmem:[#allocation27_spill] sm:$0xff] %v3899_v27  ;;  %6171 = vst [vmem:[#allocation28_spill] sm:$0xff] %v3904_v6  ;;  %v891_v8 = vsub.f32 0.0, %v575_v5  ;;  %v3912_v20 = vsel %vm868_vm13, 65537, %v6032_v62  ;;  %vm869_vm15 = vcmp.ne.bf16.partialorder %v837_v17, 0  ;;  %v1241_v41 = vsub.f32 0.0, %v1177_v37 }
 0x138   : > { %v3891_v63 = vpop.f32.mrb[6].mxu0  ;;  %6172 = vst [vmem:[#allocation29_spill] sm:$0xff] %v3912_v20  ;;  %v1176_v31 = vand.u32 2147483647, %v3879_v60  ;;  %vm870_vm0 = vcmp.ne.bf16.partialorder %v838_v25, 0  ;;  %2954 = vpow2.f32 %v1301_v58  ;;  %v892_v61 = vsub.f32 0.0, %v577_v21 }
 0x139   : > { %v3906_v26 = vpop.f32.mrb[6].mxu1  ;;  %v3908_v30 = vpop.f32.mrb[7].mxu0  ;;  %v3920_v40 = vsel %vm3828_vm7, %v891_v8, %v575_v5  ;;  %v1173_v9 = vand.u32 2147483647, %v3904_v6  ;;  %v1307_v62 = vmul.f32 1.442695, %v1239_v18  ;;  %v3953_v5 = vsel %vm3844_vm9, %v886_v39, %v3802_v0 }
 0x13a   : > { %v3916_v36 = vpop.f32.mrb[7].mxu1  ;;  %v3942_v28 = vsel %vm869_vm15, 65537, %v6175_v56  ;;  %v3946_v55 = vsel %vm870_vm0, 65537, %v6175_v56  ;;  %v840_v58 = vld [vmem:[%s3505_s14 + $0xa8] sm:$0xff]  ;;  %6178 = vst [vmem:[#allocation32_spill] sm:$0xff] %v3953_v5  ;;  %v1240_v52 = vsub.f32 0.0, %v1176_v31  ;;  %v6179_v18 = vunpack.c.l.b16 %v3764_v23 }
 0x13b   : > { %6176 = vst [vmem:[#allocation30_spill] sm:$0xff] %v3942_v28  ;;  %6177 = vst [vmem:[#allocation31_spill] sm:$0xff] %v3946_v55  ;;  %v1311_v53 = vmul.f32 1.442695, %v1241_v41  ;;  %v1179_v34 = vand.u32 2147483647, %v3920_v40  ;;  %v3967_v50 = vsel %vm3861_vm10, %v892_v61, %v577_v21  ;;  %2956 = vpow2.f32 %v1307_v62 }
 0x13c   : > { %v3930_v57 = vpop.f32.mrb[8].mxu0  ;;  %vm3958_vm3 = vcmp.ne.s32.totalorder %v6179_v18, 0  ;;  %v890_v51 = vsub.f32 0.0, %v3848_v15  ;;  %v1237_v41 = vsub.f32 0.0, %v1173_v9  ;;  %v1180_v18 = vand.u32 2147483647, %v3967_v50 }
 0x13d   : > { %v3934_v12 = vpop.f32.mrb[8].mxu1  ;;  %v3936_v8 = vpop.f32.mrb[9].mxu0  ;;  %v1174_v49 = vand.u32 2147483647, %v3953_v5  ;;  %vm872_vm6 = vcmp.ne.bf16.partialorder %v840_v58, 0  ;;  %2958 = vpow2.f32 %v1311_v53  ;;  %v1243_v59 = vsub.f32 0.0, %v1179_v34 }
 0x13e   : > { %v3962_v25 = vpop.f32.mrb[9].mxu1  ;;  %v1309_v61 = vmul.f32 1.442695, %v1240_v52  ;;  %v3989_v62 = vsel %vm3887_vm14, %v890_v51, %v3848_v15  ;;  %v893_v39 = vsub.f32 0.0, %v3872_v11  ;;  %v1244_v1 = vsub.f32 0.0, %v1180_v18 }
 0x13f   : > { %6185 = vst [vmem:[#allocation33_spill] sm:$0xff] %v3989_v62  ;;  %v3998_v52 = vsel %vm871_vm5, 65537, %v6175_v56  ;;  %v1303_v34 = vmul.f32 1.442695, %v1237_v41  ;;  %v6187_v9 = vunpack.c.l.b16 %v3767_v24  ;;  %v4012_v18 = vsel %vm872_vm6, 65537, %v6175_v56 }
 0x140   : > { %v3981_v16 = vpop.eup %2952  ;;  %v3983_v31 = vpop.f32.mrb[10].mxu0  ;;  %6186 = vst [vmem:[#allocation34_spill] sm:$0xff] %v3998_v52  ;;  %6190 = vst [vmem:[#allocation35_spill] sm:$0xff] %v4012_v18  ;;  %v1238_v53 = vsub.f32 0.0, %v1174_v49  ;;  %v894_v41 = vsub.f32 0.0, %v3881_v32  ;;  %2960 = vpow2.f32 %v1309_v61  ;;  %v4034_v18 = vsel %vm3926_vm2, %v893_v39, %v3872_v11 }
 0x141   : > { %v3992_v48 = vpop.f32.mrb[10].mxu1  ;;  %v3994_v21 = vpop.f32.mrb[11].mxu0  ;;  %vm4003_vm7 = vcmp.ne.s32.totalorder %v6187_v9, 0  ;;  %v1427_v47 = vadd.f32 1.0, %v3981_v16  ;;  %v895_v9 = vsub.f32 0.0, %v3891_v63  ;;  %6192 = vst [vmem:[#allocation37_spill] sm:$0xff] %v4034_v18  ;;  %2962 = vpow2.f32 %v1303_v34 }
 0x142   : > { %v4007_v51 = vpop.f32.mrb[11].mxu1  ;;  %v4014_v54 = vpop.eup %2954  ;;  %v1178_v15 = vand.u32 2147483647, %v3989_v62  ;;  %v1315_v46 = vmul.f32 1.442695, %v1243_v59 }
 0x143   : > { %v1317_v55 = vmul.f32 1.442695, %v1244_v1  ;;  %v1436_v61 = vadd.f32 1.0, %v4014_v54  ;;  %2964 = vlog2.f32 %v1427_v47  ;;  %v1305_v42 = vmul.f32 1.442695, %v1238_v53 }
 0x144   : > { %v4019_v45 = vpop.f32.mrb[12].mxu0  ;;  %v4045_v37 = vsel %vm3958_vm3, %v895_v9, %v3891_v63  ;;  %v1242_v34 = vsub.f32 0.0, %v1178_v15  ;;  %2966 = vpow2.f32 %v1315_v46  ;;  %v1181_v59 = vand.u32 2147483647, %v4034_v18 }
 0x145   : > { %v4021_v44 = vpop.f32.mrb[12].mxu1  ;;  %v4024_v58 = vpop.f32.mrb[13].mxu0  ;;  %v4057_v47 = vsel %vm3971_vm4, %v894_v41, %v3881_v32  ;;  %v6197_v53 = vunpack.c.h.b16 %v3764_v23  ;;  %2968 = vpow2.f32 %v1317_v55  ;;  %v1430_v32 = vmul.f32 -0.5, %v3981_v16 }
 0x146   : > { %v4026_v43 = vpop.f32.mrb[13].mxu1  ;;  %v4051_v1 = vpop.eup %2956  ;;  %6196 = vst [vmem:[#allocation41_spill] sm:$0xff] %v4057_v47  ;;  %2970 = vlog2.f32 %v1436_v61  ;;  %v1183_v0 = vand.u32 2147483647, %v4045_v37  ;;  %v1182_v9 = vand.u32 2147483647, %v4057_v47 }
 0x147   : > { %6191 = vst [vmem:[#allocation36_spill] sm:$0xff] %v4026_v43  ;;  %vm4061_vm8 = vcmp.ne.s32.totalorder %v6197_v53, 0  ;;  %v4070_v49 = vpop.eup %2958  ;;  %2972 = vpow2.f32 %v1305_v42  ;;  %v1463_v53 = vadd.f32 1.0, %v4051_v1  ;;  %v897_v15 = vsub.f32 0.0, %v3906_v26 }
 0x148   : > { %v4039_v20 = vpop.f32.mrb[14].mxu0  ;;  %v1439_v28 = vmul.f32 -0.5, %v4014_v54  ;;  %v1313_v61 = vmul.f32 1.442695, %v1242_v34  ;;  %v1245_v56 = vsub.f32 0.0, %v1181_v59  ;;  %v1247_v23 = vsub.f32 0.0, %v1183_v0 }
 0x149   : > { %6193 = vst [vmem:[#allocation38_spill] sm:$0xff] %v4039_v20  ;;  %v4047_v11 = vpop.f32.mrb[14].mxu1  ;;  %v4049_v39 = vpop.f32.mrb[15].mxu0  ;;  %v1433_v62 = vand.u32 2147483647, %v3981_v16  ;;  %v1481_v42 = vadd.f32 1.0, %v4070_v49  ;;  %v4093_v6 = vsel %vm4003_vm7, %v897_v15, %v3906_v26  ;;  %2974 = vlog2.f32 %v1463_v53 }
 0x14a   : > { %6194 = vst [vmem:[#allocation39_spill] sm:$0xff] %v4047_v11  ;;  %6195 = vst [vmem:[#allocation40_spill] sm:$0xff] %v4049_v39  ;;  %v4065_v17 = vpop.f32.mrb[15].mxu1  ;;  %v4095_v52 = vpop.eup %2960  ;;  %v1442_v34 = vand.u32 2147483647, %v4014_v54  ;;  %v1466_v59 = vmul.f32 -0.5, %v4051_v1  ;;  %2976 = vpow2.f32 %v1313_v61  ;;  %v6216_v61 = vunpack.c.h.b16 %v3781_v33 }
 0x14b   : > { %6200 = vst [vmem:[#allocation42_spill] sm:$0xff] %v4065_v17  ;;  %v1185_v0 = vand.u32 2147483647, %v4093_v6  ;;  %v1246_v5 = vsub.f32 0.0, %v1182_v9  ;;  %v1323_v29 = vmul.f32 1.442695, %v1247_v23  ;;  %2978 = vlog2.f32 %v1481_v42 }
 0x14c   : > { %v4075_v41 = vpop.f32.mrb[16].mxu0  ;;  %v896_v26 = vsub.f32 0.0, %v3908_v30  ;;  %v1440_v17 = vadd.f32 1.0, %v1439_v28  ;;  %v1484_v27 = vmul.f32 -0.5, %v4070_v49  ;;  %v1319_v39 = vmul.f32 1.442695, %v1245_v56 }
 0x14d   : > { %6201 = vst [vmem:[#allocation43_spill] sm:$0xff] %v4075_v41  ;;  %v4080_v46 = vpop.f32.mrb[16].mxu1  ;;  %v4082_v55 = vpop.f32.mrb[17].mxu0  ;;  %vm4128_vm11 = vcmp.ne.s32.totalorder %v6216_v61, 0  ;;  %vm4137_vm12 = vcmp.lt.f32.partialorder %v1433_v62, 0.0004427343  ;;  %2980 = vpow2.f32 %v1323_v29  ;;  %v6225_v20 = vunpack.c.h.b16 %v3767_v24 }
 0x14e   : > { %6202 = vst [vmem:[#allocation44_spill] sm:$0xff] %v4080_v46  ;;  %6203 = vst [vmem:[#allocation45_spill] sm:$0xff] %v4082_v55  ;;  %v4085_v18 = vpop.f32.mrb[17].mxu1  ;;  %v1431_v55 = vadd.f32 1.0, %v1430_v32  ;;  %v4111_v41 = vpop.eup %2962  ;;  %v1467_v42 = vadd.f32 1.0, %v1466_v59  ;;  %v4154_v62 = vsel %vm4061_vm8, %v896_v26, %v3908_v30  ;;  %v4159_v43 = vmul.f32 %v4014_v54, %v1440_v17 }
 0x14f   : > { %6204 = vst [vmem:[#allocation46_spill] sm:$0xff] %v4085_v18  ;;  %v6205_v18 = vunpack.c.l.b16 %v3781_v33  ;;  %6210 = vst [vmem:[#allocation49_spill] sm:$0xff] %v4111_v41  ;;  %v2965_v53 = vpop.eup %2964  ;;  %v1249_v41 = vsub.f32 0.0, %v1185_v0  ;;  %v1487_v0 = vand.u32 2147483647, %v4070_v49  ;;  %2982 = vpow2.f32 %v1319_v39 }
 0x150   : > { %v4107_v15 = vpop.f32.mrb[18].mxu0  ;;  %vm4147_vm13 = vcmp.lt.f32.partialorder %v1442_v34, 0.0004427343  ;;  %v1321_v47 = vmul.f32 1.442695, %v1246_v5  ;;  %vm4164_vm14 = vcmp.ne.s32.totalorder %v6225_v20, 0 }
 0x151   : > { %vm4102_vm9 = vcmp.ne.s32.totalorder %v6205_v18, 0  ;;  %6208 = vst [vmem:[#allocation47_spill] sm:$0xff] %v4107_v15  ;;  %v4109_v32 = vpop.f32.mrb[18].mxu1  ;;  %v6211_v18 = vunpack.c.l.b16 %v3791_v38  ;;  %v4120_v9 = vpop.f32.mrb[19].mxu0  ;;  %v4135_v15 = vmul.f32 %v3981_v16, %v1431_v55  ;;  %v1327_v16 = vmul.f32 1.442695, %v1249_v41 }
 0x152   : > { %6209 = vst [vmem:[#allocation48_spill] sm:$0xff] %v4109_v32  ;;  %6214 = vst [vmem:[#allocation50_spill] sm:$0xff] %v4120_v9  ;;  %v4122_v23 = vpop.f32.mrb[19].mxu1  ;;  %v1472_v32 = vadd.f32 1.0, %v4095_v52  ;;  %v1469_v9 = vand.u32 2147483647, %v4051_v1 }
 0x153   : > { %vm4116_vm10 = vcmp.ne.s32.totalorder %v6211_v18, 0  ;;  %6215 = vst [vmem:[#allocation51_spill] sm:$0xff] %v4122_v23  ;;  %v4132_v18 = vpop.eup %2966  ;;  %v1184_v34 = vand.u32 2147483647, %v4154_v62  ;;  %v1475_v54 = vmul.f32 -0.5, %v4095_v52  ;;  %v6269_v23 = vunpack.c.l.b16 %v3821_v7 }
 0x154   : > { %v4143_v28 = vpop.f32.mrb[20].mxu0  ;;  %v4145_v33 = vpop.eup %2968  ;;  %2984 = vlog2.f32 %v1472_v32  ;;  %v1499_v39 = vadd.f32 1.0, %v4132_v18  ;;  %v1429_v17 = vmul.f32 0.6931472, %v2965_v53  ;;  %vm4183_vm15 = vcmp.lt.f32.partialorder %v1469_v9, 0.0004427343 }
 0x155   : > { %6221 = vst [vmem:[#allocation52_spill] sm:$0xff] %v4143_v28  ;;  %v4156_v55 = vpop.f32.mrb[20].mxu1  ;;  %v2971_v59 = vpop.eup %2970  ;;  %v1485_v28 = vadd.f32 1.0, %v1484_v27  ;;  %v1478_v27 = vand.u32 2147483647, %v4095_v52  ;;  %v1508_v24 = vadd.f32 1.0, %v4145_v33  ;;  %2986 = vpow2.f32 %v1327_v16 }
 0x156   : > { %6224 = vst [vmem:[#allocation53_spill] sm:$0xff] %v4156_v55  ;;  %v4168_v41 = vpop.f32.mrb[21].mxu0  ;;  %v4170_v30 = vpop.f32.mrb[21].mxu1  ;;  %v1248_v20 = vsub.f32 0.0, %v1184_v34  ;;  %v1438_v26 = vmul.f32 0.6931472, %v2971_v59  ;;  %2988 = vpow2.f32 %v1321_v47 }
 0x157   : > { %6228 = vst [vmem:[#allocation54_spill] sm:$0xff] %v4168_v41  ;;  %6229 = vst [vmem:[#allocation55_spill] sm:$0xff] %v4170_v30  ;;  %v4172_v63 = vpop.eup %2972  ;;  %v4181_v41 = vmul.f32 %v4051_v1, %v1467_v42  ;;  %v899_v32 = vsub.f32 0.0, %v3930_v57  ;;  %v1502_v16 = vmul.f32 -0.5, %v4132_v18  ;;  %v900_v59 = vsub.f32 0.0, %v3936_v8 }
 0x158   : > { %6230 = vst [vmem:[#allocation56_spill] sm:$0xff] %v4172_v63  ;;  %v4178_v29 = vpop.f32.mrb[22].mxu0  ;;  %v1325_v34 = vmul.f32 1.442695, %v1248_v20  ;;  %v6236_v1 = vunpack.c.l.b16 %v3807_v2  ;;  %v2975_v42 = vpop.eup %2974  ;;  %vm4206_vm2 = vcmp.lt.f32.partialorder %v1487_v0, 0.0004427343  ;;  %2990 = vlog2.f32 %v1499_v39 }
 0x159   : > { %6231 = vst [vmem:[#allocation57_spill] sm:$0xff] %v4178_v29  ;;  %v4188_v30 = vpop.f32.mrb[22].mxu1  ;;  %v4190_v53 = vpop.f32.mrb[23].mxu0  ;;  %v901_v29 = vsub.f32 0.0, %v3934_v12  ;;  %v1476_v20 = vadd.f32 1.0, %v1475_v54  ;;  %v4213_v55 = vsel %vm4102_vm9, %v899_v32, %v3930_v57  ;;  %2992 = vlog2.f32 %v1508_v24 }
 0x15a   : > { %6234 = vst [vmem:[#allocation58_spill] sm:$0xff] %v4188_v30  ;;  %6235 = vst [vmem:[#allocation59_spill] sm:$0xff] %v4190_v53  ;;  %vm4197_vm0 = vcmp.ne.s32.totalorder %v6236_v1, 0  ;;  %v4201_v47 = vpop.f32.mrb[23].mxu1  ;;  %v4204_v30 = vmul.f32 %v4070_v49, %v1485_v28  ;;  %v6242_v1 = vunpack.c.h.b16 %v3791_v38  ;;  %v1511_v49 = vmul.f32 -0.5, %v4145_v33 }
 0x15b   : > { %6239 = vst [vmem:[#allocation60_spill] sm:$0xff] %v4201_v47  ;;  %v4221_v47 = vpop.eup %2976  ;;  %v2015_v28 = vmax.f32 %v4045_v37, 0.0  ;;  %v1187_v0 = vand.u32 2147483647, %v4213_v55  ;;  %v1435_v57 = vsel %vm4137_vm12, %v4135_v15, %v1429_v17  ;;  %2994 = vpow2.f32 %v1325_v34 }
 0x15c   : > { %vm4217_vm3 = vcmp.ne.s32.totalorder %v6242_v1, 0  ;;  %v2979_v54 = vpop.eup %2978  ;;  %v898_v38 = vsub.f32 0.0, %v3916_v36  ;;  %v4233_v46 = vsel %vm4116_vm10, %v901_v29, %v3934_v12  ;;  %v1444_v39 = vsel %vm4147_vm13, %v4159_v43, %v1438_v26 }
 0x15d   : > { %v1465_v24 = vmul.f32 0.6931472, %v2975_v42  ;;  %v1503_v32 = vadd.f32 1.0, %v1502_v16  ;;  %v4241_v1 = vsel %vm4128_vm11, %v900_v59, %v3936_v8  ;;  %v6245_v15 = vunpack.c.l.b16 %v3811_v3  ;;  %v4249_v11 = vpop.eup %2980 }
 0x15e   : > { %v1477_v12 = vmul.f32 %v4095_v52, %v1476_v20  ;;  %vm4252_vm5 = vcmp.lt.f32.partialorder %v1478_v27, 0.0004427343  ;;  %v1505_v43 = vand.u32 2147483647, %v4132_v18  ;;  %v1514_v56 = vand.u32 2147483647, %v4145_v33  ;;  %v4258_v17 = vpop.eup %2982 }
 0x15f   : > { %vm4245_vm4 = vcmp.ne.s32.totalorder %v6245_v15, 0  ;;  %v1251_v8 = vsub.f32 0.0, %v1187_v0  ;;  %6250 = vst [vmem:[#allocation61_spill] sm:$0xff] %v4258_v17  ;;  %v6251_v29 = vmax.f32 %v3815_v4, 0.0  ;;  %v1483_v16 = vmul.f32 0.6931472, %v2979_v54  ;;  %v2985_v52 = vpop.eup %2984 }
 0x160   : > { %v1512_v34 = vadd.f32 1.0, %v1511_v49  ;;  %v1189_v59 = vand.u32 2147483647, %v4233_v46  ;;  %v6252_v27 = vmax.f32 %v3826_v10, 0.0  ;;  %v4272_v20 = vsel %vm4164_vm14, %v898_v38, %v3916_v36 }
 0x161   : > { %v4262_v26 = vadd.f32 %v6251_v29, %v1435_v57  ;;  %6253 = vst [vmem:[#allocation62_spill] sm:$0xff] %v4272_v20  ;;  %v1188_v0 = vand.u32 2147483647, %v4241_v1  ;;  %v903_v4 = vsub.f32 0.0, %v3983_v31  ;;  %v4276_v57 = vpop.eup %2986  ;;  %v1471_v49 = vsel %vm4183_vm15, %v4181_v41, %v1465_v24 }
 0x162   : > { %v4267_v42 = vadd.f32 %v6252_v27, %v1444_v39  ;;  %v4282_v54 = vmul.f32 %v4132_v18, %v1503_v32  ;;  %v1535_v10 = vadd.f32 1.0, %v4249_v11  ;;  %v902_v39 = vsub.f32 0.0, %v3962_v25  ;;  %v4292_v38 = vpop.eup %2988  ;;  %v4383_v32 = vpop.f32.mrb[24].mxu0 }
 0x163   : > { %v6254_v36 = vunpack.c.h.b16 %v3807_v2  ;;  %6257 = vst [vmem:[#allocation63_spill] sm:$0xff] %v4292_v38  ;;  %v1331_v29 = vmul.f32 1.442695, %v1251_v8  ;;  %v1253_v63 = vsub.f32 0.0, %v1189_v59  ;;  %v1252_v41 = vsub.f32 0.0, %v1188_v0 }
 0x164   : > { %v1489_v18 = vsel %vm4206_vm2, %v4204_v30, %v1483_v16  ;;  %v1474_v24 = vmul.f32 0.6931472, %v2985_v52  ;;  %vm4298_vm7 = vcmp.lt.f32.partialorder %v1505_v43, 0.0004427343  ;;  %v4303_v2 = vmul.f32 %v4145_v33, %v1512_v34 }
 0x165   : > { %vm4288_vm6 = vcmp.ne.s32.totalorder %v6254_v36, 0  ;;  %v1186_v27 = vand.u32 2147483647, %v4272_v20  ;;  %v2991_v36 = vpop.eup %2990  ;;  %v6260_v15 = vmax.f32 %v3859_v14, 0.0  ;;  %vm4310_vm8 = vcmp.lt.f32.partialorder %v1514_v56, 0.0004427343 }
 0x166   : > { %v1553_v30 = vadd.f32 1.0, %v4276_v57  ;;  %v4318_v53 = vsel %vm4197_vm0, %v903_v4, %v3983_v31  ;;  %v905_v33 = vsub.f32 0.0, %v3992_v48  ;;  %v2993_v43 = vpop.eup %2992  ;;  %2996 = vlog2.f32 %v1535_v10 }
 0x167   : > { %v4308_v8 = vadd.f32 %v6260_v15, %v1471_v49  ;;  %v1335_v16 = vmul.f32 1.442695, %v1253_v63  ;;  %v4324_v14 = vsel %vm4217_vm3, %v902_v39, %v3962_v25  ;;  %v1191_v56 = vand.u32 2147483647, %v4318_v53  ;;  %v4327_v34 = vpop.eup %2994 }
 0x168   : > { %6263 = vst [vmem:[#allocation64_spill] sm:$0xff] %v4324_v14  ;;  %v6264_v52 = vmax.f32 %v3870_v22, 0.0  ;;  %2998 = vpow2.f32 %v1331_v29  ;;  %v1333_v9 = vmul.f32 1.442695, %v1252_v41  ;;  %v1480_v4 = vsel %vm4252_vm5, %v1477_v12, %v1474_v24 }
 0x169   : > { %v1501_v49 = vmul.f32 0.6931472, %v2991_v36  ;;  %v1250_v10 = vsub.f32 0.0, %v1186_v27  ;;  %v1255_v35 = vsub.f32 0.0, %v1191_v56  ;;  %v1510_v25 = vmul.f32 0.6931472, %v2993_v43 }
 0x16a   : > { %v4331_v0 = vadd.f32 %v6264_v52, %v1489_v18  ;;  %3000 = vlog2.f32 %v1553_v30  ;;  %v1190_v39 = vand.u32 2147483647, %v4324_v14  ;;  %v4340_v22 = vsel %vm4245_vm4, %v905_v33, %v3992_v48 }
 0x16b   : > { %v1544_v15 = vadd.f32 1.0, %v4327_v34  ;;  %3002 = vpow2.f32 %v1335_v16  ;;  %v1339_v29 = vmul.f32 1.442695, %v1255_v35  ;;  %v1193_v63 = vand.u32 2147483647, %v4340_v22 }
 0x16c   : > { %v6265_v12 = vmax.f32 %v3879_v60, 0.0  ;;  %v1538_v41 = vmul.f32 -0.5, %v4249_v11  ;;  %3004 = vpow2.f32 %v1333_v9  ;;  %v904_v18 = vsub.f32 0.0, %v3994_v21 }
 0x16d   : > { %v6266_v24 = vunpack.c.h.b16 %v3811_v3  ;;  %vm4358_vm10 = vcmp.ne.s32.totalorder %v6269_v23, 0  ;;  %v1556_v60 = vmul.f32 -0.5, %v4276_v57  ;;  %v1329_v36 = vmul.f32 1.442695, %v1250_v10 }
 0x16e   : > { %v4346_v61 = vadd.f32 %v6265_v12, %v1480_v4  ;;  %v1257_v33 = vsub.f32 0.0, %v1193_v63  ;;  %v1507_v3 = vsel %vm4298_vm7, %v4282_v54, %v1501_v49  ;;  %v1541_v43 = vand.u32 2147483647, %v4249_v11  ;;  %v4398_v63 = vpop.f32.mrb[24].mxu1 }
 0x16f   : > { %vm4352_vm9 = vcmp.ne.s32.totalorder %v6266_v24, 0  ;;  %3006 = vpow2.f32 %v1339_v29  ;;  %v4371_v16 = vsel %vm4288_vm6, %v904_v18, %v3994_v21  ;;  %v1516_v56 = vsel %vm4310_vm8, %v4303_v2, %v1510_v25 }
 0x170   : > { %3008 = vlog2.f32 %v1544_v15  ;;  %v1254_v9 = vsub.f32 0.0, %v1190_v39  ;;  %v6272_v4 = vunpack.c.l.b16 %v3834_v13  ;;  %v1539_v49 = vadd.f32 1.0, %v1538_v41  ;;  %v2997_v59 = vpop.eup %2996 }
 0x171   : > { %v1547_v21 = vmul.f32 -0.5, %v4327_v34  ;;  %v1343_v5 = vmul.f32 1.442695, %v1257_v33  ;;  %v1192_v10 = vand.u32 2147483647, %v4371_v16  ;;  %v6275_v2 = vmax.f32 %v3920_v40, 0.0 }
 0x172   : > { %vm4379_vm11 = vcmp.ne.s32.totalorder %v6272_v4, 0  ;;  %v1557_v25 = vadd.f32 1.0, %v1556_v60  ;;  %v1559_v39 = vand.u32 2147483647, %v4276_v57  ;;  %3010 = vpow2.f32 %v1329_v36  ;;  %v4400_v12 = vpop.eup %2998  ;;  %v4413_v60 = vpop.f32.mrb[25].mxu1 }
 0x173   : > { %v4389_v35 = vadd.f32 %v6275_v2, %v1507_v3  ;;  %v6277_v15 = vunpack.c.h.b16 %v3821_v7  ;;  %v6280_v41 = vmax.f32 %v3967_v50, 0.0  ;;  %vm4406_vm13 = vcmp.lt.f32.partialorder %v1541_v43, 0.0004427343  ;;  %v4411_v7 = vpop.f32.mrb[25].mxu0 }
 0x174   : > { %v1256_v23 = vsub.f32 0.0, %v1192_v10  ;;  %v1550_v36 = vand.u32 2147483647, %v4327_v34  ;;  %v1337_v33 = vmul.f32 1.442695, %v1254_v9  ;;  %v906_v3 = vsub.f32 0.0, %v4007_v51 }
 0x175   : > { %6276 = vst [vmem:[#allocation65_spill] sm:$0xff] %v4389_v35  ;;  %vm4394_vm12 = vcmp.ne.s32.totalorder %v6277_v15, 0  ;;  %v4404_v18 = vadd.f32 %v6280_v41, %v1516_v56  ;;  %v907_v50 = vsub.f32 0.0, %v4019_v45  ;;  %v3001_v56 = vpop.eup %3000  ;;  %v1537_v4 = vmul.f32 0.6931472, %v2997_v59 }
 0x176   : > { %v1540_v43 = vmul.f32 %v4249_v11, %v1539_v49  ;;  %v1548_v2 = vadd.f32 1.0, %v1547_v21  ;;  %3012 = vpow2.f32 %v1343_v5  ;;  %v4419_v15 = vpop.eup %3002  ;;  %v4422_v10 = vmul.f32 %v4276_v57, %v1557_v25 }
 0x177   : > { %6281 = vst [vmem:[#allocation66_spill] sm:$0xff] %v4404_v18  ;;  %vm4424_vm14 = vcmp.lt.f32.partialorder %v1559_v39, 0.0004427343  ;;  %v1571_v9 = vadd.f32 1.0, %v4400_v12  ;;  %v4430_v24 = vpop.eup %3004  ;;  %v1341_v49 = vmul.f32 1.442695, %v1256_v23  ;;  %3014 = vpow2.f32 %v1337_v33 }
 0x178   : > { %v909_v21 = vsub.f32 0.0, %v4021_v44  ;;  %vm4435_vm15 = vcmp.lt.f32.partialorder %v1550_v36, 0.0004427343  ;;  %v4443_v25 = vsel %vm4352_vm9, %v906_v3, %v4007_v51  ;;  %v4448_v39 = vsel %vm4358_vm10, %v907_v50, %v4019_v45 }
 0x179   : > { %6288 = vst [vmem:[#allocation67_spill] sm:$0xff] %v4443_v25  ;;  %v4450_v23 = vpop.eup %3006  ;;  %v1543_v36 = vsel %vm4406_vm13, %v1540_v43, %v1537_v4  ;;  %v1549_v59 = vmul.f32 %v4327_v34, %v1548_v2  ;;  %v1589_v33 = vadd.f32 1.0, %v4419_v15  ;;  %v908_v5 = vsub.f32 0.0, %v4024_v58 }
 0x17a   : > { %v3009_v11 = vpop.eup %3008  ;;  %v1555_v48 = vmul.f32 0.6931472, %v3001_v56  ;;  %3016 = vlog2.f32 %v1571_v9  ;;  %v1574_v51 = vmul.f32 -0.5, %v4400_v12  ;;  %v1580_v27 = vadd.f32 1.0, %v4430_v24 }
 0x17b   : > { %3018 = vpow2.f32 %v1341_v49  ;;  %v1194_v45 = vand.u32 2147483647, %v4443_v25  ;;  %v1195_v3 = vand.u32 2147483647, %v4448_v39  ;;  %v4464_v34 = vsel %vm4379_vm11, %v909_v21, %v4021_v44 }
 0x17c   : > { %v6289_v40 = vunpack.c.l.b16 %v3854_v19  ;;  %v4472_v56 = vpop.eup %3010  ;;  %v1592_v4 = vmul.f32 -0.5, %v4419_v15  ;;  %v1583_v43 = vmul.f32 -0.5, %v4430_v24  ;;  %v1607_v2 = vadd.f32 1.0, %v4450_v23 }
 0x17d   : > { %6292 = vst [vmem:[#allocation68_spill] sm:$0xff] %v4472_v56  ;;  %v1197_v9 = vand.u32 2147483647, %v4464_v34  ;;  %v1546_v49 = vmul.f32 0.6931472, %v3009_v11  ;;  %3020 = vlog2.f32 %v1589_v33  ;;  %v1259_v44 = vsub.f32 0.0, %v1195_v3 }
 0x17e   : > { %vm4468_vm0 = vcmp.ne.s32.totalorder %v6289_v40, 0  ;;  %v4481_v54 = vsel %vm4394_vm12, %v908_v5, %v4024_v58  ;;  %v4485_v21 = vadd.f32 %v2015_v28, %v1543_v36  ;;  %v1577_v40 = vand.u32 2147483647, %v4400_v12  ;;  %v6294_v58 = vld [vmem:[#allocation26_spill] sm:$0xff] }
 0x17f   : > { %3022 = vlog2.f32 %v1580_v27  ;;  %v1261_v30 = vsub.f32 0.0, %v1197_v9  ;;  %v1561_v11 = vsel %vm4424_vm14, %v4422_v10, %v1555_v48  ;;  %v1575_v33 = vadd.f32 1.0, %v1574_v51 }
 0x180   : > { %6293 = vst [vmem:[#allocation69_spill] sm:$0xff] %v4485_v21  ;;  %v4488_v52 = vpop.eup %3012  ;;  %v1347_v3 = vmul.f32 1.442695, %v1259_v44  ;;  %v1196_v29 = vand.u32 2147483647, %v4481_v54  ;;  %v6295_v5 = vunpack.c.l.b16 %v6294_v58  ;;  %v6298_v28 = vunpack.c.h.b16 %v3854_v19 }
 0x181   : > { %v1593_v27 = vadd.f32 1.0, %v1592_v4  ;;  %v1595_v41 = vand.u32 2147483647, %v4419_v15  ;;  %v1584_v10 = vadd.f32 1.0, %v1583_v43  ;;  %3024 = vlog2.f32 %v1607_v2  ;;  %v4515_v19 = vpop.eup %3014 }
 0x182   : > { %vm4496_vm2 = vcmp.ne.s32.totalorder %v6295_v5, 0  ;;  %vm4502_vm3 = vcmp.ne.s32.totalorder %v6298_v28, 0  ;;  %v1552_v48 = vsel %vm4435_vm15, %v1549_v59, %v1546_v49  ;;  %v1258_v51 = vsub.f32 0.0, %v1194_v45  ;;  %6304 = vst [vmem:[#allocation26_spill] sm:$0xff] %v4515_v19  ;;  %v6307_v59 = vld [vmem:[#allocation38_spill] sm:$0xff]  ;;  %v6318_v49 = vld [vmem:[#allocation40_spill] sm:$0xff] }
 0x183   : > { %v1351_v9 = vmul.f32 1.442695, %v1261_v30  ;;  %v1260_v44 = vsub.f32 0.0, %v1196_v29  ;;  %v6301_v5 = vunpack.c.h.b16 %v3834_v13  ;;  %vm4517_vm5 = vcmp.lt.f32.partialorder %v1577_v40, 0.0004427343 }
 0x184   : > { %v1586_v43 = vand.u32 2147483647, %v4430_v24  ;;  %v1625_v57 = vadd.f32 1.0, %v4488_v52  ;;  %v911_v45 = vsub.f32 0.0, %v6307_v59  ;;  %v6308_v30 = vmax.f32 %v4093_v6, 0.0  ;;  %v3017_v29 = vpop.eup %3016 }
 0x185   : > { %vm4511_vm4 = vcmp.ne.s32.totalorder %v6301_v5, 0  ;;  %v1576_v13 = vmul.f32 %v4400_v12, %v1575_v33  ;;  %3026 = vpow2.f32 %v1347_v3  ;;  %v6310_v40 = vmax.f32 %v4154_v62, 0.0  ;;  %v4537_v20 = vpop.eup %3018  ;;  %v6340_v3 = vld [vmem:[#allocation42_spill] sm:$0xff] }
 0x186   : > { %v4526_v2 = vadd.f32 %v6308_v30, %v1561_v11  ;;  %v4535_v5 = vmul.f32 %v4419_v15, %v1593_v27  ;;  %3028 = vpow2.f32 %v1351_v9  ;;  %v1349_v14 = vmul.f32 1.442695, %v1260_v44  ;;  %v4561_v9 = vpop.f32.mrb[26].mxu0 }
 0x187   : > { %v4532_v28 = vadd.f32 %v6310_v40, %v1552_v48  ;;  %vm4539_vm6 = vcmp.lt.f32.partialorder %v1595_v41, 0.0004427343  ;;  %v4544_v12 = vmul.f32 %v4430_v24, %v1584_v10  ;;  %v1610_v11 = vmul.f32 -0.5, %v4450_v23  ;;  %v3021_v24 = vpop.eup %3020  ;;  %v6317_v40 = vld [vmem:[#allocation39_spill] sm:$0xff] }
 0x188   : > { %6309 = vst [vmem:[#allocation38_spill] sm:$0xff] %v4526_v2  ;;  %v1613_v62 = vand.u32 2147483647, %v4450_v23  ;;  %v1345_v33 = vmul.f32 1.442695, %v1258_v51  ;;  %3030 = vlog2.f32 %v1625_v57  ;;  %v1628_v15 = vmul.f32 -0.5, %v4488_v52 }
 0x189   : > { %6311 = vst [vmem:[#allocation70_spill] sm:$0xff] %v4532_v28  ;;  %vm4548_vm7 = vcmp.lt.f32.partialorder %v1586_v43, 0.0004427343  ;;  %v4557_v41 = vsel %vm4468_vm0, %v911_v45, %v6307_v59  ;;  %v1573_v10 = vmul.f32 0.6931472, %v3017_v29  ;;  %3032 = vpow2.f32 %v1349_v14  ;;  %v3023_v44 = vpop.eup %3022  ;;  %v6316_v57 = vld [vmem:[#allocation36_spill] sm:$0xff] }
 0x18a   : > { %v1199_v51 = vand.u32 2147483647, %v4557_v41  ;;  %v1616_v43 = vadd.f32 1.0, %v4537_v20  ;;  %v910_v30 = vsub.f32 0.0, %v6316_v57  ;;  %v913_v27 = vsub.f32 0.0, %v6317_v40  ;;  %v4567_v59 = vpop.f32.mrb[26].mxu1 }
 0x18b   : > { %v912_v50 = vsub.f32 0.0, %v6318_v49  ;;  %v4569_v45 = vpop.f32.mrb[27].mxu0  ;;  %v1611_v29 = vadd.f32 1.0, %v1610_v11  ;;  %vm4571_vm8 = vcmp.lt.f32.partialorder %v1613_v62, 0.0004427343  ;;  %3034 = vpow2.f32 %v1345_v33  ;;  %v4575_v25 = vpop.f32.mrb[27].mxu1 }
 0x18c   : > { %v1263_v48 = vsub.f32 0.0, %v1199_v51  ;;  %v3025_v19 = vpop.eup %3024  ;;  %v1591_v2 = vmul.f32 0.6931472, %v3021_v24  ;;  %v1629_v28 = vadd.f32 1.0, %v1628_v15  ;;  %v4580_v21 = vsel %vm4496_vm2, %v913_v27, %v6317_v40  ;;  %v6324_v51 = vld [vmem:[#allocation27_spill] sm:$0xff]  ;;  %v6328_v24 = vld [vmem:[#allocation29_spill] sm:$0xff] }
 0x18d   : > { %v4585_v11 = vsel %vm4502_vm3, %v912_v50, %v6318_v49  ;;  %v6321_v62 = vunpack.c.h.b16 %v6294_v58  ;;  %v6325_v56 = vunpack.c.l.b16 %v6324_v51  ;;  %v1579_v37 = vsel %vm4517_vm5, %v1576_v13, %v1573_v10  ;;  %v6358_v58 = vld [vmem:[#allocation31_spill] sm:$0xff] }
 0x18e   : > { %v1582_v27 = vmul.f32 0.6931472, %v3023_v44  ;;  %v1619_v36 = vmul.f32 -0.5, %v4537_v20  ;;  %v1355_v49 = vmul.f32 1.442695, %v1263_v48  ;;  %v6329_v40 = vunpack.c.l.b16 %v6328_v24 }
 0x18f   : > { %vm4589_vm9 = vcmp.ne.s32.totalorder %v6321_v62, 0  ;;  %vm4595_vm10 = vcmp.ne.s32.totalorder %v6325_v56, 0  ;;  %3036 = vlog2.f32 %v1616_v43  ;;  %v4612_v56 = vsel %vm4511_vm4, %v910_v30, %v6316_v57  ;;  %v4615_v13 = vpop.eup %3026 }
 0x190   : > { %vm4604_vm11 = vcmp.ne.s32.totalorder %v6329_v40, 0  ;;  %6332 = vst [vmem:[#allocation36_spill] sm:$0xff] %v4612_v56  ;;  %v1201_v4 = vand.u32 2147483647, %v4580_v21  ;;  %v1609_v10 = vmul.f32 0.6931472, %v3025_v19  ;;  %v1612_v48 = vmul.f32 %v4450_v23, %v1611_v29  ;;  %v4620_v40 = vpop.eup %3028 }
 0x191   : > { %v1631_v44 = vand.u32 2147483647, %v4488_v52  ;;  %v1200_v62 = vand.u32 2147483647, %v4585_v11  ;;  %v6333_v43 = vmax.f32 %v4213_v55, 0.0  ;;  %v1597_v31 = vsel %vm4539_vm6, %v4535_v5, %v1591_v2 }
 0x192   : > { %v4630_v57 = vmul.f32 %v4488_v52, %v1629_v28  ;;  %v6335_v23 = vunpack.c.h.b16 %v6324_v51  ;;  %v1588_v55 = vsel %vm4548_vm7, %v4544_v12, %v1582_v27  ;;  %v1620_v29 = vadd.f32 1.0, %v1619_v36  ;;  %v3031_v2 = vpop.eup %3030  ;;  %v6341_v36 = vld [vmem:[#allocation43_spill] sm:$0xff] }
 0x193   : > { %v4624_v50 = vadd.f32 %v6333_v43, %v1579_v37  ;;  %v1198_v37 = vand.u32 2147483647, %v4612_v56  ;;  %3038 = vpow2.f32 %v1355_v49  ;;  %v1622_v52 = vand.u32 2147483647, %v4537_v20  ;;  %v4645_v51 = vpop.eup %3032 }
 0x194   : > { %vm4635_vm12 = vcmp.ne.s32.totalorder %v6335_v23, 0  ;;  %v1643_v28 = vadd.f32 1.0, %v4615_v13  ;;  %v1265_v5 = vsub.f32 0.0, %v1201_v4  ;;  %v1264_v6 = vsub.f32 0.0, %v1200_v62 }
 0x195   : > { %6334 = vst [vmem:[#allocation39_spill] sm:$0xff] %v4624_v50  ;;  %v1615_v43 = vsel %vm4571_vm8, %v1612_v48, %v1609_v10  ;;  %vm4649_vm13 = vcmp.lt.f32.partialorder %v1631_v44, 0.0004427343  ;;  %v1661_v12 = vadd.f32 1.0, %v4620_v40  ;;  %v914_v27 = vsub.f32 0.0, %v6340_v3  ;;  %v6346_v10 = vld [vmem:[#allocation44_spill] sm:$0xff]  ;;  %v4665_v44 = vpop.eup %3034 }
 0x196   : > { %v915_v49 = vsub.f32 0.0, %v6341_v36  ;;  %v6342_v19 = vmax.f32 %v4233_v46, 0.0  ;;  %v6344_v4 = vmax.f32 %v4241_v1, 0.0  ;;  %v1359_v14 = vmul.f32 1.442695, %v1265_v5  ;;  %6347 = vst [vmem:[#allocation29_spill] sm:$0xff] %v4665_v44 }
 0x197   : > { %v917_v48 = vsub.f32 0.0, %v6346_v10  ;;  %v4668_v18 = vmul.f32 %v4537_v20, %v1620_v29  ;;  %v1262_v35 = vsub.f32 0.0, %v1198_v37  ;;  %v1357_v17 = vmul.f32 1.442695, %v1264_v6  ;;  %v6353_v6 = vld [vmem:[#allocation45_spill] sm:$0xff] }
 0x198   : > { %v4658_v50 = vadd.f32 %v6342_v19, %v1597_v31  ;;  %v4662_v62 = vadd.f32 %v6344_v4, %v1588_v55  ;;  %v6348_v46 = vmax.f32 %v4318_v53, 0.0  ;;  %vm4675_vm14 = vcmp.lt.f32.partialorder %v1622_v52, 0.0004427343 }
 0x199   : > { %3040 = vlog2.f32 %v1643_v28  ;;  %v1652_v19 = vadd.f32 1.0, %v4645_v51  ;;  %v1627_v5 = vmul.f32 0.6931472, %v3031_v2  ;;  %v4684_v20 = vsel %vm4589_vm9, %v914_v27, %v6340_v3  ;;  %v3037_v29 = vpop.eup %3036  ;;  %v6354_v27 = vld [vmem:[#allocation30_spill] sm:$0xff] }
 0x19a   : > { %6343 = vst [vmem:[#allocation40_spill] sm:$0xff] %v4658_v50  ;;  %6345 = vst [vmem:[#allocation27_spill] sm:$0xff] %v4662_v62  ;;  %v4673_v31 = vadd.f32 %v6348_v46, %v1615_v43  ;;  %3042 = vlog2.f32 %v1661_v12  ;;  %v4689_v53 = vsel %vm4595_vm10, %v915_v49, %v6341_v36  ;;  %v1646_v37 = vmul.f32 -0.5, %v4615_v13 }
 0x19b   : > { %6352 = vst [vmem:[#allocation43_spill] sm:$0xff] %v4684_v20  ;;  %3044 = vpow2.f32 %v1359_v14  ;;  %v1203_v52 = vand.u32 2147483647, %v4689_v53  ;;  %v4696_v2 = vsel %vm4604_vm11, %v917_v48, %v6346_v10  ;;  %v1353_v28 = vmul.f32 1.442695, %v1262_v35 }
 0x19c   : > { %6349 = vst [vmem:[#allocation42_spill] sm:$0xff] %v4673_v31  ;;  %3046 = vpow2.f32 %v1357_v17  ;;  %v1205_v33 = vand.u32 2147483647, %v4696_v2  ;;  %v916_v43 = vsub.f32 0.0, %v6353_v6  ;;  %v1664_v15 = vmul.f32 -0.5, %v4620_v40 }
 0x19d   : > { %3048 = vlog2.f32 %v1652_v19  ;;  %v1202_v12 = vand.u32 2147483647, %v4684_v20  ;;  %v1267_v3 = vsub.f32 0.0, %v1203_v52  ;;  %v6355_v36 = vunpack.c.l.b16 %v6354_v27  ;;  %v4714_v35 = vpop.eup %3038 }
 0x19e   : > { %v6359_v4 = vunpack.c.l.b16 %v6358_v58  ;;  %v1618_v14 = vmul.f32 0.6931472, %v3037_v29  ;;  %v1649_v10 = vand.u32 2147483647, %v4615_v13  ;;  %v1269_v48 = vsub.f32 0.0, %v1205_v33 }
 0x19f   : > { %vm4704_vm15 = vcmp.ne.s32.totalorder %v6355_v36, 0  ;;  %v4720_v46 = vsel %vm4635_vm12, %v916_v43, %v6353_v6  ;;  %v1633_v19 = vsel %vm4649_vm13, %v4630_v57, %v1627_v5  ;;  %v1647_v52 = vadd.f32 1.0, %v1646_v37  ;;  %v4736_v37 = vpop.f32.mrb[28].mxu0 }
 0x1a0   : > { %vm4710_vm0 = vcmp.ne.s32.totalorder %v6359_v4, 0  ;;  %v1655_v36 = vmul.f32 -0.5, %v4645_v51  ;;  %v1363_v4 = vmul.f32 1.442695, %v1267_v3  ;;  %v6362_v38 = vunpack.c.h.b16 %v6328_v24  ;;  %v4738_v3 = vpop.f32.mrb[28].mxu1 }
 0x1a1   : > { %v1667_v33 = vand.u32 2147483647, %v4620_v40  ;;  %v1679_v30 = vadd.f32 1.0, %v4714_v35  ;;  %v1204_v43 = vand.u32 2147483647, %v4720_v46  ;;  %v1665_v23 = vadd.f32 1.0, %v1664_v15 }
 0x1a2   : > { %vm4728_vm2 = vcmp.ne.s32.totalorder %v6362_v38, 0  ;;  %3050 = vpow2.f32 %v1353_v28  ;;  %v1266_v57 = vsub.f32 0.0, %v1202_v12  ;;  %v1367_v5 = vmul.f32 1.442695, %v1269_v48  ;;  %v4752_v15 = vpop.f32.mrb[29].mxu0  ;;  %v4754_v12 = vpop.f32.mrb[29].mxu1 }
 0x1a3   : > { %v6365_v38 = vmax.f32 %v4340_v22, 0.0  ;;  %v1624_v55 = vsel %vm4675_vm14, %v4668_v18, %v1618_v14  ;;  %vm4747_vm3 = vcmp.lt.f32.partialorder %v1649_v10, 0.0004427343  ;;  %v1658_v28 = vand.u32 2147483647, %v4645_v51  ;;  %6369 = vst [vmem:[#allocation45_spill] sm:$0xff] %v4754_v12  ;;  %v3041_v48 = vpop.eup %3040 }
 0x1a4   : > { %v1648_v56 = vmul.f32 %v4615_v13, %v1647_v52  ;;  %v1656_v22 = vadd.f32 1.0, %v1655_v36  ;;  %3052 = vpow2.f32 %v1363_v4  ;;  %vm4757_vm4 = vcmp.lt.f32.partialorder %v1667_v33, 0.0004427343  ;;  %v6372_v18 = vld [vmem:[#allocation47_spill] sm:$0xff]  ;;  %v6373_v10 = vld [vmem:[#allocation48_spill] sm:$0xff]  ;;  %v6405_v4 = vld [vmem:[#allocation53_spill] sm:$0xff] }
 0x1a5   : > { %v4742_v24 = vadd.f32 %v6365_v38, %v1633_v19  ;;  %v1268_v19 = vsub.f32 0.0, %v1204_v43  ;;  %v3043_v38 = vpop.eup %3042  ;;  %3054 = vlog2.f32 %v1679_v30  ;;  %v919_v14 = vsub.f32 0.0, %v6372_v18  ;;  %v6378_v43 = vld [vmem:[#allocation46_spill] sm:$0xff] }
 0x1a6   : > { %v4763_v31 = vpop.eup %3044  ;;  %v6374_v44 = vmax.f32 %v4371_v16, 0.0  ;;  %v1666_v13 = vmul.f32 %v4620_v40, %v1665_v23  ;;  %v1361_v52 = vmul.f32 1.442695, %v1266_v57  ;;  %3056 = vpow2.f32 %v1367_v5 }
 0x1a7   : > { %6366 = vst [vmem:[#allocation44_spill] sm:$0xff] %v4742_v24  ;;  %v921_v24 = vsub.f32 0.0, %v6373_v10  ;;  %v4770_v36 = vpop.eup %3046  ;;  %vm4772_vm5 = vcmp.lt.f32.partialorder %v1658_v28, 0.0004427343  ;;  %v918_v62 = vsub.f32 0.0, %v6378_v43  ;;  %v1682_v40 = vmul.f32 -0.5, %v4714_v35 }
 0x1a8   : > { %v4767_v50 = vadd.f32 %v6374_v44, %v1624_v55  ;;  %v3049_v12 = vpop.eup %3048  ;;  %v1645_v16 = vmul.f32 0.6931472, %v3041_v48  ;;  %v1657_v44 = vmul.f32 %v4645_v51, %v1656_v22  ;;  %v1365_v55 = vmul.f32 1.442695, %v1268_v19 }
 0x1a9   : > { %v6379_v23 = vunpack.c.h.b16 %v6354_v27  ;;  %v1663_v5 = vmul.f32 0.6931472, %v3043_v38  ;;  %v1697_v28 = vadd.f32 1.0, %v4763_v31  ;;  %v4791_v30 = vsel %vm4704_vm15, %v919_v14, %v6372_v18 }
 0x1aa   : > { %6375 = vst [vmem:[#allocation30_spill] sm:$0xff] %v4767_v50  ;;  %v4796_v51 = vsel %vm4710_vm0, %v921_v24, %v6373_v10  ;;  %v1685_v48 = vand.u32 2147483647, %v4714_v35  ;;  %v1688_v27 = vadd.f32 1.0, %v4770_v36  ;;  %3058 = vpow2.f32 %v1361_v52  ;;  %v6384_v52 = vld [vmem:[#allocation34_spill] sm:$0xff] }
 0x1ab   : > { %vm4783_vm6 = vcmp.ne.s32.totalorder %v6379_v23, 0  ;;  %v1654_v19 = vmul.f32 0.6931472, %v3049_v12  ;;  %v4804_v38 = vsel %vm4728_vm2, %v918_v62, %v6378_v43  ;;  %v1207_v49 = vand.u32 2147483647, %v4791_v30  ;;  %v6413_v23 = vld [vmem:[#allocation54_spill] sm:$0xff] }
 0x1ac   : > { %6382 = vst [vmem:[#allocation31_spill] sm:$0xff] %v4804_v38  ;;  %v1209_v18 = vand.u32 2147483647, %v4796_v51  ;;  %v4808_v17 = vpop.eup %3050  ;;  %v1651_v24 = vsel %vm4747_vm3, %v1648_v56, %v1645_v16  ;;  %v1683_v14 = vadd.f32 1.0, %v1682_v40  ;;  %3060 = vpow2.f32 %v1365_v55 }
 0x1ad   : > { %6383 = vst [vmem:[#allocation47_spill] sm:$0xff] %v4808_v17  ;;  %v1669_v12 = vsel %vm4757_vm4, %v1666_v13, %v1663_v5  ;;  %3062 = vlog2.f32 %v1697_v28  ;;  %v1700_v62 = vmul.f32 -0.5, %v4763_v31  ;;  %v1271_v29 = vsub.f32 0.0, %v1207_v49  ;;  %v6395_v49 = vld [vmem:[#allocation50_spill] sm:$0xff] }
 0x1ae   : > { %v6385_v43 = vunpack.c.l.b16 %v6384_v52  ;;  %v4822_v22 = vpop.eup %3052  ;;  %3064 = vlog2.f32 %v1688_v27  ;;  %v1691_v56 = vmul.f32 -0.5, %v4770_v36  ;;  %v1206_v6 = vand.u32 2147483647, %v4804_v38 }
 0x1af   : > { %v1273_v16 = vsub.f32 0.0, %v1209_v18  ;;  %v6388_v1 = vunpack.c.h.b16 %v6358_v58  ;;  %v3055_v40 = vpop.eup %3054  ;;  %v6391_v55 = vmax.f32 %v4448_v39, 0.0  ;;  %v1660_v28 = vsel %vm4772_vm5, %v1657_v44, %v1654_v19 }
 0x1b0   : > { %vm4818_vm7 = vcmp.ne.s32.totalorder %v6385_v43, 0  ;;  %vm4838_vm9 = vcmp.lt.f32.partialorder %v1685_v48, 0.0004427343  ;;  %v920_v18 = vsub.f32 0.0, %v6395_v49  ;;  %v4843_v43 = vpop.eup %3056  ;;  %v6396_v58 = vmax.f32 %v4464_v34, 0.0 }
 0x1b1   : > { %vm4828_vm8 = vcmp.ne.s32.totalorder %v6388_v1, 0  ;;  %v4834_v5 = vadd.f32 %v6391_v55, %v1651_v24  ;;  %v4850_v10 = vmul.f32 %v4714_v35, %v1683_v14  ;;  %v1703_v39 = vand.u32 2147483647, %v4763_v31 }
 0x1b2   : > { %v4847_v1 = vadd.f32 %v6396_v58, %v1669_v12  ;;  %v1701_v44 = vadd.f32 1.0, %v1700_v62  ;;  %v1694_v48 = vand.u32 2147483647, %v4770_v36  ;;  %v1715_v19 = vadd.f32 1.0, %v4822_v22 }
 0x1b3   : > { %6392 = vst [vmem:[#allocation48_spill] sm:$0xff] %v4834_v5  ;;  %v1371_v24 = vmul.f32 1.442695, %v1271_v29  ;;  %v6398_v55 = vmax.f32 %v4481_v54, 0.0  ;;  %v1692_v34 = vadd.f32 1.0, %v1691_v56  ;;  %v1270_v12 = vsub.f32 0.0, %v1206_v6 }
 0x1b4   : > { %6397 = vst [vmem:[#allocation46_spill] sm:$0xff] %v4847_v1  ;;  %v1375_v58 = vmul.f32 1.442695, %v1273_v16  ;;  %v1681_v20 = vmul.f32 0.6931472, %v3055_v40  ;;  %v1733_v35 = vadd.f32 1.0, %v4843_v43  ;;  %v4864_v14 = vsel %vm4783_vm6, %v920_v18, %v6395_v49  ;;  %v4866_v62 = vpop.eup %3058 }
 0x1b5   : > { %v4858_v33 = vadd.f32 %v6398_v55, %v1660_v28  ;;  %3066 = vpow2.f32 %v1371_v24  ;;  %6400 = vst [vmem:[#allocation50_spill] sm:$0xff] %v4866_v62  ;;  %v1718_v29 = vmul.f32 -0.5, %v4822_v22  ;;  %v1208_v54 = vand.u32 2147483647, %v4864_v14  ;;  %v6401_v28 = vld [vmem:[#allocation52_spill] sm:$0xff]  ;;  %v6402_v40 = vld [vmem:[#allocation51_spill] sm:$0xff] }
 0x1b6   : > { %3068 = vpow2.f32 %v1375_v58  ;;  %v923_v56 = vsub.f32 0.0, %v6401_v28  ;;  %v4872_v6 = vmul.f32 %v4763_v31, %v1701_v44  ;;  %v1736_v16 = vmul.f32 -0.5, %v4843_v43  ;;  %v4876_v57 = vpop.eup %3060 }
 0x1b7   : > { %6399 = vst [vmem:[#allocation34_spill] sm:$0xff] %v4858_v33  ;;  %3070 = vlog2.f32 %v1715_v19  ;;  %v922_v24 = vsub.f32 0.0, %v6402_v40  ;;  %vm4878_vm10 = vcmp.lt.f32.partialorder %v1703_v39, 0.0004427343  ;;  %v4883_v18 = vmul.f32 %v4770_v36, %v1692_v34  ;;  %v3063_v44 = vpop.eup %3062  ;;  %v4895_v36 = vpop.f32.mrb[30].mxu0 }
 0x1b8   : > { %v1721_v55 = vand.u32 2147483647, %v4822_v22  ;;  %v1272_v58 = vsub.f32 0.0, %v1208_v54  ;;  %v925_v31 = vsub.f32 0.0, %v6405_v4  ;;  %v1687_v19 = vsel %vm4838_vm9, %v4850_v10, %v1681_v20  ;;  %v4897_v34 = vpop.f32.mrb[30].mxu1  ;;  %v3065_v54 = vpop.eup %3064  ;;  %v6409_v20 = vld [vmem:[#allocation35_spill] sm:$0xff] }
 0x1b9   : > { %vm4890_vm11 = vcmp.lt.f32.partialorder %v1694_v48, 0.0004427343  ;;  %3072 = vlog2.f32 %v1733_v35  ;;  %v1739_v39 = vand.u32 2147483647, %v4843_v43  ;;  %v1369_v62 = vmul.f32 1.442695, %v1270_v12 }
 0x1ba   : > { %6408 = vst [vmem:[#allocation52_spill] sm:$0xff] %v4897_v34  ;;  %v1719_v33 = vadd.f32 1.0, %v1718_v29  ;;  %v1373_v5 = vmul.f32 1.442695, %v1272_v58  ;;  %v4902_v27 = vsel %vm4818_vm7, %v923_v56, %v6401_v28  ;;  %v1021_v10 = vunpack.c.l.b16 %v6409_v20  ;;  %v4905_v48 = vpop.f32.mrb[31].mxu0  ;;  %v4907_v35 = vpop.f32.mrb[31].mxu1 }
 0x1bb   : > { %6410 = vst [vmem:[#allocation51_spill] sm:$0xff] %v4905_v48  ;;  %6411 = vst [vmem:[#allocation53_spill] sm:$0xff] %v4907_v35  ;;  %v1737_v17 = vadd.f32 1.0, %v1736_v16  ;;  %v1724_v12 = vadd.f32 1.0, %v4876_v57  ;;  %v4913_v50 = vsel %vm4828_vm8, %v922_v24, %v6402_v40  ;;  %v1211_v29 = vand.u32 2147483647, %v4902_v27 }
 0x1bc   : > { %6412 = vst [vmem:[#allocation35_spill] sm:$0xff] %v4913_v50  ;;  %3074 = vpow2.f32 %v1373_v5  ;;  %vm1085_vm12 = vcmp.ne.s32.totalorder %v1021_v10, 0  ;;  %v924_v28 = vsub.f32 0.0, %v6413_v23  ;;  %v1020_v56 = vunpack.c.h.b16 %v6384_v52 }
 0x1bd   : > { %v1699_v58 = vmul.f32 0.6931472, %v3063_v44  ;;  %v1690_v48 = vmul.f32 0.6931472, %v3065_v54  ;;  %v1275_v34 = vsub.f32 0.0, %v1211_v29  ;;  %v4919_v16 = vsel %vm1085_vm12, %v925_v31, %v6405_v4 }
 0x1be   : > { %v1210_v13 = vand.u32 2147483647, %v4913_v50  ;;  %v1213_v40 = vand.u32 2147483647, %v4919_v16  ;;  %vm1084_vm13 = vcmp.ne.s32.totalorder %v1020_v56, 0  ;;  %v6414_v5 = vmax.f32 %v4557_v41, 0.0 }
 0x1bf   : > { %v4924_v24 = vpop.eup %3066  ;;  %v1727_v52 = vmul.f32 -0.5, %v4876_v57  ;;  %vm4935_vm14 = vcmp.lt.f32.partialorder %v1721_v55, 0.0004427343  ;;  %3076 = vlog2.f32 %v1724_v12  ;;  %v1379_v29 = vmul.f32 1.442695, %v1275_v34 }
 0x1c0   : > { %v4928_v10 = vadd.f32 %v6414_v5, %v1687_v19  ;;  %v4933_v31 = vpop.eup %3068  ;;  %v4940_v56 = vsel %vm1084_vm13, %v924_v28, %v6413_v23  ;;  %v1705_v19 = vsel %vm4878_vm10, %v4872_v6, %v1699_v58  ;;  %v1720_v5 = vmul.f32 %v4822_v22, %v1719_v33 }
 0x1c1   : > { %v3071_v41 = vpop.eup %3070  ;;  %v4947_v35 = vmul.f32 %v4843_v43, %v1737_v17  ;;  %vm4949_vm15 = vcmp.lt.f32.partialorder %v1739_v39, 0.0004427343  ;;  %3078 = vpow2.f32 %v1369_v62  ;;  %v1696_v34 = vsel %vm4890_vm11, %v4883_v18, %v1690_v48  ;;  %v841_v18 = vld [vmem:[%s3505_s14 + $0xb0] sm:$0xff] }
 0x1c2   : > { %v1751_v12 = vadd.f32 1.0, %v4924_v24  ;;  %v1274_v23 = vsub.f32 0.0, %v1210_v13  ;;  %v1277_v49 = vsub.f32 0.0, %v1213_v40  ;;  %v1728_v28 = vadd.f32 1.0, %v1727_v52 }
 0x1c3   : > { %v3073_v6 = vpop.eup %3072  ;;  %v1769_v33 = vadd.f32 1.0, %v4933_v31  ;;  %v1212_v17 = vand.u32 2147483647, %v4940_v56  ;;  %v6419_v43 = vmax.f32 %v4580_v21, 0.0  ;;  %v1717_v62 = vmul.f32 0.6931472, %v3071_v41 }
 0x1c4   : > { %v1730_v1 = vand.u32 2147483647, %v4876_v57  ;;  %3080 = vpow2.f32 %v1379_v29  ;;  %v6420_v48 = vmax.f32 %v4585_v11, 0.0  ;;  %v1383_v40 = vmul.f32 1.442695, %v1277_v49 }
 0x1c5   : > { %v4962_v39 = vadd.f32 %v6419_v43, %v1705_v19  ;;  %v1276_v52 = vsub.f32 0.0, %v1212_v17  ;;  %v1735_v4 = vmul.f32 0.6931472, %v3073_v6  ;;  %3082 = vlog2.f32 %v1751_v12  ;;  %v842_v6 = vld [vmem:[%s3505_s14 + $0xb8] sm:$0xff] }
 0x1c6   : > { %v4968_v58 = vadd.f32 %v6420_v48, %v1696_v34  ;;  %v4971_v22 = vpop.eup %3074  ;;  %v1377_v21 = vmul.f32 1.442695, %v1274_v23  ;;  %v1022_v41 = vunpack.c.h.b16 %v6409_v20  ;;  %v4975_v19 = vmul.f32 %v4876_v57, %v1728_v28  ;;  %v6423_v23 = vld [vmem:[#allocation55_spill] sm:$0xff] }
 0x1c7   : > { %3084 = vlog2.f32 %v1769_v33  ;;  %vm873_vm0 = vcmp.ne.bf16.partialorder %v841_v18, 0  ;;  %v1723_v29 = vsel %vm4935_vm14, %v1720_v5, %v1717_v62  ;;  %vm4980_vm2 = vcmp.lt.f32.partialorder %v1730_v1, 0.0004427343  ;;  %v6424_v5 = vld [vmem:[#allocation57_spill] sm:$0xff] }
 0x1c8   : > { %v1760_v49 = vadd.f32 1.0, %v4971_v22  ;;  %v926_v20 = vsub.f32 0.0, %v6423_v23  ;;  %v1754_v57 = vmul.f32 -0.5, %v4924_v24  ;;  %3086 = vpow2.f32 %v1383_v40 }
 0x1c9   : > { %v1381_v28 = vmul.f32 1.442695, %v1276_v52  ;;  %vm1086_vm3 = vcmp.ne.s32.totalorder %v1022_v41, 0  ;;  %v3077_v33 = vpop.eup %3076  ;;  %v1741_v54 = vsel %vm4949_vm15, %v4947_v35, %v1735_v4  ;;  %3088 = vpow2.f32 %v1377_v21 }
 0x1ca   : > { %v927_v17 = vsub.f32 0.0, %v6424_v5  ;;  %v6425_v43 = vmov 0   ;;  %v1757_v18 = vand.u32 2147483647, %v4924_v24  ;;  %v1772_v48 = vmul.f32 -0.5, %v4933_v31 }
 0x1cb   : > { %v969_v62 = vsel %vm873_vm0, 65537, %v6425_v43  ;;  %v4994_v1 = vpop.eup %3078  ;;  %vm874_vm4 = vcmp.ne.bf16.partialorder %v842_v6, 0  ;;  %3090 = vlog2.f32 %v1760_v49  ;;  %v4999_v40 = vsel %vm1086_vm3, %v926_v20, %v6423_v23  ;;  %v6429_v23 = vld [vmem:[#allocation59_spill] sm:$0xff] }
 0x1cc   : > { %v1023_v13 = vunpack.c.l.b16 %v969_v62  ;;  %6426 = vst [vmem:[#allocation54_spill] sm:$0xff] %v4999_v40  ;;  %v5002_v55 = vsel %vm874_vm4, 65537, %v6425_v43  ;;  %v1024_v35 = vunpack.c.h.b16 %v969_v62  ;;  %v1726_v4 = vmul.f32 0.6931472, %v3077_v33 }
 0x1cd   : > { %v1755_v52 = vadd.f32 1.0, %v1754_v57  ;;  %3092 = vpow2.f32 %v1381_v28  ;;  %v6427_v41 = vmax.f32 %v4689_v53, 0.0  ;;  %v1025_v49 = vunpack.c.l.b16 %v5002_v55 }
 0x1ce   : > { %vm1087_vm5 = vcmp.ne.s32.totalorder %v1023_v13, 0  ;;  %v5004_v21 = vpop.eup %3080  ;;  %v928_v20 = vsub.f32 0.0, %v6429_v23  ;;  %v1773_v11 = vadd.f32 1.0, %v1772_v48  ;;  %v1775_v62 = vand.u32 2147483647, %v4933_v31 }
 0x1cf   : > { %v5008_v12 = vadd.f32 %v6427_v41, %v1723_v29  ;;  %v5011_v6 = vsel %vm1087_vm5, %v927_v17, %v6424_v5  ;;  %v1214_v57 = vand.u32 2147483647, %v4999_v40  ;;  %vm1088_vm6 = vcmp.ne.s32.totalorder %v1024_v35, 0  ;;  %v3083_v13 = vpop.eup %3082  ;;  %v6434_v5 = vld [vmem:[#allocation58_spill] sm:$0xff] }
 0x1d0   : > { %v6430_v28 = vmax.f32 %v4696_v2, 0.0  ;;  %vm5021_vm7 = vcmp.lt.f32.partialorder %v1757_v18, 0.0004427343  ;;  %v1215_v29 = vand.u32 2147483647, %v5011_v6  ;;  %v929_v17 = vsub.f32 0.0, %v6434_v5 }
 0x1d1   : > { %6428 = vst [vmem:[#allocation55_spill] sm:$0xff] %v5008_v12  ;;  %v3085_v41 = vpop.eup %3084  ;;  %v1732_v48 = vsel %vm4980_vm2, %v4975_v19, %v1726_v4  ;;  %v1756_v35 = vmul.f32 %v4924_v24, %v1755_v52  ;;  %v1763_v44 = vmul.f32 -0.5, %v4971_v22  ;;  %v1787_v2 = vadd.f32 1.0, %v5004_v21 }
 0x1d2   : > { %v5019_v33 = vadd.f32 %v6430_v28, %v1741_v54  ;;  %v1766_v54 = vand.u32 2147483647, %v4971_v22  ;;  %v1279_v18 = vsub.f32 0.0, %v1215_v29  ;;  %vm1089_vm8 = vcmp.ne.s32.totalorder %v1025_v49, 0  ;;  %v5037_v50 = vpop.eup %3086 }
 0x1d3   : > { %v5035_v28 = vsel %vm1088_vm6, %v928_v20, %v6429_v23  ;;  %v1753_v38 = vmul.f32 0.6931472, %v3083_v13  ;;  %vm5040_vm9 = vcmp.lt.f32.partialorder %v1775_v62, 0.0004427343  ;;  %v1278_v24 = vsub.f32 0.0, %v1214_v57  ;;  %v5044_v34 = vpop.eup %3088 }
 0x1d4   : > { %6431 = vst [vmem:[#allocation57_spill] sm:$0xff] %v5019_v33  ;;  %v1774_v33 = vmul.f32 %v4933_v31, %v1773_v11  ;;  %6437 = vst [vmem:[#allocation59_spill] sm:$0xff] %v5044_v34  ;;  %v1771_v4 = vmul.f32 0.6931472, %v3085_v41  ;;  %v5048_v49 = vsel %vm1089_vm8, %v929_v17, %v6434_v5  ;;  %v1216_v23 = vand.u32 2147483647, %v5035_v28 }
 0x1d5   : > { %v6438_v20 = vmax.f32 %v4720_v46, 0.0  ;;  %v1764_v31 = vadd.f32 1.0, %v1763_v44  ;;  %3094 = vlog2.f32 %v1787_v2  ;;  %v1387_v11 = vmul.f32 1.442695, %v1279_v18  ;;  %v3091_v62 = vpop.eup %3090  ;;  %v6442_v5 = vld [vmem:[#allocation60_spill] sm:$0xff] }
 0x1d6   : > { %vm5055_vm10 = vcmp.lt.f32.partialorder %v1766_v54, 0.0004427343  ;;  %v1805_v29 = vadd.f32 1.0, %v5037_v50  ;;  %v930_v17 = vsub.f32 0.0, %v6442_v5  ;;  %v1759_v46 = vsel %vm5021_vm7, %v1756_v35, %v1753_v38 }
 0x1d7   : > { %v5053_v13 = vadd.f32 %v6438_v20, %v1732_v48  ;;  %v5062_v52 = vpop.eup %3092  ;;  %v1790_v44 = vmul.f32 -0.5, %v5004_v21  ;;  %v1385_v48 = vmul.f32 1.442695, %v1278_v24  ;;  %v1217_v2 = vand.u32 2147483647, %v5048_v49 }
 0x1d8   : > { %v1777_v54 = vsel %vm5040_vm9, %v1774_v33, %v1771_v4  ;;  %v1793_v18 = vand.u32 2147483647, %v5004_v21  ;;  %v1808_v20 = vmul.f32 -0.5, %v5037_v50  ;;  %v1280_v41 = vsub.f32 0.0, %v1216_v23  ;;  %v6444_v33 = vld [vmem:[#allocation56_spill] sm:$0xff] }
 0x1d9   : > { %6439 = vst [vmem:[#allocation58_spill] sm:$0xff] %v5053_v13  ;;  %3096 = vpow2.f32 %v1387_v11  ;;  %v1281_v40 = vsub.f32 0.0, %v1217_v2  ;;  %v1026_v34 = vunpack.c.h.b16 %v5002_v55  ;;  %v6443_v13 = vld [vmem:[#allocation49_spill] sm:$0xff]  ;;  %v1762_v38 = vmul.f32 0.6931472, %v3091_v62 }
 0x1da   : > { %v1445_v53 = vadd.f32 1.0, %v6443_v13  ;;  %3098 = vlog2.f32 %v1805_v29  ;;  %v1799_v35 = vmul.f32 -0.5, %v5062_v52  ;;  %v1389_v24 = vmul.f32 1.442695, %v1280_v41 }
 0x1db   : > { %v1391_v12 = vmul.f32 1.442695, %v1281_v40  ;;  %vm1090_vm11 = vcmp.ne.s32.totalorder %v1026_v34, 0  ;;  %v1454_v19 = vadd.f32 1.0, %v6444_v33  ;;  %v6445_v4 = vmax.f32 %v4791_v30, 0.0 }
 0x1dc   : > { %3100 = vlog2.f32 %v1445_v53  ;;  %v1765_v11 = vmul.f32 %v4971_v22, %v1764_v31  ;;  %v1796_v55 = vadd.f32 1.0, %v5062_v52  ;;  %v6446_v62 = vmax.f32 %v4796_v51, 0.0  ;;  %v843_v22 = vld [vmem:[%s3505_s14 + $0xc0] sm:$0xff] }
 0x1dd   : > { %v5078_v23 = vadd.f32 %v6445_v4, %v1759_v46  ;;  %3102 = vpow2.f32 %v1385_v48  ;;  %v1791_v41 = vadd.f32 1.0, %v1790_v44  ;;  %v5087_v40 = vsel %vm1090_vm11, %v930_v17, %v6442_v5 }
 0x1de   : > { %v5084_v29 = vadd.f32 %v6446_v62, %v1777_v54  ;;  %3104 = vpow2.f32 %v1389_v24  ;;  %6448 = vst [vmem:[#allocation49_spill] sm:$0xff] %v5087_v40  ;;  %vm5089_vm12 = vcmp.lt.f32.partialorder %v1793_v18, 0.0004427343  ;;  %v1809_v30 = vadd.f32 1.0, %v1808_v20 }
 0x1df   : > { %v1448_v46 = vmul.f32 -0.5, %v6443_v13  ;;  %3106 = vlog2.f32 %v1454_v19  ;;  %v3095_v31 = vpop.eup %3094  ;;  %v1768_v51 = vsel %vm5055_vm10, %v1765_v11, %v1762_v38  ;;  %v1800_v48 = vadd.f32 1.0, %v1799_v35  ;;  %v844_v38 = vld [vmem:[%s3505_s14 + $0xc8] sm:$0xff] }
 0x1e0   : > { %6447 = vst [vmem:[#allocation60_spill] sm:$0xff] %v5084_v29  ;;  %3108 = vpow2.f32 %v1391_v12  ;;  %v2147_v5 = vadd.f32 %v4267_v42, %v4262_v26  ;;  %v1811_v17 = vand.u32 2147483647, %v5037_v50  ;;  %v1218_v44 = vand.u32 2147483647, %v5087_v40 }
 0x1e1   : > { %3110 = vlog2.f32 %v1796_v55  ;;  %v1451_v2 = vand.u32 2147483647, %v6443_v13  ;;  %v5103_v54 = vmul.f32 %v5004_v21, %v1791_v41  ;;  %v1457_v57 = vmul.f32 -0.5, %v6444_v33 }
 0x1e2   : > { %vm875_vm13 = vcmp.ne.bf16.partialorder %v843_v22, 0  ;;  %v6451_v12 = vmax.f32 %v4864_v14, 0.0  ;;  %v5111_v26 = vmul.f32 0.6931472, %v3095_v31  ;;  %v1802_v42 = vand.u32 2147483647, %v5062_v52 }
 0x1e3   : > { %v1449_v53 = vadd.f32 1.0, %v1448_v46  ;;  %v5115_v35 = vpop.eup %3096  ;;  %v5118_v21 = vmul.f32 %v5037_v50, %v1809_v30  ;;  %v5121_v24 = vmul.f32 %v5062_v52, %v1800_v48  ;;  %vm5125_vm14 = vcmp.lt.f32.partialorder %v1811_v17, 0.0004427343 }
 0x1e4   : > { %v5109_v20 = vadd.f32 %v6451_v12, %v1768_v51  ;;  %v3099_v4 = vpop.eup %3098  ;;  %v1282_v55 = vsub.f32 0.0, %v1218_v44  ;;  %vm5130_vm15 = vcmp.lt.f32.partialorder %v1451_v2, 0.0004427343  ;;  %v971_v50 = vsel %vm875_vm13, 65537, %v6425_v43 }
 0x1e5   : > { %v1458_v30 = vadd.f32 1.0, %v1457_v57  ;;  %v1460_v46 = vand.u32 2147483647, %v6444_v33  ;;  %v1027_v31 = vunpack.c.l.b16 %v971_v50  ;;  %vm876_vm0 = vcmp.ne.bf16.partialorder %v844_v38, 0 }
 0x1e6   : > { %6452 = vst [vmem:[#allocation56_spill] sm:$0xff] %v5109_v20  ;;  %v3101_v52 = vpop.eup %3100  ;;  %v1823_v17 = vadd.f32 1.0, %v5115_v35  ;;  %v1450_v2 = vmul.f32 %v6443_v13, %v1449_v53  ;;  %v5147_v12 = vmul.f32 0.6931472, %v3099_v4  ;;  %v1826_v57 = vmul.f32 -0.5, %v5115_v35 }
 0x1e7   : > { %v5137_v51 = vpop.eup %3102  ;;  %v1447_v44 = vmul.f32 0.6931472, %v3101_v52  ;;  %v1829_v38 = vand.u32 2147483647, %v5115_v35  ;;  %v931_v62 = vsub.f32 0.0, %v4383_v32  ;;  %vm1091_vm2 = vcmp.ne.s32.totalorder %v1027_v31, 0 }
 0x1e8   : > { %6457 = vst [vmem:[#allocation71_spill] sm:$0xff] %v5137_v51  ;;  %v5145_v22 = vpop.eup %3104  ;;  %v1393_v14 = vmul.f32 1.442695, %v1282_v55  ;;  %v972_v52 = vsel %vm876_vm0, 65537, %v6425_v43  ;;  %vm5157_vm3 = vcmp.lt.f32.partialorder %v1802_v42, 0.0004427343  ;;  %v1459_v4 = vmul.f32 %v6444_v33, %v1458_v30 }
 0x1e9   : > { %v3107_v19 = vpop.eup %3106  ;;  %v1453_v18 = vsel %vm5130_vm15, %v1450_v2, %v1447_v44  ;;  %vm1461_vm4 = vcmp.lt.f32.partialorder %v1460_v46, 0.0004427343  ;;  %v1028_v40 = vunpack.c.h.b16 %v971_v50  ;;  %3112 = vlog2.f32 %v1823_v17  ;;  %v6460_v55 = vld [vmem:[#allocation28_spill] sm:$0xff] }
 0x1ea   : > { %v5155_v48 = vpop.eup %3108  ;;  %v1456_v53 = vmul.f32 0.6931472, %v3107_v19  ;;  %v6461_v51 = vmax.f32 %v6460_v55, 0.0  ;;  %v933_v31 = vsub.f32 0.0, %v4398_v63  ;;  %v932_v44 = vsub.f32 0.0, %v4411_v7  ;;  %v6462_v30 = vld [vmem:[#allocation32_spill] sm:$0xff] }
 0x1eb   : > { %v3111_v29 = vpop.eup %3110  ;;  %v1832_v2 = vadd.f32 1.0, %v5145_v22  ;;  %v5168_v20 = vsel %vm1091_vm2, %v931_v62, %v4383_v32  ;;  %v1029_v19 = vunpack.c.l.b16 %v972_v52  ;;  %v1841_v33 = vadd.f32 1.0, %v5155_v48 }
 0x1ec   : > { %v2069_v41 = vadd.f32 %v6461_v51, %v1453_v18  ;;  %v1462_v42 = vsel %vm1461_vm4, %v1459_v4, %v1456_v53  ;;  %v6463_v50 = vmax.f32 %v6462_v30, 0.0  ;;  %v1219_v55 = vand.u32 2147483647, %v5168_v20 }
 0x1ed   : > { %v1813_v18 = vsel %vm5125_vm14, %v5118_v21, %v5147_v12  ;;  %v1798_v51 = vmul.f32 0.6931472, %v3111_v29  ;;  %vm1093_vm5 = vcmp.ne.s32.totalorder %v1029_v19, 0  ;;  %vm1092_vm6 = vcmp.ne.s32.totalorder %v1028_v40, 0 }
 0x1ee   : > { %v2070_v46 = vadd.f32 %v6463_v50, %v1462_v42  ;;  %v2148_v17 = vadd.f32 %v2147_v5, %v2069_v41  ;;  %v1835_v32 = vmul.f32 -0.5, %v5145_v22  ;;  %v1283_v53 = vsub.f32 0.0, %v1219_v55 }
 0x1ef   : > { %v5180_v4 = vsel %vm1093_vm5, %v933_v31, %v4398_v63  ;;  %3114 = vlog2.f32 %v1832_v2  ;;  %v5184_v41 = vsel %vm1092_vm6, %v932_v44, %v4411_v7  ;;  %v1030_v42 = vunpack.c.h.b16 %v972_v52 }
 0x1f0   : > { %v2149_v62 = vadd.f32 %v2148_v17, %v2070_v46  ;;  %v1221_v5 = vand.u32 2147483647, %v5180_v4  ;;  %3116 = vlog2.f32 %v1841_v33  ;;  %v1395_v21 = vmul.f32 1.442695, %v1283_v53 }
 0x1f1   : > { %v1220_v29 = vand.u32 2147483647, %v5184_v41  ;;  %v934_v40 = vsub.f32 0.0, %v4413_v60  ;;  %3118 = vpow2.f32 %v1393_v14  ;;  %vm1094_vm7 = vcmp.ne.s32.totalorder %v1030_v42, 0 }
 0x1f2   : > { %2150 = vadd.xlane.f32.xlu0 %v2149_v62  ;;  %v1285_v11 = vsub.f32 0.0, %v1221_v5  ;;  %v1490_v63 = vadd.f32 1.0, %v4221_v47  ;;  %v1804_v12 = vsel %vm5157_vm3, %v5121_v24, %v1798_v51  ;;  %v1827_v31 = vadd.f32 1.0, %v1826_v57 }
 0x1f3   : > { %3120 = vpow2.f32 %v1395_v21  ;;  %v1284_v7 = vsub.f32 0.0, %v1220_v29  ;;  %v1844_v52 = vmul.f32 -0.5, %v5155_v48  ;;  %v1838_v44 = vand.u32 2147483647, %v5145_v22  ;;  %v3113_v14 = vpop.eup %3112 }
 0x1f4   : > { %v1399_v2 = vmul.f32 1.442695, %v1285_v11  ;;  %3122 = vlog2.f32 %v1490_v63  ;;  %v1836_v19 = vadd.f32 1.0, %v1835_v32  ;;  %v5195_v30 = vsel %vm1094_vm7, %v934_v40, %v4413_v60  ;;  %v845_v60 = vld [vmem:[%s3505_s14 + $0xd0] sm:$0xff] }
 0x1f5   : > { %v1397_v33 = vmul.f32 1.442695, %v1284_v7  ;;  %v2152_v24 = vadd.f32 %v4346_v61, %v4308_v8  ;;  %v6464_v57 = vsel %vm5089_vm12, %v5103_v54, %v5111_v26  ;;  %v6465_v13 = vmax.f32 %v4902_v27, 0.0  ;;  %v846_v8 = vld [vmem:[%s3505_s14 + $0xd8] sm:$0xff] }
 0x1f6   : > { %v6466_v46 = vmax.f32 %v4919_v16, 0.0  ;;  %vm5212_vm8 = vcmp.lt.f32.partialorder %v1829_v38, 0.0004427343  ;;  %3124 = vpow2.f32 %v1399_v2  ;;  %v1847_v61 = vand.u32 2147483647, %v5155_v48 }
 0x1f7   : > { %v5206_v50 = vadd.f32 %v6465_v13, %v6464_v57  ;;  %3126 = vpow2.f32 %v1397_v33  ;;  %v1493_v34 = vmul.f32 -0.5, %v4221_v47  ;;  %v2153_v27 = vadd.f32 %v2152_v24, %v4331_v0 }
 0x1f8   : > { %v5210_v17 = vadd.f32 %v6466_v46, %v1813_v18  ;;  %v6469_v54 = vmax.f32 %v4940_v56, 0.0  ;;  %v1828_v16 = vmul.f32 %v5115_v35, %v1827_v31  ;;  %v1845_v38 = vadd.f32 1.0, %v1844_v52 }
 0x1f9   : > { %v1222_v18 = vand.u32 2147483647, %v5195_v30  ;;  %v1837_v51 = vmul.f32 %v5145_v22, %v1836_v19  ;;  %vm5228_vm9 = vcmp.lt.f32.partialorder %v1838_v44, 0.0004427343  ;;  %vm877_vm10 = vcmp.ne.bf16.partialorder %v845_v60, 0  ;;  %v3115_v62 = vpop.eup %3114 }
 0x1fa   : > { %v5223_v26 = vadd.f32 %v6469_v54, %v1804_v12  ;;  %vm878_vm11 = vcmp.ne.bf16.partialorder %v846_v8, 0  ;;  %v1825_v53 = vmul.f32 0.6931472, %v3113_v14  ;;  %v935_v0 = vsub.f32 0.0, %v4561_v9  ;;  %v3117_v35 = vpop.eup %3116 }
 0x1fb   : > { %v973_v56 = vsel %vm877_vm10, 65537, %v6425_v43  ;;  %v974_v5 = vsel %vm878_vm11, 65537, %v6425_v43  ;;  %vm5235_vm12 = vcmp.lt.f32.partialorder %v1847_v61, 0.0004427343  ;;  %v1494_v22 = vadd.f32 1.0, %v1493_v34  ;;  %v5240_v11 = vpop.eup %3118 }
 0x1fc   : > { %v1031_v21 = vunpack.c.l.b16 %v973_v56  ;;  %v937_v29 = vsub.f32 0.0, %v4567_v59  ;;  %v1033_v40 = vunpack.c.l.b16 %v974_v5  ;;  %v1846_v63 = vmul.f32 %v5155_v48, %v1845_v38 }
 0x1fd   : > { %v2051_v12 = vmax.f32 %v5168_v20, 0.0  ;;  %v1286_v31 = vsub.f32 0.0, %v1222_v18  ;;  %v1496_v7 = vand.u32 2147483647, %v4221_v47  ;;  %v5245_v52 = vpop.eup %3120  ;;  %v1834_v44 = vmul.f32 0.6931472, %v3115_v62 }
 0x1fe   : > { %v2053_v2 = vmax.f32 %v5180_v4, 0.0  ;;  %vm1095_vm13 = vcmp.ne.s32.totalorder %v1031_v21, 0  ;;  %vm1097_vm14 = vcmp.ne.s32.totalorder %v1033_v40, 0  ;;  %v3123_v14 = vpop.eup %3122  ;;  %v1831_v19 = vsel %vm5212_vm8, %v1828_v16, %v1825_v53 }
 0x1ff   : > { %v1843_v33 = vmul.f32 0.6931472, %v3117_v35  ;;  %v1859_v24 = vadd.f32 1.0, %v5245_v52  ;;  %v5252_v48 = vsel %vm1095_vm13, %v935_v0, %v4561_v9  ;;  %v1492_v57 = vmul.f32 0.6931472, %v3123_v14 }
 0x200   : > { %v1495_v13 = vmul.f32 %v4221_v47, %v1494_v22  ;;  %v5256_v46 = vsel %vm1097_vm14, %v937_v29, %v4567_v59  ;;  %v1032_v60 = vunpack.c.h.b16 %v973_v56  ;;  %v5258_v8 = vpop.eup %3124  ;;  %v1401_v61 = vmul.f32 1.442695, %v1286_v31  ;;  %v6475_v56 = vld [vmem:[#allocation33_spill] sm:$0xff] }
 0x201   : > { %3128 = vlog2.f32 %v1859_v24  ;;  %vm1497_vm15 = vcmp.lt.f32.partialorder %v1496_v7, 0.0004427343  ;;  %v1223_v55 = vand.u32 2147483647, %v5252_v48  ;;  %v5261_v34 = vpop.eup %3126  ;;  %v1840_v9 = vsel %vm5228_vm9, %v1837_v51, %v1834_v44  ;;  %v6478_v7 = vld [vmem:[#allocation61_spill] sm:$0xff] }
 0x202   : > { %v2052_v54 = vmax.f32 %v5184_v41, 0.0  ;;  %v1498_v16 = vsel %vm1497_vm15, %v1495_v13, %v1492_v57  ;;  %v1225_v47 = vand.u32 2147483647, %v5256_v46  ;;  %v6474_v59 = vmax.f32 %v5011_v6, 0.0 }
 0x203   : > { %v1877_v18 = vadd.f32 1.0, %v5258_v8  ;;  %v936_v62 = vsub.f32 0.0, %v4569_v45  ;;  %v1034_v53 = vunpack.c.h.b16 %v974_v5  ;;  %v1868_v0 = vadd.f32 1.0, %v5261_v34 }
 0x204   : > { %v5269_v38 = vadd.f32 %v6474_v59, %v1831_v19  ;;  %v6476_v35 = vmax.f32 %v6475_v56, 0.0  ;;  %vm1096_vm0 = vcmp.ne.s32.totalorder %v1032_v60, 0  ;;  %v938_v51 = vsub.f32 0.0, %v4575_v25  ;;  %v6480_v60 = vld [vmem:[#allocation63_spill] sm:$0xff]  ;;  %v6482_v56 = vld [vmem:[#allocation66_spill] sm:$0xff] }
 0x205   : > { %v1849_v22 = vsel %vm5235_vm12, %v1846_v63, %v1843_v33  ;;  %v6477_v6 = vmax.f32 %v5035_v28, 0.0  ;;  %3130 = vpow2.f32 %v1401_v61  ;;  %v1287_v29 = vsub.f32 0.0, %v1223_v55  ;;  %v847_v55 = vld [vmem:[%s3505_s14 + $0xe0] sm:$0xff] }
 0x206   : > { %v2074_v32 = vadd.f32 %v6476_v35, %v1498_v16  ;;  %v1862_v40 = vmul.f32 -0.5, %v5245_v52  ;;  %v1289_v31 = vsub.f32 0.0, %v1225_v47  ;;  %v1517_v44 = vadd.f32 1.0, %v6478_v7 }
 0x207   : > { %v5281_v21 = vadd.f32 %v6477_v6, %v1840_v9  ;;  %3132 = vlog2.f32 %v1877_v18  ;;  %v1403_v14 = vmul.f32 1.442695, %v1287_v29  ;;  %v5286_v19 = vsel %vm1096_vm0, %v936_v62, %v4569_v45 }
 0x208   : > { %v2154_v5 = vadd.f32 %v2153_v27, %v2074_v32  ;;  %vm1098_vm2 = vcmp.ne.s32.totalorder %v1034_v53, 0  ;;  %3134 = vlog2.f32 %v1868_v0  ;;  %v1407_v28 = vmul.f32 1.442695, %v1289_v31  ;;  %v6481_v0 = vld [vmem:[#allocation65_spill] sm:$0xff]  ;;  %v848_v32 = vld [vmem:[%s3505_s14 + $0xe8] sm:$0xff] }
 0x209   : > { %v1224_v42 = vand.u32 2147483647, %v5286_v19  ;;  %v5290_v63 = vsel %vm1098_vm2, %v938_v51, %v4575_v25  ;;  %v6479_v27 = vmax.f32 %v5048_v49, 0.0  ;;  %v1880_v24 = vmul.f32 -0.5, %v5258_v8 }
 0x20a   : > { %2155 = vadd.xlane.f32.xlu0 %v2154_v5  ;;  %3136 = vpow2.f32 %v1403_v14  ;;  %v1520_v57 = vmul.f32 -0.5, %v6478_v7  ;;  %v1226_v13 = vand.u32 2147483647, %v5290_v63  ;;  %v1526_v61 = vadd.f32 1.0, %v6480_v60 }
 0x20b   : > { %v5294_v33 = vadd.f32 %v6479_v27, %v1849_v22  ;;  %3138 = vpow2.f32 %v1407_v28  ;;  %v1288_v45 = vsub.f32 0.0, %v1224_v42  ;;  %v3129_v9 = vpop.eup %3128  ;;  %v1863_v25 = vadd.f32 1.0, %v1862_v40 }
 0x20c   : > { %v1865_v16 = vand.u32 2147483647, %v5245_v52  ;;  %v1871_v49 = vmul.f32 -0.5, %v5261_v34  ;;  %3140 = vlog2.f32 %v1517_v44  ;;  %v2055_v47 = vmax.f32 %v5252_v48, 0.0 }
 0x20d   : > { %v1405_v59 = vmul.f32 1.442695, %v1288_v45  ;;  %v1523_v18 = vand.u32 2147483647, %v6478_v7  ;;  %3142 = vlog2.f32 %v1526_v61  ;;  %v1881_v62 = vadd.f32 1.0, %v1880_v24  ;;  %v6496_v45 = vld [vmem:[#allocation41_spill] sm:$0xff] }
 0x20e   : > { %v1883_v53 = vand.u32 2147483647, %v5258_v8  ;;  %v5308_v35 = vadd.f32 %v6482_v56, %v6481_v0  ;;  %vm879_vm3 = vcmp.ne.bf16.partialorder %v847_v55, 0  ;;  %v1861_v51 = vmul.f32 0.6931472, %v3129_v9 }
 0x20f   : > { %3144 = vpow2.f32 %v1405_v59  ;;  %v1290_v22 = vsub.f32 0.0, %v1226_v13  ;;  %v1529_v6 = vmul.f32 -0.5, %v6480_v60  ;;  %v5312_v29 = vpop.eup %3130  ;;  %v1864_v40 = vmul.f32 %v5245_v52, %v1863_v25 }
 0x210   : > { %vm5315_vm4 = vcmp.lt.f32.partialorder %v1865_v16, 0.0004427343  ;;  %v1872_v31 = vadd.f32 1.0, %v1871_v49  ;;  %v1874_v44 = vand.u32 2147483647, %v5261_v34  ;;  %v1521_v14 = vadd.f32 1.0, %v1520_v57 }
 0x211   : > { %v939_v28 = vsub.f32 0.0, %v4736_v37  ;;  %v975_v42 = vsel %vm879_vm3, 65537, %v6425_v43  ;;  %vm880_vm5 = vcmp.ne.bf16.partialorder %v848_v32, 0  ;;  %v3133_v27 = vpop.eup %3132  ;;  %v5323_v24 = vmul.f32 %v5258_v8, %v1881_v62 }
 0x212   : > { %vm5325_vm6 = vcmp.lt.f32.partialorder %v1883_v53, 0.0004427343  ;;  %v1532_v52 = vand.u32 2147483647, %v6480_v60  ;;  %v1035_v13 = vunpack.c.l.b16 %v975_v42  ;;  %v3135_v61 = vpop.eup %3134  ;;  %v1867_v57 = vsel %vm5315_vm4, %v1864_v40, %v1861_v51  ;;  %v6498_v53 = vld [vmem:[#allocation68_spill] sm:$0xff] }
 0x213   : > { %v1409_v9 = vmul.f32 1.442695, %v1290_v22  ;;  %v1530_v25 = vadd.f32 1.0, %v1529_v6  ;;  %v5336_v8 = vmul.f32 %v5261_v34, %v1872_v31  ;;  %v976_v59 = vsel %vm880_vm5, 65537, %v6425_v43 }
 0x214   : > { %v5333_v16 = vpop.eup %3136  ;;  %vm1099_vm7 = vcmp.ne.s32.totalorder %v1035_v13, 0  ;;  %vm5342_vm8 = vcmp.lt.f32.partialorder %v1874_v44, 0.0004427343  ;;  %v1522_v56 = vmul.f32 %v6478_v7, %v1521_v14  ;;  %vm5348_vm9 = vcmp.lt.f32.partialorder %v1523_v18, 0.0004427343 }
 0x215   : > { %v5340_v62 = vpop.eup %3138  ;;  %v1895_v0 = vadd.f32 1.0, %v5333_v16  ;;  %v5353_v34 = vsel %vm1099_vm7, %v939_v28, %v4736_v37  ;;  %v5357_v22 = vadd.f32 %v2051_v12, %v1867_v57  ;;  %v1879_v6 = vmul.f32 0.6931472, %v3133_v27 }
 0x216   : > { %v3141_v51 = vpop.eup %3140  ;;  %vm5359_vm10 = vcmp.lt.f32.partialorder %v1532_v52, 0.0004427343  ;;  %v1227_v5 = vand.u32 2147483647, %v5353_v34  ;;  %3146 = vpow2.f32 %v1409_v9  ;;  %v1531_v31 = vmul.f32 %v6480_v60, %v1530_v25 }
 0x217   : > { %v3143_v7 = vpop.eup %3142  ;;  %v1519_v18 = vmul.f32 0.6931472, %v3141_v51  ;;  %v1037_v44 = vunpack.c.l.b16 %v976_v59  ;;  %v1870_v37 = vmul.f32 0.6931472, %v3135_v61  ;;  %v1913_v14 = vadd.f32 1.0, %v5340_v62  ;;  %v6493_v61 = vld [vmem:[#allocation45_spill] sm:$0xff] }
 0x218   : > { %v1528_v28 = vmul.f32 0.6931472, %v3143_v7  ;;  %v941_v20 = vsub.f32 0.0, %v4738_v3  ;;  %3148 = vlog2.f32 %v1895_v0  ;;  %v1291_v52 = vsub.f32 0.0, %v1227_v5  ;;  %v6494_v7 = vld [vmem:[#allocation37_spill] sm:$0xff] }
 0x219   : > { %v5367_v12 = vpop.eup %3144  ;;  %v1525_v27 = vsel %vm5348_vm9, %v1522_v56, %v1519_v18  ;;  %v1036_v13 = vunpack.c.h.b16 %v975_v42  ;;  %v1885_v57 = vsel %vm5325_vm6, %v5323_v24, %v1879_v6  ;;  %v940_v60 = vsub.f32 0.0, %v4752_v15 }
 0x21a   : > { %v942_v9 = vsub.f32 0.0, %v6493_v61  ;;  %v1038_v25 = vunpack.c.h.b16 %v976_v59  ;;  %v1534_v51 = vsel %vm5359_vm10, %v1531_v31, %v1528_v28  ;;  %v6495_v49 = vmax.f32 %v6494_v7, 0.0  ;;  %v6500_v7 = vld [vmem:[#allocation70_spill] sm:$0xff] }
 0x21b   : > { %v1411_v55 = vmul.f32 1.442695, %v1291_v52  ;;  %vm1101_vm11 = vcmp.ne.s32.totalorder %v1037_v44, 0  ;;  %v1898_v56 = vmul.f32 -0.5, %v5333_v16  ;;  %3150 = vlog2.f32 %v1913_v14 }
 0x21c   : > { %v2077_v0 = vadd.f32 %v6495_v49, %v1525_v27  ;;  %v1904_v42 = vadd.f32 1.0, %v5367_v12  ;;  %v6497_v24 = vmax.f32 %v6496_v45, 0.0  ;;  %v5386_v59 = vsel %vm1101_vm11, %v941_v20, %v4738_v3 }
 0x21d   : > { %3152 = vpow2.f32 %v1411_v55  ;;  %vm1100_vm12 = vcmp.ne.s32.totalorder %v1036_v13, 0  ;;  %v1876_v49 = vsel %vm5342_vm8, %v5336_v8, %v1870_v37  ;;  %v1901_v40 = vand.u32 2147483647, %v5333_v16 }
 0x21e   : > { %v2078_v32 = vadd.f32 %v6497_v24, %v1534_v51  ;;  %v2158_v6 = vadd.f32 %v5308_v35, %v2077_v0  ;;  %v1229_v5 = vand.u32 2147483647, %v5386_v59  ;;  %v5394_v18 = vsel %vm1100_vm12, %v940_v60, %v4752_v15  ;;  %v6499_v51 = vld [vmem:[#allocation69_spill] sm:$0xff] }
 0x21f   : > { %v1916_v31 = vmul.f32 -0.5, %v5340_v62  ;;  %v1228_v35 = vand.u32 2147483647, %v5394_v18  ;;  %vm1102_vm13 = vcmp.ne.s32.totalorder %v1038_v25, 0  ;;  %v1899_v3 = vadd.f32 1.0, %v1898_v56  ;;  %v849_v56 = vld [vmem:[%s3505_s14 + $0xf0] sm:$0xff] }
 0x220   : > { %v2159_v44 = vadd.f32 %v2158_v6, %v2078_v32  ;;  %v1293_v55 = vsub.f32 0.0, %v1229_v5  ;;  %v5399_v14 = vsel %vm1102_vm13, %v942_v9, %v6493_v61  ;;  %v1562_v8 = vadd.f32 1.0, %v6498_v53  ;;  %v5402_v37 = vpop.eup %3146 }
 0x221   : > { %3154 = vlog2.f32 %v1904_v42  ;;  %v1907_v15 = vmul.f32 -0.5, %v5367_v12  ;;  %v1292_v28 = vsub.f32 0.0, %v1228_v35  ;;  %v1230_v20 = vand.u32 2147483647, %v5399_v14 }
 0x222   : > { %2160 = vadd.xlane.f32.xlu1 %v2159_v44  ;;  %v5408_v27 = vadd.f32 %v2053_v2, %v1885_v57  ;;  %v1415_v52 = vmul.f32 1.442695, %v1293_v55  ;;  %3156 = vlog2.f32 %v1562_v8  ;;  %v1565_v13 = vmul.f32 -0.5, %v6498_v53  ;;  %v3149_v60 = vpop.eup %3148  ;;  %v850_v57 = vld [vmem:[%s3505_s14 + $0xf8] sm:$0xff] }
 0x223   : > { %v5413_v61 = vadd.f32 %v2052_v54, %v1876_v49  ;;  %v1413_v9 = vmul.f32 1.442695, %v1292_v28  ;;  %v1294_v25 = vsub.f32 0.0, %v1230_v20  ;;  %v2162_v0 = vadd.f32 %v6500_v7, %v6499_v51  ;;  %v6503_v49 = vld [vmem:[#allocation38_spill] sm:$0xff] }
 0x224   : > { %vm5418_vm14 = vcmp.lt.f32.partialorder %v1901_v40, 0.0004427343  ;;  %v1917_v4 = vadd.f32 1.0, %v1916_v31  ;;  %v1919_v2 = vand.u32 2147483647, %v5340_v62  ;;  %3158 = vpow2.f32 %v1415_v52  ;;  %v6523_v52 = vld [vmem:[#allocation42_spill] sm:$0xff] }
 0x225   : > { %v1900_v45 = vmul.f32 %v5333_v16, %v1899_v3  ;;  %v1908_v41 = vadd.f32 1.0, %v1907_v15  ;;  %v1910_v54 = vand.u32 2147483647, %v5367_v12  ;;  %3160 = vpow2.f32 %v1413_v9  ;;  %v3151_v24 = vpop.eup %3150  ;;  %v6524_v20 = vld [vmem:[#allocation30_spill] sm:$0xff] }
 0x226   : > { %v1897_v32 = vmul.f32 0.6931472, %v3149_v60  ;;  %v1566_v6 = vadd.f32 1.0, %v1565_v13  ;;  %v2163_v5 = vadd.f32 %v2162_v0, %v6503_v49  ;;  %vm881_vm15 = vcmp.ne.bf16.partialorder %v849_v56, 0 }
 0x227   : > { %v5427_v40 = vpop.eup %3152  ;;  %v1417_v44 = vmul.f32 1.442695, %v1294_v25  ;;  %v977_v35 = vsel %vm881_vm15, 65537, %v6425_v43  ;;  %vm882_vm0 = vcmp.ne.bf16.partialorder %v850_v57, 0  ;;  %v1918_v16 = vmul.f32 %v5340_v62, %v1917_v4 }
 0x228   : > { %v1931_v3 = vadd.f32 1.0, %v5427_v40  ;;  %v943_v55 = vsub.f32 0.0, %v4895_v36  ;;  %v1039_v8 = vunpack.c.l.b16 %v977_v35  ;;  %vm5434_vm2 = vcmp.lt.f32.partialorder %v1919_v2, 0.0004427343  ;;  %v6509_v2 = vld [vmem:[#allocation26_spill] sm:$0xff] }
 0x229   : > { %v1909_v28 = vmul.f32 %v5367_v12, %v1908_v41  ;;  %v978_v13 = vsel %vm882_vm0, 65537, %v6425_v43  ;;  %v1903_v62 = vsel %vm5418_vm14, %v1900_v45, %v1897_v32  ;;  %v1915_v60 = vmul.f32 0.6931472, %v3151_v24  ;;  %v6508_v12 = vld [vmem:[#allocation52_spill] sm:$0xff] }
 0x22a   : > { %vm5444_vm3 = vcmp.lt.f32.partialorder %v1910_v54, 0.0004427343  ;;  %v1567_v25 = vmul.f32 %v6498_v53, %v1566_v6  ;;  %v1568_v51 = vand.u32 2147483647, %v6498_v53  ;;  %3162 = vpow2.f32 %v1417_v44 }
 0x22b   : > { %v3155_v7 = vpop.eup %3154  ;;  %vm1103_vm4 = vcmp.ne.s32.totalorder %v1039_v8, 0  ;;  %v945_v0 = vsub.f32 0.0, %v6508_v12  ;;  %v1041_v56 = vunpack.c.l.b16 %v978_v13  ;;  %3164 = vlog2.f32 %v1931_v3  ;;  %v6511_v8 = vld [vmem:[#allocation62_spill] sm:$0xff] }
 0x22c   : > { %v3157_v4 = vpop.eup %3156  ;;  %v5452_v43 = vsel %vm1103_vm4, %v943_v55, %v4895_v36  ;;  %v1040_v42 = vunpack.c.h.b16 %v977_v35  ;;  %v1598_v57 = vadd.f32 1.0, %v6509_v2  ;;  %v1042_v54 = vunpack.c.h.b16 %v978_v13  ;;  %v6510_v35 = vld [vmem:[#allocation51_spill] sm:$0xff] }
 0x22d   : > { %v1564_v45 = vmul.f32 0.6931472, %v3157_v4  ;;  %v1231_v41 = vand.u32 2147483647, %v5452_v43  ;;  %vm1105_vm5 = vcmp.ne.s32.totalorder %v1041_v56, 0  ;;  %v5460_v24 = vadd.f32 %v2055_v47, %v1903_v62  ;;  %v6513_v47 = vld [vmem:[#allocation53_spill] sm:$0xff] }
 0x22e   : > { %v5456_v53 = vpop.eup %3158  ;;  %v1906_v32 = vmul.f32 0.6931472, %v3155_v7  ;;  %vm1569_vm6 = vcmp.lt.f32.partialorder %v1568_v51, 0.0004427343  ;;  %3166 = vlog2.f32 %v1598_v57  ;;  %v1934_v36 = vmul.f32 -0.5, %v5427_v40 }
 0x22f   : > { %v5462_v6 = vpop.eup %3160  ;;  %v1949_v49 = vadd.f32 1.0, %v5456_v53  ;;  %v1570_v44 = vsel %vm1569_vm6, %v1567_v25, %v1564_v45  ;;  %v944_v3 = vsub.f32 0.0, %v6510_v35  ;;  %v6512_v13 = vmax.f32 %v6511_v8, 0.0 }
 0x230   : > { %v1940_v55 = vadd.f32 1.0, %v5462_v6  ;;  %v5471_v48 = vsel %vm1105_vm5, %v945_v0, %v6508_v12  ;;  %v946_v62 = vsub.f32 0.0, %v6513_v47  ;;  %v1295_v51 = vsub.f32 0.0, %v1231_v41 }
 0x231   : > { %v2082_v56 = vadd.f32 %v6512_v13, %v1570_v44  ;;  %3168 = vlog2.f32 %v1949_v49  ;;  %vm1104_vm7 = vcmp.ne.s32.totalorder %v1040_v42, 0  ;;  %vm1106_vm8 = vcmp.ne.s32.totalorder %v1042_v54, 0 }
 0x232   : > { %v1921_v7 = vsel %vm5434_vm2, %v1918_v16, %v1915_v60  ;;  %v1937_v25 = vand.u32 2147483647, %v5427_v40  ;;  %3170 = vlog2.f32 %v1940_v55  ;;  %v1912_v57 = vsel %vm5444_vm3, %v1909_v28, %v1906_v32 }
 0x233   : > { %v2164_v4 = vadd.f32 %v2163_v5, %v2082_v56  ;;  %v1935_v45 = vadd.f32 1.0, %v1934_v36  ;;  %v1419_v44 = vmul.f32 1.442695, %v1295_v51  ;;  %v1233_v12 = vand.u32 2147483647, %v5471_v48 }
 0x234   : > { %v1952_v0 = vmul.f32 -0.5, %v5456_v53  ;;  %v5482_v42 = vsel %vm1104_vm7, %v944_v3, %v6510_v35  ;;  %v5485_v15 = vsel %vm1106_vm8, %v946_v62, %v6513_v47  ;;  %v1601_v16 = vmul.f32 -0.5, %v6509_v2  ;;  %v5488_v60 = vpop.eup %3162 }
 0x235   : > { %2165 = vadd.xlane.f32.xlu1 %v2164_v4  ;;  %6514 = vst [vmem:[#allocation28_spill] sm:$0xff] %v5485_v15  ;;  %v6515_v5 = vmax.f32 %v5256_v46, 0.0  ;;  %3172 = vpow2.f32 %v1419_v44  ;;  %v1297_v9 = vsub.f32 0.0, %v1233_v12  ;;  %v1232_v41 = vand.u32 2147483647, %v5482_v42  ;;  %v3165_v54 = vpop.eup %3164 }
 0x236   : > { %v6516_v32 = vmax.f32 %v5286_v19, 0.0  ;;  %vm5499_vm9 = vcmp.lt.f32.partialorder %v1937_v25, 0.0004427343  ;;  %v1955_v35 = vand.u32 2147483647, %v5456_v53  ;;  %v1602_v46 = vadd.f32 1.0, %v1601_v16 }
 0x237   : > { %v5492_v28 = vadd.f32 %v6515_v5, %v1921_v7  ;;  %v1234_v3 = vand.u32 2147483647, %v5485_v15  ;;  %v1936_v55 = vmul.f32 %v5427_v40, %v1935_v45  ;;  %v1423_v8 = vmul.f32 1.442695, %v1297_v9  ;;  %v6519_v7 = vld [vmem:[#allocation39_spill] sm:$0xff]  ;;  %v6521_v40 = vld [vmem:[#allocation40_spill] sm:$0xff] }
 0x238   : > { %v5497_v36 = vadd.f32 %v6516_v32, %v1912_v57  ;;  %v1296_v13 = vsub.f32 0.0, %v1232_v41  ;;  %v1604_v56 = vand.u32 2147483647, %v6509_v2  ;;  %v3167_v47 = vpop.eup %3166  ;;  %v1953_v62 = vadd.f32 1.0, %v1952_v0  ;;  %v6520_v25 = vld [vmem:[#allocation27_spill] sm:$0xff]  ;;  %v6522_v5 = vld [vmem:[#allocation29_spill] sm:$0xff] }
 0x239   : > { %v1943_v19 = vmul.f32 -0.5, %v5462_v6  ;;  %v1946_v51 = vand.u32 2147483647, %v5462_v6  ;;  %v2167_v4 = vadd.f32 %v6520_v25, %v6519_v7  ;;  %3174 = vpow2.f32 %v1423_v8 }
 0x23a   : > { %v1421_v57 = vmul.f32 1.442695, %v1296_v13  ;;  %v1600_v44 = vmul.f32 0.6931472, %v3167_v47  ;;  %v1603_v12 = vmul.f32 %v6509_v2, %v1602_v46  ;;  %v1933_v16 = vmul.f32 0.6931472, %v3165_v54 }
 0x23b   : > { %vm1605_vm10 = vcmp.lt.f32.partialorder %v1604_v56, 0.0004427343  ;;  %v2168_v45 = vadd.f32 %v2167_v4, %v6521_v40  ;;  %v1634_v9 = vadd.f32 1.0, %v6522_v5  ;;  %v3169_v41 = vpop.eup %3168  ;;  %v1298_v0 = vsub.f32 0.0, %v1234_v3  ;;  %v6527_v54 = vld [vmem:[#allocation64_spill] sm:$0xff] }
 0x23c   : > { %3176 = vpow2.f32 %v1421_v57  ;;  %v1606_v32 = vsel %vm1605_vm10, %v1603_v12, %v1600_v44  ;;  %v2172_v31 = vadd.f32 %v6524_v20, %v6523_v52  ;;  %v3171_v15 = vpop.eup %3170  ;;  %vm5516_vm11 = vcmp.lt.f32.partialorder %v1955_v35, 0.0004427343  ;;  %v6531_v3 = vld [vmem:[#allocation44_spill] sm:$0xff] }
 0x23d   : > { %v1944_v13 = vadd.f32 1.0, %v1943_v19  ;;  %v2063_v2 = vmax.f32 %v5452_v43, 0.0  ;;  %v6528_v46 = vmax.f32 %v6527_v54, 0.0  ;;  %v1954_v47 = vmul.f32 %v5456_v53, %v1953_v62  ;;  %v6532_v19 = vld [vmem:[#allocation47_spill] sm:$0xff]  ;;  %v6534_v54 = vld [vmem:[#allocation34_spill] sm:$0xff]  ;;  %v6558_v53 = vld [vmem:[#allocation60_spill] sm:$0xff] }
 0x23e   : > { %vm5524_vm12 = vcmp.lt.f32.partialorder %v1946_v51, 0.0004427343  ;;  %3178 = vlog2.f32 %v1634_v9  ;;  %v5529_v20 = vadd.f32 %v2172_v31, %v6531_v3  ;;  %v1951_v52 = vmul.f32 0.6931472, %v3169_v41 }
 0x23f   : > { %v2086_v56 = vadd.f32 %v6528_v46, %v1606_v32  ;;  %v1637_v25 = vmul.f32 -0.5, %v6522_v5  ;;  %v1670_v4 = vadd.f32 1.0, %v6532_v19  ;;  %v3173_v57 = vpop.eup %3172  ;;  %v1939_v44 = vsel %vm5499_vm9, %v1936_v55, %v1933_v16  ;;  %v6533_v32 = vld [vmem:[#allocation48_spill] sm:$0xff]  ;;  %v6536_v46 = vld [vmem:[#allocation50_spill] sm:$0xff] }
 0x240   : > { %v1942_v12 = vmul.f32 0.6931472, %v3171_v15  ;;  %v1425_v62 = vmul.f32 1.442695, %v1298_v0  ;;  %v1967_v51 = vadd.f32 1.0, %v3173_v57  ;;  %v1970_v40 = vmul.f32 -0.5, %v3173_v57 }
 0x241   : > { %v2169_v35 = vadd.f32 %v2168_v45, %v2086_v56  ;;  %v1640_v31 = vand.u32 2147483647, %v6522_v5  ;;  %v1673_v9 = vmul.f32 -0.5, %v6532_v19  ;;  %v1945_v45 = vmul.f32 %v5462_v6, %v1944_v13 }
 0x242   : > { %3180 = vlog2.f32 %v1670_v4  ;;  %v2177_v49 = vadd.f32 %v6534_v54, %v6533_v32  ;;  %v6535_v15 = vmax.f32 %v5353_v34, 0.0  ;;  %v1957_v16 = vsel %vm5516_vm11, %v1954_v47, %v1951_v52 }
 0x243   : > { %2170 = vadd.xlane.f32.xlu0 %v2169_v35  ;;  %v1638_v0 = vadd.f32 1.0, %v1637_v25  ;;  %v1706_v56 = vadd.f32 1.0, %v6536_v46  ;;  %v5549_v3 = vpop.eup %3174  ;;  %v1948_v6 = vsel %vm5524_vm12, %v1945_v45, %v1942_v12  ;;  %3182 = vlog2.f32 %v1967_v51  ;;  %v6537_v35 = vld [vmem:[#allocation46_spill] sm:$0xff] }
 0x244   : > { %v5544_v55 = vadd.f32 %v6535_v15, %v1939_v44  ;;  %v1676_v13 = vand.u32 2147483647, %v6532_v19  ;;  %v2178_v4 = vadd.f32 %v2177_v49, %v6537_v35  ;;  %v1971_v32 = vadd.f32 1.0, %v1970_v40 }
 0x245   : > { %3184 = vpow2.f32 %v1425_v62  ;;  %vm5555_vm13 = vcmp.lt.f32.partialorder %v1640_v31, 0.0004427343  ;;  %v1674_v8 = vadd.f32 1.0, %v1673_v9  ;;  %v1985_v52 = vadd.f32 1.0, %v5549_v3 }
 0x246   : > { %v5559_v47 = vpop.eup %3176  ;;  %3186 = vlog2.f32 %v1706_v56  ;;  %v1709_v7 = vmul.f32 -0.5, %v6536_v46  ;;  %v2182_v25 = vadd.f32 %v4968_v58, %v4928_v10  ;;  %v6540_v44 = vmax.f32 %v5386_v59, 0.0  ;;  %v6544_v56 = vld [vmem:[#allocation55_spill] sm:$0xff] }
 0x247   : > { %v6541_v62 = vmax.f32 %v5394_v18, 0.0  ;;  %v1976_v40 = vadd.f32 1.0, %v5559_v47  ;;  %v1639_v31 = vmul.f32 %v6522_v5, %v1638_v0  ;;  %v1973_v45 = vand.u32 2147483647, %v3173_v57 }
 0x248   : > { %v5567_v12 = vadd.f32 %v6540_v44, %v1957_v16  ;;  %v3179_v9 = vpop.eup %3178  ;;  %v1988_v54 = vmul.f32 -0.5, %v5549_v3  ;;  %vm5576_vm14 = vcmp.lt.f32.partialorder %v1676_v13, 0.0004427343  ;;  %v5581_v10 = vadd.f32 %v2182_v25, %v4962_v39  ;;  %v6546_v13 = vld [vmem:[#allocation59_spill] sm:$0xff] }
 0x249   : > { %v5571_v51 = vadd.f32 %v6541_v62, %v1948_v6  ;;  %3188 = vlog2.f32 %v1976_v40  ;;  %v1636_v58 = vmul.f32 0.6931472, %v3179_v9  ;;  %v1675_v59 = vmul.f32 %v6532_v19, %v1674_v8  ;;  %v6545_v6 = vld [vmem:[#allocation58_spill] sm:$0xff]  ;;  %v6551_v40 = vld [vmem:[#allocation57_spill] sm:$0xff] }
 0x24a   : > { %v1742_v18 = vadd.f32 1.0, %v4994_v1  ;;  %v5585_v15 = vmul.f32 %v3173_v57, %v1971_v32  ;;  %3190 = vlog2.f32 %v1985_v52  ;;  %v1710_v5 = vadd.f32 1.0, %v1709_v7  ;;  %v6549_v52 = vld [vmem:[#allocation67_spill] sm:$0xff] }
 0x24b   : > { %v1712_v16 = vand.u32 2147483647, %v6536_v46  ;;  %v1642_v0 = vsel %vm5555_vm13, %v1639_v31, %v1636_v58  ;;  %v2187_v39 = vadd.f32 %v6545_v6, %v6544_v56  ;;  %v1778_v35 = vadd.f32 1.0, %v6546_v13 }
 0x24c   : > { %3192 = vlog2.f32 %v1742_v18  ;;  %v3181_v25 = vpop.eup %3180  ;;  %vm5593_vm15 = vcmp.lt.f32.partialorder %v1973_v45, 0.0004427343  ;;  %v1989_v57 = vadd.f32 1.0, %v1988_v54  ;;  %v1991_v32 = vand.u32 2147483647, %v5549_v3 }
 0x24d   : > { %v1979_v8 = vmul.f32 -0.5, %v5559_v47  ;;  %v6550_v7 = vmax.f32 %v6549_v52, 0.0  ;;  %v1672_v44 = vmul.f32 0.6931472, %v3181_v25  ;;  %v1745_v62 = vmul.f32 -0.5, %v4994_v1  ;;  %v3183_v9 = vpop.eup %3182  ;;  %v6555_v25 = vld [vmem:[#allocation71_spill] sm:$0xff] }
 0x24e   : > { %v5603_v31 = vadd.f32 %v2187_v39, %v6551_v40  ;;  %3194 = vlog2.f32 %v1778_v35  ;;  %v1982_v45 = vand.u32 2147483647, %v5559_v47  ;;  %v1711_v54 = vmul.f32 %v6536_v46, %v1710_v5  ;;  %v6554_v39 = vld [vmem:[#allocation56_spill] sm:$0xff] }
 0x24f   : > { %v2090_v34 = vadd.f32 %v6550_v7, %v1642_v0  ;;  %vm5608_vm0 = vcmp.lt.f32.partialorder %v1712_v16, 0.0004427343  ;;  %v5612_v56 = vpop.eup %3184  ;;  %v1678_v0 = vsel %vm5576_vm14, %v1675_v59, %v1672_v44  ;;  %v1781_v6 = vmul.f32 -0.5, %v6546_v13  ;;  %v6556_v5 = vld [vmem:[#allocation36_spill] sm:$0xff] }
 0x250   : > { %v2192_v35 = vadd.f32 %v6554_v39, %v5078_v23  ;;  %v1814_v52 = vadd.f32 1.0, %v6555_v25  ;;  %v3187_v7 = vpop.eup %3186  ;;  %v1980_v46 = vadd.f32 1.0, %v1979_v8  ;;  %v6557_v16 = vmax.f32 %v6556_v5, 0.0 }
 0x251   : > { %v2174_v58 = vadd.f32 %v5529_v20, %v2090_v34  ;;  %v5621_v20 = vmul.f32 %v5549_v3, %v1989_v57  ;;  %v1748_v40 = vand.u32 2147483647, %v4994_v1  ;;  %v1969_v49 = vmul.f32 0.6931472, %v3183_v9 }
 0x252   : > { %v2094_v34 = vadd.f32 %v6557_v16, %v1678_v0  ;;  %v1708_v59 = vmul.f32 0.6931472, %v3187_v7  ;;  %v1746_v44 = vadd.f32 1.0, %v1745_v62  ;;  %v2193_v41 = vadd.f32 %v2192_v35, %v6558_v53  ;;  %v6563_v0 = vld [vmem:[#allocation43_spill] sm:$0xff] }
 0x253   : > { %2175 = vadd.xlane.f32.xlu1 %v2174_v58  ;;  %vm5627_vm2 = vcmp.lt.f32.partialorder %v1982_v45, 0.0004427343  ;;  %v1784_v3 = vand.u32 2147483647, %v6546_v13  ;;  %3196 = vlog2.f32 %v1814_v52  ;;  %v3189_v57 = vpop.eup %3188  ;;  %vm5632_vm3 = vcmp.lt.f32.partialorder %v1991_v32, 0.0004427343 }
 0x254   : > { %v2179_v39 = vadd.f32 %v2178_v4, %v2094_v34  ;;  %v1714_v9 = vsel %vm5608_vm0, %v1711_v54, %v1708_v59  ;;  %v1782_v58 = vadd.f32 1.0, %v1781_v6  ;;  %v2197_v53 = vadd.f32 %v5223_v26, %v5206_v50  ;;  %v3191_v45 = vpop.eup %3190  ;;  %v6569_v59 = vld [vmem:[#allocation31_spill] sm:$0xff] }
 0x255   : > { %v1850_v62 = vadd.f32 1.0, %v5240_v11  ;;  %v1981_v4 = vmul.f32 %v5559_v47, %v1980_v46  ;;  %v6564_v35 = vmax.f32 %v6563_v0, 0.0  ;;  %vm5644_vm4 = vcmp.lt.f32.partialorder %v1748_v40, 0.0004427343 }
 0x256   : > { %2180 = vadd.xlane.f32.xlu0 %v2179_v39  ;;  %v1817_v18 = vmul.f32 -0.5, %v6555_v25  ;;  %v3193_v54 = vpop.eup %3192  ;;  %v1975_v50 = vsel %vm5593_vm15, %v5585_v15, %v1969_v49  ;;  %v1747_v26 = vmul.f32 %v4994_v1, %v1746_v44  ;;  %v2198_v6 = vadd.f32 %v2197_v53, %v5210_v17  ;;  %v6571_v53 = vld [vmem:[#allocation35_spill] sm:$0xff] }
 0x257   : > { %v2098_v52 = vadd.f32 %v6564_v35, %v1714_v9  ;;  %3198 = vlog2.f32 %v1850_v62  ;;  %v1978_v47 = vmul.f32 0.6931472, %v3189_v57  ;;  %v1744_v46 = vmul.f32 0.6931472, %v3193_v54 }
 0x258   : > { %v1853_v5 = vmul.f32 -0.5, %v5240_v11  ;;  %v3195_v16 = vpop.eup %3194  ;;  %v1783_v34 = vmul.f32 %v6546_v13, %v1782_v58  ;;  %vm5657_vm5 = vcmp.lt.f32.partialorder %v1784_v3, 0.0004427343  ;;  %v2202_v15 = vadd.f32 %v5281_v21, %v5269_v38 }
 0x259   : > { %v2184_v7 = vadd.f32 %v5581_v10, %v2098_v52  ;;  %v1886_v1 = vadd.f32 1.0, %v5312_v29  ;;  %v1987_v17 = vmul.f32 0.6931472, %v3191_v45  ;;  %v1750_v10 = vsel %vm5644_vm4, %v1747_v26, %v1744_v46 }
 0x25a   : > { %v1780_v19 = vmul.f32 0.6931472, %v3195_v16  ;;  %v1818_v49 = vadd.f32 1.0, %v1817_v18  ;;  %v6570_v44 = vmax.f32 %v6569_v59, 0.0  ;;  %v1820_v13 = vand.u32 2147483647, %v6555_v25 }
 0x25b   : > { %2185 = vadd.xlane.f32.xlu1 %v2184_v7  ;;  %v2203_v3 = vadd.f32 %v2202_v15, %v5294_v33  ;;  %3200 = vlog2.f32 %v1886_v1  ;;  %v1984_v38 = vsel %vm5627_vm2, %v1981_v4, %v1978_v47  ;;  %v1854_v57 = vadd.f32 1.0, %v1853_v5  ;;  %v6577_v15 = vld [vmem:[#allocation49_spill] sm:$0xff] }
 0x25c   : > { %v2102_v39 = vadd.f32 %v6570_v44, %v1750_v10  ;;  %v1786_v21 = vsel %vm5657_vm5, %v1783_v34, %v1780_v19  ;;  %v1889_v9 = vmul.f32 -0.5, %v5312_v29  ;;  %v6572_v62 = vmax.f32 %v6571_v53, 0.0 }
 0x25d   : > { %v2207_v0 = vadd.f32 %v5413_v61, %v5357_v22  ;;  %v1922_v33 = vadd.f32 1.0, %v5402_v37  ;;  %v3197_v35 = vpop.eup %3196  ;;  %v2127_v23 = vadd.f32 %v2063_v2, %v1975_v50  ;;  %v1993_v4 = vsel %vm5632_vm3, %v5621_v20, %v1987_v17 }
 0x25e   : > { %v2189_v58 = vadd.f32 %v5603_v31, %v2102_v39  ;;  %v2106_v45 = vadd.f32 %v6572_v62, %v1786_v21  ;;  %v1819_v52 = vmul.f32 %v6555_v25, %v1818_v49  ;;  %v1856_v31 = vand.u32 2147483647, %v5240_v11 }
 0x25f   : > { %v1816_v18 = vmul.f32 0.6931472, %v3197_v35  ;;  %v2208_v54 = vadd.f32 %v2207_v0, %v5408_v27  ;;  %3202 = vlog2.f32 %v1922_v33  ;;  %v6573_v22 = vmax.f32 %v5482_v42, 0.0  ;;  %v6574_v27 = vld [vmem:[#allocation54_spill] sm:$0xff] }
 0x260   : > { %2190 = vadd.xlane.f32.xlu0 %v2189_v58  ;;  %v2194_v32 = vadd.f32 %v2193_v41, %v2106_v45  ;;  %vm1821_vm6 = vcmp.lt.f32.partialorder %v1820_v13, 0.0004427343  ;;  %v2212_v43 = vadd.f32 %v5497_v36, %v5460_v24  ;;  %v1958_v2 = vadd.f32 1.0, %v5488_v60 }
 0x261   : > { %v2128_v61 = vadd.f32 %v6573_v22, %v1984_v38  ;;  %v3199_v20 = vpop.eup %3198  ;;  %v1822_v25 = vsel %vm1821_vm6, %v1819_v52, %v1816_v18  ;;  %v1855_v8 = vmul.f32 %v5240_v11, %v1854_v57  ;;  %v1890_v50 = vadd.f32 1.0, %v1889_v9  ;;  %v6579_v18 = vld [vmem:[#allocation28_spill] sm:$0xff] }
 0x262   : > { %2195 = vadd.xlane.f32.xlu1 %v2194_v32  ;;  %v2217_v41 = vadd.f32 %v5571_v51, %v5544_v55  ;;  %v6575_v26 = vmax.f32 %v6574_v27, 0.0  ;;  %v1852_v42 = vmul.f32 0.6931472, %v3199_v20  ;;  %v1925_v7 = vmul.f32 -0.5, %v5402_v37 }
 0x263   : > { %v2213_v46 = vadd.f32 %v2212_v43, %v5492_v28  ;;  %vm1857_vm7 = vcmp.lt.f32.partialorder %v1856_v31, 0.0004427343  ;;  %v1892_v24 = vand.u32 2147483647, %v5312_v29  ;;  %3204 = vlog2.f32 %v1958_v2  ;;  %v2131_v2 = vld [vmem:[#allocation2] sm:$0xff] }
 0x264   : > { %v2110_v47 = vadd.f32 %v6575_v26, %v1822_v25  ;;  %v2218_v36 = vadd.f32 %v2217_v41, %v5567_v12  ;;  %v2054_v11 = vmax.f32 %v5195_v30, 0.0  ;;  %v1858_v16 = vsel %vm1857_vm7, %v1855_v8, %v1852_v42  ;;  %v2132_v25 = vld [vmem:[#allocation2 + $0x8] sm:$0xff]  ;;  %v2134_v26 = vld [vmem:[#allocation2 + $0x18] sm:$0xff] }
 0x265   : > { %v1994_v55 = vadd.f32 1.0, %v5612_v56  ;;  %v3201_v51 = vpop.eup %3200  ;;  %v6576_v34 = vmax.f32 %v5471_v48, 0.0  ;;  %v6578_v1 = vmax.f32 %v6577_v15, 0.0  ;;  %v1891_v28 = vmul.f32 %v5312_v29, %v1890_v50 }
 0x266   : > { %v2199_v5 = vadd.f32 %v2198_v6, %v2110_v47  ;;  %v2222_v10 = vadd.f32 %v2128_v61, %v2127_v23  ;;  %v1888_v19 = vmul.f32 0.6931472, %v3201_v51  ;;  %v1926_v49 = vadd.f32 1.0, %v1925_v7  ;;  %v2135_v7 = vld [vmem:[#allocation2 + $0x20] sm:$0xff] }
 0x267   : > { %v2129_v40 = vadd.f32 %v6576_v34, %v1993_v4  ;;  %v2114_v17 = vadd.f32 %v6578_v1, %v1858_v16  ;;  %v1961_v12 = vmul.f32 -0.5, %v5488_v60  ;;  %3206 = vlog2.f32 %v1994_v55  ;;  %v2137_v16 = vld [vmem:[#allocation2 + $0x30] sm:$0xff]  ;;  %v2138_v34 = vld [vmem:[#allocation2 + $0x38] sm:$0xff]  ;;  %v2139_v1 = vld [vmem:[#allocation2 + $0x40] sm:$0xff] }
 0x268   : > { %2200 = vadd.xlane.f32.xlu0 %v2199_v5  ;;  %vm1893_vm8 = vcmp.lt.f32.partialorder %v1892_v24, 0.0004427343  ;;  %v1928_v6 = vand.u32 2147483647, %v5402_v37  ;;  %v1997_v13 = vmul.f32 -0.5, %v5612_v56  ;;  %v1927_v29 = vmul.f32 %v5402_v37, %v1926_v49 }
 0x269   : > { %v2204_v30 = vadd.f32 %v2203_v3, %v2114_v17  ;;  %v2223_v59 = vadd.f32 %v2222_v10, %v2129_v40  ;;  %v1894_v44 = vsel %vm1893_vm8, %v1891_v28, %v1888_v19  ;;  %v3203_v48 = vpop.eup %3202  ;;  %v1962_v21 = vadd.f32 1.0, %v1961_v12  ;;  %v2140_v28 = vld [vmem:[#allocation2 + $0x48] sm:$0xff]  ;;  %v2141_v12 = vld [vmem:[#allocation2 + $0x50] sm:$0xff] }
 0x26a   : > { %v2118_v39 = vadd.f32 %v2054_v11, %v1894_v44  ;;  %v1924_v38 = vmul.f32 0.6931472, %v3203_v48  ;;  %v2058_v57 = vmax.f32 %v5290_v63, 0.0  ;;  %vm1929_vm9 = vcmp.lt.f32.partialorder %v1928_v6, 0.0004427343 }
 0x26b   : > { %2205 = vadd.xlane.f32.xlu1 %v2204_v30  ;;  %v1964_v3 = vand.u32 2147483647, %v5488_v60  ;;  %v1998_v45 = vadd.f32 1.0, %v1997_v13  ;;  %v1963_v33 = vmul.f32 %v5488_v60, %v1962_v21  ;;  %v2000_v35 = vand.u32 2147483647, %v5612_v56 }
 0x26c   : > { %v2209_v9 = vadd.f32 %v2208_v54, %v2118_v39  ;;  %v1930_v58 = vsel %vm1929_vm9, %v1927_v29, %v1924_v38  ;;  %v2062_v23 = vmax.f32 %v5399_v14, 0.0  ;;  %v2066_v54 = vmax.f32 %v6579_v18, 0.0  ;;  %v2143_v39 = vld [vmem:[#allocation2 + $0x60] sm:$0xff]  ;;  %v2144_v29 = vld [vmem:[#allocation2 + $0x68] sm:$0xff] }
 0x26d   : > { %v3205_v53 = vpop.eup %3204  ;;  %v2122_v62 = vadd.f32 %v2058_v57, %v1930_v58  ;;  %vm1965_vm10 = vcmp.lt.f32.partialorder %v1964_v3, 0.0004427343  ;;  %v1999_v32 = vmul.f32 %v5612_v56, %v1998_v45  ;;  %vm2001_vm11 = vcmp.lt.f32.partialorder %v2000_v35, 0.0004427343  ;;  %v2133_v56 = vld [vmem:[#allocation2 + $0x10] sm:$0xff] }
 0x26e   : > { %2210 = vadd.xlane.f32.xlu0 %v2209_v9  ;;  %v1960_v0 = vmul.f32 0.6931472, %v3205_v53  ;;  %vm2243_vm12 = vcmask 7168   ;;  %v2145_v9 = vld [vmem:[#allocation2 + $0x70] sm:$0xff]  ;;  %v2146_v53 = vld [vmem:[#allocation2 + $0x78] sm:$0xff] }
 0x26f   : > { %v2214_v37 = vadd.f32 %v2213_v46, %v2122_v62  ;;  %v6581_v35 = vld [vmem:[#allocation11_spill] sm:$0xff] (!%p2866_p7) }
 0x270   : > { %v1966_v63 = vsel %vm1965_vm10, %v1963_v33, %v1960_v0  ;;  %v6580_v0 = vld [vmem:[#allocation10_spill] sm:$0xff] (!%p2866_p7) }
 0x271   : > { %v3207_v4 = vpop.eup %3206  ;;  %2215 = vadd.xlane.f32.xlu1 %v2214_v37  ;;  %v2126_v52 = vadd.f32 %v2062_v23, %v1966_v63  ;;  %v2296_v33 = vmul.f32 (!%p2866_p7), 0.5, %v6580_v0  ;;  %v2297_v23 = vmul.f32 (!%p2866_p7), 0.5, %v6581_v35  ;;  %v6582_v37 = vld [vmem:[#allocation14_spill] sm:$0xff] (!%p2866_p7)  ;;  %v6583_v63 = vld [vmem:[#allocation12_spill] sm:$0xff] (!%p2866_p7) }
 0x272   : > { %v1996_v31 = vmul.f32 0.6931472, %v3207_v4  ;;  %v2300_v4 = vmul.f32 (!%p2866_p7), 0.5, %v6582_v37 }
 0x273   : > { %v2219_v22 = vadd.f32 %v2218_v36, %v2126_v52  ;;  %v2136_v36 = vld [vmem:[#allocation2 + $0x28] sm:$0xff]  ;;  %v2298_v52 = vmul.f32 (!%p2866_p7), 0.5, %v6583_v63 }
 0x274   : > { %v2002_v61 = vsel %vm2001_vm11, %v1999_v32, %v1996_v31  ;;  %v5745_v31 = vld [vmem:[%s6029_s3] sm:$0xff] (!%p2866_p7) }
 0x275   : > { %v2130_v43 = vadd.f32 %v2066_v54, %v2002_v61  ;;  %2220 = vadd.xlane.f32.xlu0 %v2219_v22  ;;  %v6584_v32 = vld [vmem:[#allocation13_spill] sm:$0xff] (!%p2866_p7)  ;;  %v2312_v54 = vmul.f32 (!%p2866_p7), %v2296_v33, %v6580_v0  ;;  %v2313_v22 = vmul.f32 (!%p2866_p7), %v2297_v23, %v6581_v35  ;;  %v2314_v61 = vmul.f32 (!%p2866_p7), %v2298_v52, %v6583_v63 }
 0x276   : > { %v2299_v18 = vmul.f32 (!%p2866_p7), 0.5, %v6584_v32  ;;  %v2472_v52 = vsub.f32 (!%p2866_p7), -0.9189385, %v5745_v31 }
 0x277   : > { %v2224_v60 = vadd.f32 %v2223_v59, %v2130_v43  ;;  %v2142_v59 = vld [vmem:[#allocation2 + $0x58] sm:$0xff]  ;;  %v6585_v43 = vld [vmem:[#allocation15_spill] sm:$0xff] (!%p2866_p7) }
 0x279   : > { %2225 = vadd.xlane.f32.xlu1 %v2224_v60  ;;  %v2301_v60 = vmul.f32 (!%p2866_p7), 0.5, %v6585_v43 }
 0x27f   : > { %v2151_v14 = vpop.xlane.xlu0 %2150 }
 0x280   : > { %v2227_v20 = vsub.f32 %v2131_v2, %v2151_v14  ;;  %v2315_v2 = vmul.f32 (!%p2866_p7), %v2299_v18, %v6584_v32  ;;  %v2408_v14 = vsub.f32 (!%p2866_p7), 0.0, %v5745_v31 }
 0x282   : > { %2244 = vst.msk [vmem:[#allocation2] sm:$0xff] %vm2243_vm12, %v2227_v20  ;;  %v2328_v20 = vsub.f32 (!%p2866_p7), -0.9189385, %v2312_v54  ;;  %v2268_v54 = vld [vmem:[%s6028_s2 + $0x20] sm:$0xff] (!%p2866_p7) }
 0x297   : > { %v2156_v8 = vpop.xlane.xlu0 %2155 }
 0x298   : > { %v2228_v50 = vsub.f32 %v2132_v25, %v2156_v8  ;;  %v2329_v25 = vsub.f32 (!%p2866_p7), -0.9189385, %v2313_v22  ;;  %v2316_v8 = vmul.f32 (!%p2866_p7), %v2300_v4, %v6582_v37 }
 0x29a   : > { %2245 = vst.msk [vmem:[#allocation2 + $0x8] sm:$0xff] %vm2243_vm12, %v2228_v50  ;;  %v2330_v50 = vsub.f32 (!%p2866_p7), -0.9189385, %v2314_v61 }
 0x2af   : > { %v2161_v41 = vpop.xlane.xlu1 %2160 }
 0x2b0   : > { %v2229_v27 = vsub.f32 %v2133_v56, %v2161_v41  ;;  %v2331_v56 = vsub.f32 (!%p2866_p7), -0.9189385, %v2315_v2  ;;  %v5758_v41 = vld [vmem:[%s6029_s3 + $0x8] sm:$0xff] (!%p2866_p7) }
 0x2b1   : > { %v2473_v61 = vsub.f32 (!%p2866_p7), -0.9189385, %v5758_v41 }
 0x2b2   : > { %2246 = vst.msk [vmem:[#allocation2 + $0x10] sm:$0xff] %vm2243_vm12, %v2229_v27  ;;  %v2344_v27 = vsel (!%p2866_p7), %vm448_vm1, %v2328_v20, 0.0 }
 0x2b3   : > { %2345 = vadd.xlane.f32.xlu0 (!%p2866_p7), %v2344_v27  ;;  %v2271_v27 = vld [vmem:[%s6028_s2 + $0x38] sm:$0xff] (!%p2866_p7) }
 0x2c2   : > { %v2166_v47 = vpop.xlane.xlu1 %2165 }
 0x2c3   : > { %v2230_v42 = vsub.f32 %v2134_v26, %v2166_v47  ;;  %v6586_v26 = vld [vmem:[#allocation16_spill] sm:$0xff] (!%p2866_p7) }
 0x2c4   : > { %v2302_v47 = vmul.f32 (!%p2866_p7), 0.5, %v6586_v26 }
 0x2c5   : > { %2247 = vst.msk [vmem:[#allocation2 + $0x18] sm:$0xff] %vm2243_vm12, %v2230_v42  ;;  %v5765_v42 = vld [vmem:[%s6029_s3 + $0x10] sm:$0xff] (!%p2866_p7) }
 0x2d0   : > { %v2171_v46 = vpop.xlane.xlu0 %2170 }
 0x2d1   : > { %v2231_v24 = vsub.f32 %v2135_v7, %v2171_v46  ;;  %v2350_v7 = vsel (!%p2866_p7), %vm448_vm1, %v2330_v50, 0.0  ;;  %v2317_v46 = vmul.f32 (!%p2866_p7), %v2301_v60, %v6585_v43  ;;  %v2269_v60 = vld [vmem:[%s6028_s2 + $0x28] sm:$0xff] (!%p2866_p7)  ;;  %v2396_v50 = vsub.f32 (!%p2866_p7), %v6582_v37, %v2268_v54 }
 0x2d2   : > { %2351 = vadd.xlane.f32.xlu1 (!%p2866_p7), %v2350_v7  ;;  %v2273_v54 = vld [vmem:[%s6028_s2 + $0x48] sm:$0xff] (!%p2866_p7) }
 0x2d3   : > { %2248 = vst.msk [vmem:[#allocation2 + $0x20] sm:$0xff] %vm2243_vm12, %v2231_v24  ;;  %v2424_v24 = vmul.f32 (!%p2866_p7), 1.442695, %v2408_v14 }
 0x2d5   : > { %3208 = vpow2.f32 (!%p2866_p7), %v2424_v24 }
 0x2df   : > { %v3209_v22 = vpop.eup (!%p2866_p7), %3208 }
 0x2e0   : > { %v2176_v11 = vpop.xlane.xlu1 %2175 }
 0x2e1   : > { %v2232_v5 = vsub.f32 %v2136_v36, %v2176_v11  ;;  %v5772_v36 = vld [vmem:[%s6029_s3 + $0x18] sm:$0xff] (!%p2866_p7)  ;;  %v2347_v11 = vsel (!%p2866_p7), %vm448_vm1, %v2329_v25, 0.0  ;;  %v2270_v25 = vld [vmem:[%s6028_s2 + $0x30] sm:$0xff] (!%p2866_p7) }
 0x2e2   : > { %2348 = vadd.xlane.f32.xlu0 (!%p2866_p7), %v2347_v11  ;;  %v2475_v20 = vsub.f32 (!%p2866_p7), -0.9189385, %v5772_v36  ;;  %v2398_v37 = vsub.f32 (!%p2866_p7), %v6586_v26, %v2270_v25 }
 0x2e3   : > { %2249 = vst.msk [vmem:[#allocation2 + $0x28] sm:$0xff] %vm2243_vm12, %v2232_v5  ;;  %v2181_v55 = vpop.xlane.xlu0 %2180  ;;  %v2332_v5 = vsub.f32 (!%p2866_p7), -0.9189385, %v2316_v8  ;;  %v5851_v8 = vld [vmem:[%s6029_s3 + $0x50] sm:$0xff] (!%p2866_p7) }
 0x2e4   : > { %v2233_v51 = vsub.f32 %v2137_v16, %v2181_v55  ;;  %v2409_v16 = vsub.f32 (!%p2866_p7), 0.0, %v5758_v41  ;;  %v5779_v55 = vld [vmem:[%s6029_s3 + $0x20] sm:$0xff] (!%p2866_p7) }
 0x2e5   : > { %v2476_v7 = vsub.f32 (!%p2866_p7), -0.9189385, %v5779_v55 }
 0x2e6   : > { %2250 = vst.msk [vmem:[#allocation2 + $0x30] sm:$0xff] %vm2243_vm12, %v2233_v51  ;;  %v2353_v51 = vsel (!%p2866_p7), %vm448_vm1, %v2331_v56, 0.0  ;;  %v6587_v56 = vld [vmem:[#allocation17_spill] sm:$0xff] (!%p2866_p7) }
 0x2e7   : > { %2354 = vadd.xlane.f32.xlu1 (!%p2866_p7), %v2353_v51  ;;  %v2303_v41 = vmul.f32 (!%p2866_p7), 0.5, %v6587_v56 }
 0x2e8   : > { %v2186_v40 = vpop.xlane.xlu1 %2185 }
 0x2e9   : > { %v2234_v15 = vsub.f32 %v2138_v34, %v2186_v40  ;;  %v2410_v34 = vsub.f32 (!%p2866_p7), 0.0, %v5765_v42  ;;  %v5786_v40 = vld [vmem:[%s6029_s3 + $0x28] sm:$0xff] (!%p2866_p7) }
 0x2ea   : > { %v2477_v24 = vsub.f32 (!%p2866_p7), -0.9189385, %v5786_v40 }
 0x2eb   : > { %2251 = vst.msk [vmem:[#allocation2 + $0x38] sm:$0xff] %vm2243_vm12, %v2234_v15  ;;  %v2318_v15 = vmul.f32 (!%p2866_p7), %v2302_v47, %v6586_v26 }
 0x2ed   : > { %v2191_v17 = vpop.xlane.xlu0 %2190 }
 0x2ee   : > { %v2235_v10 = vsub.f32 %v2139_v1, %v2191_v17  ;;  %v2426_v1 = vmul.f32 (!%p2866_p7), 1.442695, %v2409_v16  ;;  %v2411_v17 = vsub.f32 (!%p2866_p7), 0.0, %v5772_v36  ;;  %v2418_v16 = vsub.f32 (!%p2866_p7), 0.0, %v5851_v8 }
 0x2ef   : > { %v2196_v19 = vpop.xlane.xlu1 %2195 }
 0x2f0   : > { %2252 = vst.msk [vmem:[#allocation2 + $0x40] sm:$0xff] %vm2243_vm12, %v2235_v10  ;;  %v2236_v49 = vsub.f32 %v2140_v28, %v2196_v19  ;;  %v5793_v28 = vld [vmem:[%s6029_s3 + $0x30] sm:$0xff] (!%p2866_p7)  ;;  %v2333_v10 = vsub.f32 (!%p2866_p7), -0.9189385, %v2317_v46  ;;  %v2428_v19 = vmul.f32 (!%p2866_p7), 1.442695, %v2410_v34  ;;  %3210 = vpow2.f32 (!%p2866_p7), %v2426_v1 }
 0x2f1   : > { %v2397_v46 = vsub.f32 (!%p2866_p7), %v6585_v43, %v2269_v60  ;;  %v2399_v1 = vsub.f32 (!%p2866_p7), %v6587_v56, %v2271_v27  ;;  %v2272_v43 = vld [vmem:[%s6028_s2 + $0x40] sm:$0xff] (!%p2866_p7)  ;;  %v2444_v26 = vmul.f32 (!%p2866_p7), 1.442695, %v2418_v16 }
 0x2f2   : > { %2253 = vst.msk [vmem:[#allocation2 + $0x48] sm:$0xff] %vm2243_vm12, %v2236_v49  ;;  %v2412_v49 = vsub.f32 (!%p2866_p7), 0.0, %v5779_v55  ;;  %3212 = vpow2.f32 (!%p2866_p7), %v2428_v19  ;;  %v5894_v16 = vld [vmem:[%s6029_s3 + $0x60] sm:$0xff] (!%p2866_p7) }
 0x2f5   : > { %v2201_v30 = vpop.xlane.xlu0 %2200 }
 0x2f6   : > { %v2237_v6 = vsub.f32 %v2141_v12, %v2201_v30  ;;  %v2356_v12 = vsel (!%p2866_p7), %vm448_vm1, %v2332_v5, 0.0  ;;  %v2430_v30 = vmul.f32 (!%p2866_p7), 1.442695, %v2411_v17  ;;  %v2478_v5 = vsub.f32 (!%p2866_p7), -0.9189385, %v5793_v28 }
 0x2f7   : > { %2357 = vadd.xlane.f32.xlu0 (!%p2866_p7), %v2356_v12 }
 0x2f8   : > { %2254 = vst.msk [vmem:[#allocation2 + $0x50] sm:$0xff] %vm2243_vm12, %v2237_v6  ;;  %v2206_v44 = vpop.xlane.xlu1 %2205  ;;  %v2413_v6 = vsub.f32 (!%p2866_p7), 0.0, %v5786_v40  ;;  %3214 = vpow2.f32 (!%p2866_p7), %v2430_v30 }
 0x2f9   : > { %v2238_v48 = vsub.f32 %v2142_v59, %v2206_v44  ;;  %v5801_v59 = vld [vmem:[%s6029_s3 + $0x38] sm:$0xff] (!%p2866_p7)  ;;  %v2264_v44 = vld [vmem:[%s6028_s2] sm:$0xff] (!%p2866_p7) }
 0x2fa   : > { %v3211_v47 = vpop.eup (!%p2866_p7), %3210 }
 0x2fb   : > { %2255 = vst.msk [vmem:[#allocation2 + $0x58] sm:$0xff] %vm2243_vm12, %v2238_v48  ;;  %v2211_v13 = vpop.xlane.xlu0 %2210  ;;  %v2432_v48 = vmul.f32 (!%p2866_p7), 1.442695, %v2412_v49 }
 0x2fc   : > { %v2239_v38 = vsub.f32 %v2143_v39, %v2211_v13  ;;  %v2414_v39 = vsub.f32 (!%p2866_p7), 0.0, %v5793_v28  ;;  %v2334_v13 = vsub.f32 (!%p2866_p7), -0.9189385, %v2318_v15  ;;  %v3213_v36 = vpop.eup (!%p2866_p7), %3212  ;;  %v5910_v28 = vld [vmem:[%s6029_s3 + $0x68] sm:$0xff] (!%p2866_p7) }
 0x2fd   : > { %3216 = vpow2.f32 (!%p2866_p7), %v2432_v48 }
 0x2fe   : > { %2256 = vst.msk [vmem:[#allocation2 + $0x60] sm:$0xff] %vm2243_vm12, %v2239_v38  ;;  %v2216_v21 = vpop.xlane.xlu1 %2215  ;;  %v2434_v38 = vmul.f32 (!%p2866_p7), 1.442695, %v2413_v6  ;;  %v2362_v4 = vsel (!%p2866_p7), %vm448_vm1, %v2334_v13, 0.0  ;;  %v6588_v6 = vld [vmem:[#allocation18_spill] sm:$0xff] (!%p2866_p7) }
 0x2ff   : > { %v2240_v57 = vsub.f32 %v2144_v29, %v2216_v21  ;;  %v5810_v29 = vld [vmem:[%s6029_s3 + $0x40] sm:$0xff] (!%p2866_p7)  ;;  %v2265_v21 = vld [vmem:[%s6028_s2 + $0x8] sm:$0xff] (!%p2866_p7) }
 0x300   : > { %3218 = vpow2.f32 (!%p2866_p7), %v2434_v38  ;;  %v2416_v23 = vsub.f32 (!%p2866_p7), 0.0, %v5810_v29 }
 0x301   : > { %2257 = vst.msk [vmem:[#allocation2 + $0x68] sm:$0xff] %vm2243_vm12, %v2240_v57  ;;  %v2266_v57 = vld [vmem:[%s6028_s2 + $0x10] sm:$0xff] (!%p2866_p7) }
 0x302   : > { %v2221_v3 = vpop.xlane.xlu0 %2220  ;;  %v2394_v18 = vsub.f32 (!%p2866_p7), %v6583_v63, %v2266_v57  ;;  %v2440_v2 = vmul.f32 (!%p2866_p7), 1.442695, %v2416_v23  ;;  %v3215_v51 = vpop.eup (!%p2866_p7), %3214 }
 0x303   : > { %v2241_v58 = vsub.f32 %v2145_v9, %v2221_v3  ;;  %2263 = sbr.rel (%p2866_p7) target bundleno = 1060 (0x424), region = 75  ;;  %v2436_v9 = vmul.f32 (!%p2866_p7), 1.442695, %v2414_v39  ;;  %v2415_v3 = vsub.f32 (!%p2866_p7), 0.0, %v5801_v59 }
 0x304   : > { %v2458_v15 = vmul.f32 (!%p2866_p7), %v3213_v36, %v2394_v18  ;;  %v2274_v36 = vld [vmem:[%s6028_s2 + $0x50] sm:$0xff] (!%p2866_p7) }
 0x305   : > { %2258 = vst.msk [vmem:[#allocation2 + $0x70] sm:$0xff] %vm2243_vm12, %v2241_v58  ;;  %v2359_v58 = vsel (!%p2866_p7), %vm448_vm1, %v2333_v10, 0.0  ;;  %3220 = vpow2.f32 (!%p2866_p7), %v2436_v9  ;;  %v2438_v33 = vmul.f32 (!%p2866_p7), 1.442695, %v2415_v3  ;;  %v2319_v10 = vmul.f32 (!%p2866_p7), %v2303_v41, %v6587_v56 }
 0x306   : > { %v2226_v62 = vpop.xlane.xlu1 %2225  ;;  %2360 = vadd.xlane.f32.xlu0 (!%p2866_p7), %v2359_v58  ;;  %v2490_v12 = vmul.f32 (!%p2866_p7), 0.5, %v2458_v15 }
 0x307   : > { %v2242_v45 = vsub.f32 %v2146_v53, %v2226_v62  ;;  %v2392_v53 = vsub.f32 (!%p2866_p7), %v6580_v0, %v2264_v44  ;;  %v5824_v62 = vld [vmem:[%s6029_s3 + $0x48] sm:$0xff] (!%p2866_p7)  ;;  %v2393_v0 = vsub.f32 (!%p2866_p7), %v6581_v35, %v2265_v21  ;;  %3222 = vpow2.f32 (!%p2866_p7), %v2438_v33  ;;  %v3217_v55 = vpop.eup (!%p2866_p7), %3216 }
 0x308   : > { %v2417_v31 = vsub.f32 (!%p2866_p7), 0.0, %v5824_v62  ;;  %v2474_v35 = vsub.f32 (!%p2866_p7), -0.9189385, %v5765_v42  ;;  %3224 = vpow2.f32 (!%p2866_p7), %v2440_v2  ;;  %v2460_v30 = vmul.f32 (!%p2866_p7), %v3217_v55, %v2396_v50 }
 0x309   : > { %2259 = vst.msk [vmem:[#allocation2 + $0x78] sm:$0xff] %vm2243_vm12, %v2242_v45  ;;  %v2267_v45 = vld [vmem:[%s6028_s2 + $0x18] sm:$0xff] (!%p2866_p7)  ;;  %v2456_v14 = vmul.f32 (!%p2866_p7), %v3209_v22, %v2392_v53  ;;  %v2457_v11 = vmul.f32 (!%p2866_p7), %v3211_v47, %v2393_v0  ;;  %v2304_v44 = vmul.f32 (!%p2866_p7), 0.5, %v6588_v6  ;;  %v2400_v21 = vsub.f32 (!%p2866_p7), %v6588_v6, %v2272_v43 }
 0x30a   : > { %v2395_v63 = vsub.f32 %v6584_v32, %v2267_v45  ;;  %v2442_v32 = vmul.f32 1.442695, %v2417_v31  ;;  %2363 = vadd.xlane.f32.xlu0 %v2362_v4  ;;  %v3219_v19 = vpop.eup %3218  ;;  %v2506_v9 = vmul.f32 %v2490_v12, %v2458_v15  ;;  %v2492_v3 = vmul.f32 0.5, %v2460_v30  ;;  %v6590_v15 = vld [vmem:[#allocation20_spill] sm:$0xff] }
 0x30b   : > { %v2488_v42 = vmul.f32 0.5, %v2456_v14  ;;  %v2489_v40 = vmul.f32 0.5, %v2457_v11  ;;  %v2461_v38 = vmul.f32 %v3219_v19, %v2397_v46  ;;  %v2335_v25 = vsub.f32 -0.9189385, %v2319_v10 }
 0x30c   : > { %3226 = vpow2.f32 %v2442_v32  ;;  %v2459_v17 = vmul.f32 %v3215_v51, %v2395_v63  ;;  %v2522_v4 = vsub.f32 %v2474_v35, %v2506_v9  ;;  %v6589_v35 = vld [vmem:[#allocation19_spill] sm:$0xff]  ;;  %v2420_v19 = vsub.f32 0.0, %v5894_v16 }
 0x30d   : > { %v2504_v34 = vmul.f32 %v2488_v42, %v2456_v14  ;;  %v2505_v39 = vmul.f32 %v2489_v40, %v2457_v11  ;;  %v2493_v23 = vmul.f32 0.5, %v2461_v38  ;;  %3228 = vpow2.f32 %v2444_v26 }
 0x30e   : > { %v2491_v13 = vmul.f32 0.5, %v2459_v17  ;;  %v2320_v14 = vmul.f32 %v2304_v44, %v6588_v6  ;;  %v2305_v50 = vmul.f32 0.5, %v6589_v35  ;;  %v2401_v32 = vsub.f32 %v6589_v35, %v2273_v54  ;;  %v6591_v6 = vld [vmem:[#allocation21_spill] sm:$0xff] }
 0x30f   : > { %v2520_v49 = vsub.f32 %v2472_v52, %v2504_v34  ;;  %v3221_v48 = vpop.eup %3220  ;;  %v2521_v45 = vsub.f32 %v2473_v61, %v2505_v39  ;;  %v2508_v52 = vmul.f32 %v2492_v3, %v2460_v30  ;;  %v2509_v31 = vmul.f32 %v2493_v23, %v2461_v38 }
 0x310   : > { %v2462_v58 = vmul.f32 %v3221_v48, %v2398_v37  ;;  %v2507_v33 = vmul.f32 %v2491_v13, %v2459_v17  ;;  %v2542_v61 = vsel %vm448_vm1, %v2522_v4, 0.0  ;;  %v2479_v11 = vsub.f32 -0.9189385, %v5801_v59 }
 0x311   : > { %v2536_v57 = vsel %vm448_vm1, %v2520_v49, 0.0  ;;  %v3223_v53 = vpop.eup %3222  ;;  %v2539_v60 = vsel %vm448_vm1, %v2521_v45, 0.0  ;;  %v2524_v63 = vsub.f32 %v2476_v7, %v2508_v52  ;;  %v2525_v46 = vsub.f32 %v2477_v24, %v2509_v31  ;;  %v2275_v45 = vld [vmem:[%s6028_s2 + $0x58] sm:$0xff]  ;;  %v2276_v31 = vld [vmem:[%s6028_s2 + $0x60] sm:$0xff] }
 0x312   : > { %2537 = vadd.xlane.f32.xlu1 %v2536_v57  ;;  %v2494_v0 = vmul.f32 0.5, %v2462_v58  ;;  %v2463_v18 = vmul.f32 %v3223_v53, %v2399_v1  ;;  %v3225_v22 = vpop.eup %3224  ;;  %v2523_v2 = vsub.f32 %v2475_v20, %v2507_v33  ;;  %2540 = vadd.xlane.f32.xlu0 %v2539_v60  ;;  %v5884_v20 = vld [vmem:[%s6029_s3 + $0x58] sm:$0xff]  ;;  %v2336_v37 = vsub.f32 -0.9189385, %v2320_v14  ;;  %v6592_v33 = vld [vmem:[#allocation22_spill] sm:$0xff] }
 0x313   : > { %v2548_v42 = vsel %vm448_vm1, %v2524_v63, 0.0  ;;  %v2464_v7 = vmul.f32 %v3225_v22, %v2400_v21  ;;  %v2365_v51 = vsel %vm448_vm1, %v2335_v25, 0.0  ;;  %v2321_v34 = vmul.f32 %v2305_v50, %v6589_v35  ;;  %v6593_v50 = vld [vmem:[#allocation23_spill] sm:$0xff] }
 0x314   : > { %v2545_v56 = vsel %vm448_vm1, %v2523_v2, 0.0  ;;  %v2510_v41 = vmul.f32 %v2494_v0, %v2462_v58  ;;  %v2495_v27 = vmul.f32 0.5, %v2463_v18  ;;  %v2306_v24 = vmul.f32 0.5, %v6590_v15  ;;  %v5931_v0 = vld [vmem:[%s6029_s3 + $0x78] sm:$0xff] }
 0x315   : > { %v2419_v1 = vsub.f32 0.0, %v5884_v20  ;;  %v2402_v40 = vsub.f32 %v6590_v15, %v2274_v36  ;;  %v2551_v17 = vsel %vm448_vm1, %v2525_v46, 0.0  ;;  %v2496_v10 = vmul.f32 0.5, %v2464_v7 }
 0x316   : > { %2543 = vadd.xlane.f32.xlu1 %v2542_v61  ;;  %v3227_v47 = vpop.eup %3226  ;;  %2546 = vadd.xlane.f32.xlu0 %v2545_v56  ;;  %v2526_v43 = vsub.f32 %v2478_v5, %v2510_v41  ;;  %v2511_v59 = vmul.f32 %v2495_v27, %v2463_v18  ;;  %v2368_v12 = vsel %vm448_vm1, %v2336_v37, 0.0  ;;  %v2480_v30 = vsub.f32 -0.9189385, %v5810_v29  ;;  %v5918_v29 = vld [vmem:[%s6029_s3 + $0x70] sm:$0xff] }
 0x317   : > { %v2465_v55 = vmul.f32 %v3227_v47, %v2401_v32  ;;  %v2446_v26 = vmul.f32 1.442695, %v2419_v1  ;;  %v3229_v49 = vpop.eup %3228  ;;  %v2337_v5 = vsub.f32 -0.9189385, %v2321_v34  ;;  %v2307_v44 = vmul.f32 0.5, %v6591_v6 }
 0x318   : > { %v2448_v48 = vmul.f32 1.442695, %v2420_v19  ;;  %v2554_v39 = vsel %vm448_vm1, %v2526_v43, 0.0  ;;  %v2527_v13 = vsub.f32 %v2479_v11, %v2511_v59  ;;  %v2322_v21 = vmul.f32 %v2306_v24, %v6590_v15  ;;  %v2277_v11 = vld [vmem:[%s6028_s2 + $0x68] sm:$0xff] }
 0x319   : > { %3230 = vpow2.f32 %v2446_v26  ;;  %v2497_v38 = vmul.f32 0.5, %v2465_v55  ;;  %v2512_v57 = vmul.f32 %v2496_v10, %v2464_v7  ;;  %v2466_v9 = vmul.f32 %v3229_v49, %v2402_v40  ;;  %v6594_v40 = vld [vmem:[#allocation24_spill] sm:$0xff] }
 0x31a   : > { %2549 = vadd.xlane.f32.xlu1 %v2548_v42  ;;  %2366 = vadd.xlane.f32.xlu0 %v2365_v51  ;;  %3232 = vpow2.f32 %v2448_v48  ;;  %v2421_v3 = vsub.f32 0.0, %v5910_v28  ;;  %v2481_v58 = vsub.f32 -0.9189385, %v5824_v62  ;;  %v2323_v53 = vmul.f32 %v2307_v44, %v6591_v6 }
 0x31b   : > { %v2308_v23 = vmul.f32 0.5, %v6592_v33  ;;  %v2422_v52 = vsub.f32 0.0, %v5918_v29  ;;  %v2557_v62 = vsel %vm448_vm1, %v2527_v13, 0.0  ;;  %v2371_v18 = vsel %vm448_vm1, %v2337_v5, 0.0  ;;  %v6595_v13 = vld [vmem:[#allocation25_spill] sm:$0xff] }
 0x31c   : > { %v2450_v4 = vmul.f32 1.442695, %v2421_v3  ;;  %v2513_v54 = vmul.f32 %v2497_v38, %v2465_v55  ;;  %v2338_v22 = vsub.f32 -0.9189385, %v2322_v21  ;;  %v2528_v60 = vsub.f32 %v2480_v30, %v2512_v57 }
 0x31d   : > { %v2498_v2 = vmul.f32 0.5, %v2466_v9  ;;  %v2452_v14 = vmul.f32 1.442695, %v2422_v52  ;;  %v2403_v61 = vsub.f32 %v6591_v6, %v2275_v45  ;;  %v2423_v63 = vsub.f32 0.0, %v5931_v0 }
 0x31e   : > { %2552 = vadd.xlane.f32.xlu1 %v2551_v17  ;;  %2369 = vadd.xlane.f32.xlu0 %v2368_v12  ;;  %3234 = vpow2.f32 %v2450_v4  ;;  %v2339_v25 = vsub.f32 -0.9189385, %v2323_v53  ;;  %v2324_v35 = vmul.f32 %v2308_v23, %v6592_v33  ;;  %v2309_v56 = vmul.f32 0.5, %v6593_v50  ;;  %v2279_v12 = vld [vmem:[%s6028_s2 + $0x78] sm:$0xff] }
 0x31f   : > { %3236 = vpow2.f32 %v2452_v14  ;;  %v2374_v41 = vsel %vm448_vm1, %v2338_v22, 0.0  ;;  %v2404_v27 = vsub.f32 %v6592_v33, %v2276_v31  ;;  %v2454_v32 = vmul.f32 1.442695, %v2423_v63 }
 0x320   : > { %v2560_v42 = vsel %vm448_vm1, %v2528_v60, 0.0  ;;  %v2529_v46 = vsub.f32 %v2481_v58, %v2513_v54  ;;  %v2482_v7 = vsub.f32 -0.9189385, %v5851_v8  ;;  %v2514_v36 = vmul.f32 %v2498_v2, %v2466_v9  ;;  %v2278_v8 = vld [vmem:[%s6028_s2 + $0x70] sm:$0xff] }
 0x321   : > { %3238 = vpow2.f32 %v2454_v32  ;;  %v2377_v34 = vsel %vm448_vm1, %v2339_v25, 0.0  ;;  %v2483_v15 = vsub.f32 -0.9189385, %v5884_v20  ;;  %v2340_v24 = vsub.f32 -0.9189385, %v2324_v35 }
 0x322   : > { %2555 = vadd.xlane.f32.xlu1 %v2554_v39  ;;  %2372 = vadd.xlane.f32.xlu0 %v2371_v18  ;;  %v2325_v1 = vmul.f32 %v2309_v56, %v6593_v50  ;;  %v2405_v55 = vsub.f32 %v6593_v50, %v2277_v11  ;;  %v2310_v17 = vmul.f32 0.5, %v6594_v40  ;;  %v2563_v10 = vsel %vm448_vm1, %v2529_v46, 0.0  ;;  %v2601_v46 = vld [vmem:[#allocation2 + $0x8] sm:$0xff]  ;;  %v2604_v11 = vld [vmem:[#allocation2 + $0x20] sm:$0xff] }
 0x323   : > { %v3231_v47 = vpop.eup %3230  ;;  %v2530_v26 = vsub.f32 %v2482_v7, %v2514_v36  ;;  %v2406_v20 = vsub.f32 %v6594_v40, %v2278_v8  ;;  %v2380_v5 = vsel %vm448_vm1, %v2340_v24, 0.0  ;;  %v2311_v38 = vmul.f32 0.5, %v6595_v13  ;;  %v2602_v7 = vld [vmem:[#allocation2 + $0x10] sm:$0xff]  ;;  %v2603_v36 = vld [vmem:[#allocation2 + $0x18] sm:$0xff]  ;;  %v2609_v24 = vld [vmem:[#allocation2 + $0x48] sm:$0xff] }
 0x324   : > { %v2467_v37 = vmul.f32 %v3231_v47, %v2403_v61  ;;  %v3233_v51 = vpop.eup %3232  ;;  %v2341_v6 = vsub.f32 -0.9189385, %v2325_v1  ;;  %v2326_v39 = vmul.f32 %v2310_v17, %v6594_v40  ;;  %v2484_v9 = vsub.f32 -0.9189385, %v5894_v16  ;;  %v2610_v8 = vld [vmem:[#allocation2 + $0x50] sm:$0xff]  ;;  %v2612_v17 = vld [vmem:[#allocation2 + $0x60] sm:$0xff] }
 0x325   : > { %v2468_v59 = vmul.f32 %v3233_v51, %v2404_v27  ;;  %v2566_v57 = vsel %vm448_vm1, %v2530_v26, 0.0  ;;  %v2407_v58 = vsub.f32 %v6595_v13, %v2279_v12  ;;  %v2485_v33 = vsub.f32 -0.9189385, %v5910_v28  ;;  %v2607_v51 = vld [vmem:[#allocation2 + $0x38] sm:$0xff]  ;;  %v2613_v26 = vld [vmem:[#allocation2 + $0x68] sm:$0xff] }
 0x326   : > { %2558 = vadd.xlane.f32.xlu1 %v2557_v62  ;;  %2375 = vadd.xlane.f32.xlu0 %v2374_v41  ;;  %v2499_v43 = vmul.f32 0.5, %v2467_v37  ;;  %v2383_v52 = vsel %vm448_vm1, %v2341_v6, 0.0  ;;  %v2342_v62 = vsub.f32 -0.9189385, %v2326_v39  ;;  %v2327_v18 = vmul.f32 %v2311_v38, %v6595_v13  ;;  %v2615_v6 = vld [vmem:[#allocation2 + $0x78] sm:$0xff] }
 0x327   : > { %v2500_v49 = vmul.f32 0.5, %v2468_v59  ;;  %v2486_v31 = vsub.f32 -0.9189385, %v5918_v29  ;;  %v2487_v41 = vsub.f32 -0.9189385, %v5931_v0  ;;  %v2605_v0 = vld [vmem:[#allocation2 + $0x28] sm:$0xff] }
 0x328   : > { %v2515_v19 = vmul.f32 %v2499_v43, %v2467_v37  ;;  %v3235_v30 = vpop.eup %3234  ;;  %v2386_v2 = vsel %vm448_vm1, %v2342_v62, 0.0  ;;  %v2343_v28 = vsub.f32 -0.9189385, %v2327_v18  ;;  %v2606_v37 = vld [vmem:[#allocation2 + $0x30] sm:$0xff] }
 0x329   : > { %v2469_v48 = vmul.f32 %v3235_v30, %v2405_v55  ;;  %v3237_v21 = vpop.eup %3236  ;;  %v2516_v3 = vmul.f32 %v2500_v49, %v2468_v59  ;;  %v2611_v55 = vld [vmem:[#allocation2 + $0x58] sm:$0xff] }
 0x32a   : > { %2561 = vadd.xlane.f32.xlu1 %v2560_v42  ;;  %2378 = vadd.xlane.f32.xlu0 %v2377_v34  ;;  %v2531_v44 = vsub.f32 %v2483_v15, %v2515_v19  ;;  %v2470_v45 = vmul.f32 %v3237_v21, %v2406_v20  ;;  %v2389_v35 = vsel %vm448_vm1, %v2343_v28, 0.0  ;;  %v2600_v42 = vld [vmem:[#allocation2] sm:$0xff]  ;;  %v2614_v20 = vld [vmem:[#allocation2 + $0x70] sm:$0xff] }
 0x32b   : > { %v2501_v53 = vmul.f32 0.5, %v2469_v48  ;;  %v3239_v23 = vpop.eup %3238  ;;  %v2532_v54 = vsub.f32 %v2484_v9, %v2516_v3  ;;  %v2608_v34 = vld [vmem:[#allocation2 + $0x40] sm:$0xff] }
 0x32c   : > { %v2569_v4 = vsel %vm448_vm1, %v2531_v44, 0.0  ;;  %v2502_v16 = vmul.f32 0.5, %v2470_v45  ;;  %v2471_v60 = vmul.f32 %v3239_v23, %v2407_v58 }
 0x32d   : > { %v2517_v22 = vmul.f32 %v2501_v53, %v2469_v48  ;;  %v2572_v14 = vsel %vm448_vm1, %v2532_v54, 0.0 }
 0x32e   : > { %2564 = vadd.xlane.f32.xlu1 %v2563_v10  ;;  %2381 = vadd.xlane.f32.xlu0 %v2380_v5  ;;  %v2518_v63 = vmul.f32 %v2502_v16, %v2470_v45  ;;  %v2503_v25 = vmul.f32 0.5, %v2471_v60 }
 0x32f   : > { %v2533_v61 = vsub.f32 %v2485_v33, %v2517_v22 }
 0x330   : > { %v2534_v56 = vsub.f32 %v2486_v31, %v2518_v63  ;;  %v2519_v27 = vmul.f32 %v2503_v25, %v2471_v60 }
 0x331   : > { %v2575_v50 = vsel %vm448_vm1, %v2533_v61, 0.0 }
 0x332   : > { %2567 = vadd.xlane.f32.xlu1 %v2566_v57  ;;  %2384 = vadd.xlane.f32.xlu0 %v2383_v52  ;;  %v2578_v29 = vsel %vm448_vm1, %v2534_v56, 0.0  ;;  %v2535_v32 = vsub.f32 %v2487_v41, %v2519_v27 }
 0x334   : > { %v2581_v47 = vsel %vm448_vm1, %v2535_v32, 0.0 }
 0x336   : > { %2570 = vadd.xlane.f32.xlu1 %v2569_v4  ;;  %2387 = vadd.xlane.f32.xlu0 %v2386_v2 }
 0x33a   : > { %2573 = vadd.xlane.f32.xlu1 %v2572_v14  ;;  %2390 = vadd.xlane.f32.xlu0 %v2389_v35 }
 0x33e   : > { %2576 = vadd.xlane.f32.xlu1 %v2575_v50 }
 0x340   : > { %v2346_v15 = vpop.xlane.xlu0 %2345 }
 0x342   : > { %2579 = vadd.xlane.f32.xlu1 %v2578_v29 }
 0x346   : > { %2582 = vadd.xlane.f32.xlu1 %v2581_v47 }
 0x35f   : > { %v2352_v59 = vpop.xlane.xlu1 %2351 }
 0x367   : > { %2616 = vxpose.xlu0.b32.start [1/16] (narrow) %v2600_v42, 8 }
 0x36b   : > { %2617 = vxpose.xlu0.b32.cont [2/16] (narrow) %v2601_v46, 8 }
 0x36f   : > { %2618 = vxpose.xlu0.b32.cont [3/16] (narrow) %v2602_v7, 8  ;;  %v2349_v1 = vpop.xlane.xlu0 %2348 }
 0x373   : > { %2619 = vxpose.xlu0.b32.cont [4/16] (narrow) %v2603_v36, 8 }
 0x374   : > { %v2355_v10 = vpop.xlane.xlu1 %2354 }
 0x377   : > { %2620 = vxpose.xlu0.b32.cont [5/16] (narrow) %v2604_v11, 8 }
 0x37b   : > { %2621 = vxpose.xlu0.b32.cont [6/16] (narrow) %v2605_v0, 8 }
 0x37f   : > { %2622 = vxpose.xlu0.b32.cont [7/16] (narrow) %v2606_v37, 8 }
 0x383   : > { %2623 = vxpose.xlu0.b32.cont [8/16] (narrow) %v2607_v51, 8 }
 0x384   : > { %v2358_v43 = vpop.xlane.xlu0 %2357 }
 0x387   : > { %2624 = vxpose.xlu0.b32.cont [9/16] (narrow) %v2608_v34, 8 }
 0x38b   : > { %2625 = vxpose.xlu0.b32.cont [10/16] (narrow) %v2609_v24, 8 }
 0x38f   : > { %2626 = vxpose.xlu0.b32.cont [11/16] (narrow) %v2610_v8, 8 }
 0x393   : > { %v2361_v40 = vpop.xlane.xlu0 %2360  ;;  %2627 = vxpose.xlu0.b32.cont [12/16] (narrow) %v2611_v55, 8 }
 0x397   : > { %2628 = vxpose.xlu0.b32.cont [13/16] (narrow) %v2612_v17, 8  ;;  %v2364_v19 = vpop.xlane.xlu0 %2363 }
 0x39b   : > { %2629 = vxpose.xlu0.b32.cont [14/16] (narrow) %v2613_v26, 8 }
 0x39f   : > { %v2538_v49 = vpop.xlane.xlu1 %2537  ;;  %v2541_v30 = vpop.xlane.xlu0 %2540  ;;  %2630 = vxpose.xlu0.b32.cont [15/16] (narrow) %v2614_v20, 8 }
 0x3a0   : > { %v2584_v12 = vsub.f32 %v2538_v49, %v2346_v15  ;;  %v2585_v44 = vsub.f32 %v2541_v30, %v2349_v1 }
 0x3a2   : > { %2649 = vxpose.xlu1.b32.start [1/16] (narrow) %v2584_v12, 8 }
 0x3a3   : > { %v2544_v5 = vpop.xlane.xlu1 %2543  ;;  %v2547_v48 = vpop.xlane.xlu0 %2546  ;;  %2631 = vxpose.xlu0.b32.end [16/16] (narrow) %v2615_v6, 8 }
 0x3a4   : > { %v2586_v13 = vsub.f32 %v2544_v5, %v2352_v59  ;;  %v2587_v57 = vsub.f32 %v2547_v48, %v2355_v10 }
 0x3a6   : > { %2650 = vxpose.xlu1.b32.cont [2/16] (narrow) %v2585_v44, 8 }
 0x3a7   : > { %v2550_v39 = vpop.xlane.xlu1 %2549  ;;  %v2367_v38 = vpop.xlane.xlu0 %2366 }
 0x3a8   : > { %v2588_v58 = vsub.f32 %v2550_v39, %v2358_v43 }
 0x3aa   : > { %2651 = vxpose.xlu1.b32.cont [3/16] (narrow) %v2586_v13, 8 }
 0x3ab   : > { %v2553_v21 = vpop.xlane.xlu1 %2552  ;;  %v2370_v9 = vpop.xlane.xlu0 %2369 }
 0x3ac   : > { %v2589_v33 = vsub.f32 %v2553_v21, %v2361_v40 }
 0x3ae   : > { %2652 = vxpose.xlu1.b32.cont [4/16] (narrow) %v2587_v57, 8 }
 0x3af   : > { %v2556_v3 = vpop.xlane.xlu1 %2555  ;;  %v2373_v45 = vpop.xlane.xlu0 %2372 }
 0x3b0   : > { %v2590_v4 = vsub.f32 %v2556_v3, %v2364_v19 }
 0x3b2   : > { %2653 = vxpose.xlu1.b32.cont [5/16] (narrow) %v2588_v58, 8 }
 0x3b3   : > { %v2559_v53 = vpop.xlane.xlu1 %2558  ;;  %v2376_v52 = vpop.xlane.xlu0 %2375 }
 0x3b4   : > { %v2591_v62 = vsub.f32 %v2559_v53, %v2367_v38 }
 0x3b6   : > { %2654 = vxpose.xlu1.b32.cont [6/16] (narrow) %v2589_v33, 8 }
 0x3b7   : > { %v2562_v23 = vpop.xlane.xlu1 %2561  ;;  %v2379_v16 = vpop.xlane.xlu0 %2378 }
 0x3b8   : > { %v2592_v54 = vsub.f32 %v2562_v23, %v2370_v9 }
 0x3ba   : > { %2655 = vxpose.xlu1.b32.cont [7/16] (narrow) %v2590_v4, 8 }
 0x3bb   : > { %v2565_v18 = vpop.xlane.xlu1 %2564  ;;  %v2382_v31 = vpop.xlane.xlu0 %2381 }
 0x3bc   : > { %v2593_v60 = vsub.f32 %v2565_v18, %v2373_v45 }
 0x3be   : > { %2656 = vxpose.xlu1.b32.cont [8/16] (narrow) %v2591_v62, 8 }
 0x3bf   : > { %v2568_v22 = vpop.xlane.xlu1 %2567  ;;  %v2385_v63 = vpop.xlane.xlu0 %2384 }
 0x3c0   : > { %v2594_v28 = vsub.f32 %v2568_v22, %v2376_v52 }
 0x3c2   : > { %2657 = vxpose.xlu1.b32.cont [9/16] (narrow) %v2592_v54, 8 }
 0x3c3   : > { %v2571_v2 = vpop.xlane.xlu1 %2570  ;;  %v2388_v50 = vpop.xlane.xlu0 %2387 }
 0x3c4   : > { %v2595_v61 = vsub.f32 %v2571_v2, %v2379_v16 }
 0x3c6   : > { %2658 = vxpose.xlu1.b32.cont [10/16] (narrow) %v2593_v60, 8 }
 0x3c7   : > { %v2574_v14 = vpop.xlane.xlu1 %2573  ;;  %v2391_v29 = vpop.xlane.xlu0 %2390 }
 0x3c8   : > { %v2596_v35 = vsub.f32 %v2574_v14, %v2382_v31 }
 0x3ca   : > { %2659 = vxpose.xlu1.b32.cont [11/16] (narrow) %v2594_v28, 8 }
 0x3cb   : > { %v2577_v25 = vpop.xlane.xlu1 %2576 }
 0x3cc   : > { %v2597_v41 = vsub.f32 %v2577_v25, %v2385_v63 }
 0x3ce   : > { %2660 = vxpose.xlu1.b32.cont [12/16] (narrow) %v2595_v61, 8 }
 0x3cf   : > { %v2580_v56 = vpop.xlane.xlu1 %2579 }
 0x3d0   : > { %v2598_v27 = vsub.f32 %v2580_v56, %v2388_v50 }
 0x3d2   : > { %2661 = vxpose.xlu1.b32.cont [13/16] (narrow) %v2596_v35, 8 }
 0x3d3   : > { %v2583_v32 = vpop.xlane.xlu1 %2582 }
 0x3d4   : > { %v2599_v47 = vsub.f32 %v2583_v32, %v2391_v29 }
 0x3d6   : > { %2662 = vxpose.xlu1.b32.cont [14/16] (narrow) %v2597_v41, 8 }
 0x3da   : > { %2663 = vxpose.xlu1.b32.cont [15/16] (narrow) %v2598_v27, 8 }
 0x3de   : > { %2664 = vxpose.xlu1.b32.end [16/16] (narrow) %v2599_v47, 8 }
 0x3e7   : > { %v2632_v42 = vpop.trf.xlu0 }
 0x3e8   : > { %2648 = vst [vmem:[#allocation7] sm:$0x1] %v2632_v42 }
 0x422   : > { %v2665_v46 = vpop.trf.xlu1 }
 0x423   : > { %2681 = vst [vmem:[#allocation7 + $0x1] sm:$0x1] %v2665_v46 }
 0x424 PF: > { %p5982_p2 = scmp.eq.s32.totalorder %s2818_s24, 1  ;;  %s3357_s7 = smov [#allocation7]  }
 0x425   : > { %s2691_s27 = sshll.u32 %s3357_s7, 4  ;;  %s2692_s27 = int_to_ptr.vmem [resolvable:$true] %s2691_s27 }
 0x426   : > { %s3268_s6 = scalar_lea.vmem %s2692_s27, 32  ;;  %p3275_p8 = scmp.lt.s32.totalorder %s2692_s27, %s2692_s27 }
 0x427   : > { %p3269_p4 = scmp.ne.s32.totalorder %s2692_s27, %s3268_s6  ;;  %p3276_p9 = scmp.lt.s32.totalorder %s3268_s6, %s3268_s6 }
 0x429   : > { %p3270_p5 = pnand %p3269_p4, %p5982_p2  ;;  %p3277_p10 = por %p3276_p9, %p3275_p8 }
 0x42b   : > { %p3271_p6 = pneg %p3270_p5 }
 0x42d   : > { %p3278_p12 = pnand %p3277_p10, %p3271_p6 }
 0x42f   : > { %3281 = shalt.err (!%p3278_p12)
}
 0x430   : > { %s3282_s24 = scalar_lea.hbm %s6031_s5, 32 }
 0x431   : > { %p3283_p13 = scmp.ne.s32.totalorder %s6031_s5, %s3282_s24  ;;  %p3288_p0 = scmp.lt.u32.totalorder %s3282_s24, %s6031_s5 }
 0x433   : > { %p3284_p3 = pnand %p3283_p13, %p5982_p2 }
 0x435   : > { %p3285_p11 = pneg %p3284_p3 }
 0x437   : > { %p3290_p1 = pnand %p3288_p0, %p3285_p11 }
 0x439   : > { %3293 = shalt.err (!%p3290_p1)
}
 0x43a   : > { %2892 = dma.vmem_to_hbm [thread:$0]  (%p5982_p2), %s2692_s27, 32, %s6031_s5, [#allocation5]  }
 0x43b   : > { %3323 = dma.done.wait (%p5982_p2), [#allocation5], 32  }
 0x43c   : > { %3325 = vsyncadd (%p5982_p2), [#allocation5], 4294967264 }
 0x43d PF: > { %s19_s23 = sadd.s32 1, %s3348_s23   ;;  %s6597_s18 = smov %s3332_s19 }
 0x43e   : > { %p16_p7 = scmp.ge.s32.totalorder %s19_s23, 4   ;;  %s6598_s19 = smov %s3336_s20 }
 0x43f   : > { %s6599_s20 = smov %s3438_s30  ;;  %s6600_s21 = smov %s3344_s22 }
 0x440   : > { %s6601_s22 = smov %s6603_s25  ;;  %18 = sbr.rel (!%p16_p7) target bundleno = 5 (0x5), region = 126 }
 0x447   :  { %2704 = vsyncpa [#allocation4], 1 }
 0x448   :  { %2706 = vsyncpa [#allocation4 + $0x1], 1 }
 0x449   :  { %2707 = vsyncpa [#allocation5], 1 }
 0x44a   :  { %2709 = vsyncpa [#allocation5 + $0x1], 1 }

</bundles_post_ra>
